<compile_context>
chip_gen: v5e
topology: v5e:2x2
jax: 0.10.0
libtpu: 0.0.40
codegen_flags: <defaults>
</compile_context>

<pallas_src>
import jax
import jax.numpy as jnp
from jax.experimental import pallas as pl
from jax.experimental.pallas import tpu as pltpu


# ----------------------------------------------------------------------------
# Pallas kernel: one batch tile -> 4 chained MXU matmuls + ReLUs.
# ----------------------------------------------------------------------------
def cnn_kernel(x_ref, wa_ref, wb_ref, wc_ref, wd_ref, out_ref):
    wdt = wa_ref.dtype
    x = x_ref[...].astype(wdt)                                         # (TB, 205)

    # conv_1 (k2 s2, no bias) as a block-diag matmul (zero rows for x[192:205]),
    # + relu_1
    h = jnp.dot(x, wa_ref[...], preferred_element_type=jnp.float32)    # (TB,1536)
    h = jnp.maximum(h, 0.0).astype(wdt)

    # avgpool_1 + conv_2 (both taps) fused into one matmul, + relu_2
    h = jnp.dot(h, wb_ref[...], preferred_element_type=jnp.float32)    # (TB, 384)
    h = jnp.maximum(h, 0.0).astype(wdt)

    # avgpool_2 + flatten permutation + fc_1 fused into one matmul, + relu_3
    h = jnp.dot(h, wc_ref[...], preferred_element_type=jnp.float32)    # (TB, 192)
    h = jnp.maximum(h, 0.0).astype(wdt)

    # fc_2 padded to 128 output lanes (unmasked stores); cols 4..127 are zero
    out_ref[...] = jnp.dot(h, wd_ref[...],
                           preferred_element_type=jnp.float32
                           ).astype(out_ref.dtype)                     # (TB, 128)


# ----------------------------------------------------------------------------
# Wrapper: structured-weight construction (glue) + batch-tiled pallas_call.
# ----------------------------------------------------------------------------
def _round_up(a, b):
    return (a + b - 1) // b * b


def build_fused_weights(conv1_w, conv2_w, fc1_w, fc2_w,
                        compute_dtype=jnp.bfloat16):
    """Fold conv/pool/flatten/fc structure into 4 dense matmul weights.

    Built in f32, cast to compute_dtype at the end (pure parameter glue; hoist
    this out of the per-call path when parameters are static).
    """
    f32 = jnp.float32
    conv1_w = conv1_w.astype(f32)
    conv2_w = conv2_w.astype(f32)
    fc1_w = fc1_w.astype(f32)
    fc2_w = fc2_w.astype(f32)

    eye12 = jnp.eye(12, dtype=f32)

    # --- W_A: conv_1 expansion.  Per window block (16 raw, 8 pos x 16 ch). ---
    # A_blk[k, p*16 + c] = conv1_w[c, 0, k - 2p]  for k - 2p in {0, 1}
    w1t = conv1_w[:, 0, :].T                                   # (2 taps, 16 ch)
    k = jnp.arange(16)
    p = jnp.arange(8)
    rel1 = k[:, None] - 2 * p[None, :]                         # (16, 8)
    valid1 = (rel1 == 0) | (rel1 == 1)
    tap1 = jnp.clip(rel1, 0, 1)
    a_blk = jnp.where(valid1[:, :, None], w1t[tap1], 0.0)      # (16, 8, 16)
    a_blk = a_blk.reshape(16, 128)
    w_a = (eye12[:, None, :, None] * a_blk[None, :, None, :]).reshape(192, 1536)
    # Rows 192..204 are zero: raw x[:, 192:205] never reaches the output
    # (4 stride-2 stages => final position j uses exactly x[16j:16j+16]).
    w_a = jnp.pad(w_a, ((0, 13), (0, 0)))                      # (205, 1536)

    # --- W_B: avgpool_1 + conv_2 taps.  Per window block (128 -> 2 pos x 16). -
    # B_blk[p*16+cin, m*16+c2] = 0.5*conv2_w[c2, cin, (p-4m)//2] for p in [4m,4m+4)
    w2 = jnp.transpose(conv2_w, (2, 1, 0))                     # (tap, cin, cout)
    m = jnp.arange(2)
    rel2 = p[:, None] - 4 * m[None, :]                         # (8, 2)
    valid2 = (rel2 >= 0) & (rel2 < 4)
    tap2 = jnp.clip(rel2 // 2, 0, 1)
    b_core = w2[tap2]                                          # (8, 2, 16, 16) [p,m,cin,c2]
    b_blk = 0.5 * jnp.where(valid2[:, :, None, None], b_core, 0.0)
    b_blk = jnp.transpose(b_blk, (0, 2, 1, 3)).reshape(128, 32)  # [p*16+cin, m*16+c2]
    w_b = (eye12[:, None, :, None] * b_blk[None, :, None, :]).reshape(1536, 384)

    # --- W_C: avgpool_2 + torch flatten (feature = c*12 + j) + fc_1. ---------
    # W_C[j*32 + m*16 + c, o] = 0.5 * fc1_w[o, c*12 + j]   (independent of m)
    fin = jnp.arange(16)[:, None] * 12 + jnp.arange(12)[None, :]   # (16c, 12j)
    g = fc1_w[:, fin]                                          # (192o, 16c, 12j)
    w_c3 = 0.5 * jnp.transpose(g, (2, 1, 0))                   # (12j, 16c, 192o)
    w_c = jnp.broadcast_to(w_c3[:, None, :, :], (12, 2, 16, 192)).reshape(384, 192)

    # --- W_D: fc_2^T zero-padded to 128 output lanes. ------------------------
    w_d = jnp.zeros((192, 128), f32).at[:, :4].set(fc2_w.T)

    return tuple(w.astype(compute_dtype) for w in (w_a, w_b, w_c, w_d))


def _choose_tiling(batch, batch_tile):
    """Tile rows (multiple of 8) and step count (even when >1 for v7x balance)."""
    b8 = _round_up(max(batch, 1), 8)
    if b8 <= batch_tile:
        return b8, 1
    n_steps = -(-b8 // batch_tile)
    if n_steps % 2:
        n_steps += 1            # balance the parallel grid across 2 TensorCores
    tb = _round_up(-(-b8 // n_steps), 8)
    return tb, n_steps


def _weight_spec(shape):
    # Constant index_map -> weight stays VMEM-resident across the whole grid;
    # single-buffer it (no revolving copy) when pipeline_mode is available.
    if hasattr(pl, "Buffered"):
        try:
            return pl.BlockSpec(shape, lambda i: (0, 0),
                                pipeline_mode=pl.Buffered(1))
        except TypeError:
            pass
    return pl.BlockSpec(shape, lambda i: (0, 0))


def cnn_forward_fused(x, fused_weights, *, batch_tile=1024,
                      vmem_limit_bytes=48 * 1024 * 1024):
    """x: (B, 205) (or anything reshapeable to (-1, 205)); fused weights from
    build_fused_weights.  Returns f32 (B, 4)."""
    w_a, w_b, w_c, w_d = fused_weights
    compute_dtype = w_a.dtype

    x = jnp.asarray(x).reshape(-1, 205)
    B = x.shape[0]

    tb, n_steps = _choose_tiling(B, batch_tile)
    bp = tb * n_steps
    if bp != B:
        # Explicit padding keeps every store in-bounds; padded zero rows flow
        # through the matmul/relu chain harmlessly and are sliced off below.
        x = jnp.pad(x, ((0, bp - B), (0, 0)))

    x_item = jnp.dtype(x.dtype).itemsize
    w_item = jnp.dtype(compute_dtype).itemsize
    w_elems = 205 * 1536 + 1536 * 384 + 384 * 192 + 192 * 128
    flops = 2 * bp * w_elems
    bytes_accessed = int(bp * 205 * x_item + bp * 128 * w_item + w_elems * w_item)

    out = pl.pallas_call(
        cnn_kernel,
        out_shape=jax.ShapeDtypeStruct((bp, 128), compute_dtype),
        grid=(n_steps,),
        in_specs=[
            pl.BlockSpec((tb, 205), lambda i: (i, 0)),   # batch-tiled raw input
            _weight_spec((205, 1536)),                   # resident weights
            _weight_spec((1536, 384)),
            _weight_spec((384, 192)),
            _weight_spec((192, 128)),
        ],
        out_specs=pl.BlockSpec((tb, 128), lambda i: (i, 0)),
        compiler_params=pltpu.CompilerParams(
            # batch axis is independent -> shard across TensorCores on v7x
            dimension_semantics=("parallel",),
            vmem_limit_bytes=vmem_limit_bytes,
        ),
        cost_estimate=pl.CostEstimate(
            flops=flops, transcendentals=0, bytes_accessed=bytes_accessed),
    )(x, w_a, w_b, w_c, w_d)

    return out[:B, :4].astype(jnp.float32)


def cnn_forward(x, conv1_w, conv2_w, fc1_w, fc2_w, *,
                compute_dtype=jnp.bfloat16, batch_tile=1024):
    fused = build_fused_weights(conv1_w, conv2_w, fc1_w, fc2_w, compute_dtype)
    return cnn_forward_fused(x, fused, batch_tile=batch_tile)


# ----------------------------------------------------------------------------
# Pure-JAX reference (mirrors the PyTorch forward exactly, full f32 precision).
# ----------------------------------------------------------------------------
_HI = jax.lax.Precision.HIGHEST


def _conv1d_k2s2(x, w):   # x: (B, Cin, L), w: (Cout, Cin, 2)
    lout = (x.shape[-1] - 2) // 2 + 1
    xe = x[:, :, 0:2 * lout:2]
    xo = x[:, :, 1:2 * lout:2]
    return (jnp.einsum('oc,bcl->bol', w[:, :, 0], xe, precision=_HI)
            + jnp.einsum('oc,bcl->bol', w[:, :, 1], xo, precision=_HI))


def _avgpool_k2s2(x):
    lout = (x.shape[-1] - 2) // 2 + 1
    return 0.5 * (x[:, :, 0:2 * lout:2] + x[:, :, 1:2 * lout:2])


def ref_forward(x, conv1_w, conv2_w, fc1_w, fc2_w):
    x = x.reshape(-1, 1, 205)
    x = jax.nn.relu(_conv1d_k2s2(x, conv1_w))
    x = _avgpool_k2s2(x)
    x = jax.nn.relu(_conv1d_k2s2(x, conv2_w))
    x = _avgpool_k2s2(x)
    x = x.reshape(x.shape[0], -1)
    x = jax.nn.relu(jnp.dot(x, fc1_w.T, precision=_HI))
    x = jnp.dot(x, fc2_w.T, precision=_HI)
    return x


# ----------------------------------------------------------------------------
if __name__ == "__main__":
    key = jax.random.PRNGKey(0)
    k1, k2, k3, k4, kx, kx2 = jax.random.split(key, 6)

    # deterministic synthetic parameters (PyTorch shape conventions)
    conv1_w = jax.random.normal(k1, (16, 1, 2), jnp.float32) * 0.5
    conv2_w = jax.random.normal(k2, (16, 16, 2), jnp.float32) * 0.2
    fc1_w = jax.random.normal(k3, (192, 192), jnp.float32) * 0.05
    fc2_w = jax.random.normal(k4, (4, 192), jnp.float32) * 0.05

    # Weight folding is pure glue -> build once per dtype, outside the call path.
    fused_bf16 = build_fused_weights(conv1_w, conv2_w, fc1_w, fc2_w, jnp.bfloat16)
    fused_f32 = build_fused_weights(conv1_w, conv2_w, fc1_w, fc2_w, jnp.float32)

    # --- small batch, bf16 production default (single grid step) -------------
    x = jax.random.normal(kx, (2, 205), jnp.float32)
    ref = ref_forward(x, conv1_w, conv2_w, fc1_w, fc2_w)
    out = jax.block_until_ready(cnn_forward_fused(x, fused_bf16))
    assert out.shape == (2, 4), out.shape
    assert jnp.allclose(out, ref, atol=3e-2, rtol=3e-2), (out, ref)

    # --- larger, non-divisible batch: padding + balanced multi-step grid -----
    xb = jax.random.normal(kx2, (1030, 205), jnp.float32)
    refb = ref_forward(xb, conv1_w, conv2_w, fc1_w, fc2_w)

    # f32 path: tight parity so weight-folding bugs cannot hide.
    outb_f32 = jax.block_until_ready(cnn_forward_fused(xb, fused_f32))
    assert outb_f32.shape == (1030, 4), outb_f32.shape
    assert jnp.allclose(outb_f32, refb, atol=1e-4, rtol=1e-4)

    # bf16 path at the same shape (production configuration).
    outb_bf16 = jax.block_until_ready(cnn_forward_fused(xb, fused_bf16))
    assert outb_bf16.shape == (1030, 4), outb_bf16.shape
    assert jnp.allclose(outb_bf16, refb, atol=3e-2, rtol=3e-2)

    print("KERNEL_OK")
</pallas_src>

<mosaic_0001>
module attributes {stable_mosaic.version = 11 : i64} {
  func.func @cnn_kernel(%arg0: i32, %arg1: memref<8x205xf32, #tpu.memory_space<vmem>>, %arg2: memref<205x1536xbf16, #tpu.memory_space<vmem>>, %arg3: memref<1536x384xbf16, #tpu.memory_space<vmem>>, %arg4: memref<384x192xbf16, #tpu.memory_space<vmem>>, %arg5: memref<192x128xbf16, #tpu.memory_space<vmem>>, %arg6: memref<8x128xbf16, #tpu.memory_space<vmem>>) attributes {dimension_semantics = [#tpu.dimension_semantics<parallel>], iteration_bounds = array<i64: 1>, scalar_prefetch = 0 : i64, scratch_operands = 0 : i64, tpu.core_type = #tpu.core_type<tc>, window_params = [{transform_indices = @transform_0, window_bounds = array<i64: 8, 205>}, {pipeline_mode = #tpu.pipeline_mode<synchronous>, transform_indices = @transform_1, window_bounds = array<i64: 205, 1536>}, {pipeline_mode = #tpu.pipeline_mode<synchronous>, transform_indices = @transform_2, window_bounds = array<i64: 1536, 384>}, {pipeline_mode = #tpu.pipeline_mode<synchronous>, transform_indices = @transform_3, window_bounds = array<i64: 384, 192>}, {pipeline_mode = #tpu.pipeline_mode<synchronous>, transform_indices = @transform_4, window_bounds = array<i64: 192, 128>}, {transform_indices = @transform_5, window_bounds = array<i64: 8, 128>}]} {
    %c0 = arith.constant 0 : index
    %c0_0 = arith.constant 0 : index
    %0 = vector.load %arg1[%c0, %c0_0] : memref<8x205xf32, #tpu.memory_space<vmem>>, vector<8x205xf32>
    %1 = arith.truncf %0 : vector<8x205xf32> to vector<8x205xbf16>
    %c0_1 = arith.constant 0 : index
    %c0_2 = arith.constant 0 : index
    %2 = vector.load %arg2[%c0_1, %c0_2] : memref<205x1536xbf16, #tpu.memory_space<vmem>>, vector<205x1536xbf16>
    %cst = arith.constant dense<0.000000e+00> : vector<8x1536xf32>
    %3 = tpu.matmul %1, %2, %cst {dimension_numbers = #tpu.dot_dimension_numbers<[1], [0], [0], [1], [0, 0, 1, 1], [], []>} : vector<8x205xbf16>, vector<205x1536xbf16>, vector<8x1536xf32> -> vector<8x1536xf32>
    %cst_3 = arith.constant 0.000000e+00 : f32
    %4 = vector.broadcast %cst_3 : f32 to vector<8x1536xf32>
    %5 = arith.maximumf %3, %4 : vector<8x1536xf32>
    %6 = arith.truncf %5 : vector<8x1536xf32> to vector<8x1536xbf16>
    %c0_4 = arith.constant 0 : index
    %c0_5 = arith.constant 0 : index
    %7 = vector.load %arg3[%c0_4, %c0_5] : memref<1536x384xbf16, #tpu.memory_space<vmem>>, vector<1536x384xbf16>
    %cst_6 = arith.constant dense<0.000000e+00> : vector<8x384xf32>
    %8 = tpu.matmul %6, %7, %cst_6 {dimension_numbers = #tpu.dot_dimension_numbers<[1], [0], [0], [1], [0, 0, 1, 1], [], []>} : vector<8x1536xbf16>, vector<1536x384xbf16>, vector<8x384xf32> -> vector<8x384xf32>
    %cst_7 = arith.constant 0.000000e+00 : f32
    %9 = vector.broadcast %cst_7 : f32 to vector<8x384xf32>
    %10 = arith.maximumf %8, %9 : vector<8x384xf32>
    %11 = arith.truncf %10 : vector<8x384xf32> to vector<8x384xbf16>
    %c0_8 = arith.constant 0 : index
    %c0_9 = arith.constant 0 : index
    %12 = vector.load %arg4[%c0_8, %c0_9] : memref<384x192xbf16, #tpu.memory_space<vmem>>, vector<384x192xbf16>
    %cst_10 = arith.constant dense<0.000000e+00> : vector<8x192xf32>
    %13 = tpu.matmul %11, %12, %cst_10 {dimension_numbers = #tpu.dot_dimension_numbers<[1], [0], [0], [1], [0, 0, 1, 1], [], []>} : vector<8x384xbf16>, vector<384x192xbf16>, vector<8x192xf32> -> vector<8x192xf32>
    %cst_11 = arith.constant 0.000000e+00 : f32
    %14 = vector.broadcast %cst_11 : f32 to vector<8x192xf32>
    %15 = arith.maximumf %13, %14 : vector<8x192xf32>
    %16 = arith.truncf %15 : vector<8x192xf32> to vector<8x192xbf16>
    %c0_12 = arith.constant 0 : index
    %c0_13 = arith.constant 0 : index
    %17 = vector.load %arg5[%c0_12, %c0_13] : memref<192x128xbf16, #tpu.memory_space<vmem>>, vector<192x128xbf16>
    %cst_14 = arith.constant dense<0.000000e+00> : vector<8x128xf32>
    %18 = tpu.matmul %16, %17, %cst_14 {dimension_numbers = #tpu.dot_dimension_numbers<[1], [0], [0], [1], [0, 0, 1, 1], [], []>} : vector<8x192xbf16>, vector<192x128xbf16>, vector<8x128xf32> -> vector<8x128xf32>
    %19 = arith.truncf %18 : vector<8x128xf32> to vector<8x128xbf16>
    %c0_15 = arith.constant 0 : index
    %c0_16 = arith.constant 0 : index
    %20 = vector.load %arg6[%c0_15, %c0_16] : memref<8x128xbf16, #tpu.memory_space<vmem>>, vector<8x128xbf16>
    tpu.vector_store %arg6[%c0_15, %c0_16], %19 {strides = array<i32>} : memref<8x128xbf16, #tpu.memory_space<vmem>>, vector<8x128xbf16>,
    return
  }
  func.func @transform_0(%arg0: i32) -> (i32, i32) {
    %c0_i32 = arith.constant 0 : i32
    %c0_i32_0 = arith.constant 0 : i32
    return %arg0, %c0_i32 : i32, i32
  }
  func.func @transform_1(%arg0: i32) -> (i32, i32) {
    %c0_i32 = arith.constant 0 : i32
    %c0_i32_0 = arith.constant 0 : i32
    %c0_i32_1 = arith.constant 0 : i32
    return %c0_i32, %c0_i32_0 : i32, i32
  }
  func.func @transform_2(%arg0: i32) -> (i32, i32) {
    %c0_i32 = arith.constant 0 : i32
    %c0_i32_0 = arith.constant 0 : i32
    %c0_i32_1 = arith.constant 0 : i32
    return %c0_i32, %c0_i32_0 : i32, i32
  }
  func.func @transform_3(%arg0: i32) -> (i32, i32) {
    %c0_i32 = arith.constant 0 : i32
    %c0_i32_0 = arith.constant 0 : i32
    %c0_i32_1 = arith.constant 0 : i32
    return %c0_i32, %c0_i32_0 : i32, i32
  }
  func.func @transform_4(%arg0: i32) -> (i32, i32) {
    %c0_i32 = arith.constant 0 : i32
    %c0_i32_0 = arith.constant 0 : i32
    %c0_i32_1 = arith.constant 0 : i32
    return %c0_i32, %c0_i32_0 : i32, i32
  }
  func.func @transform_5(%arg0: i32) -> (i32, i32) {
    %c0_i32 = arith.constant 0 : i32
    %c0_i32_0 = arith.constant 0 : i32
    return %arg0, %c0_i32 : i32, i32
  }
}

</mosaic_0001>

<bundles_post_ra>
// kernel: tpu_custom_call.1
= control target key start
LH: loop header
LB: loop body
LE: loop exit
PB: predicated region body
PF: predicated region fallthrough
CT: control target
= control target key end

     0   :  { %10 = vsyncpa [#allocation3], 0  ;;  %s7495_s0 = inlined_call_operand.hbm [shape: f32[8,205], index: 0, kind: input, shape index: {}]   ;;  %s7496_s1 = inlined_call_operand.hbm [shape: bf16[205,1536], index: 1, kind: input, shape index: {}]   ;;  %s7497_s2 = inlined_call_operand.hbm [shape: bf16[1536,384], index: 2, kind: input, shape index: {}]   ;;  %s7498_s3 = inlined_call_operand.vmem [shape: bf16[384,192], index: 3, kind: input, shape index: {}]   ;;  %s7499_s4 = inlined_call_operand.hbm [shape: bf16[192,128], index: 4, kind: input, shape index: {}]   ;;  %s7500_s5 = inlined_call_operand.hbm [shape: bf16[8,128], index: 5, kind: output, shape index: {}]  }
   0x1   :  { %11 = vsyncpa [#allocation6], 0 }
   0x2   :  { %12 = vsyncpa [#allocation9], 0  ;;  %s29_s20 = sshll.u32 %s7496_s1, 4  ;;  %s30_s20 = int_to_ptr.hbm [resolvable:$true] %s29_s20 }
   0x3   :  { %13 = vsyncpa [#allocation4], 0  ;;  %s6975_s21 = smov [#allocation5]   ;;  %s19_s25 = sshll.u32 %s7495_s0, 4  ;;  %s20_s25 = int_to_ptr.hbm [resolvable:$true] %s19_s25 }
   0x4   :  { %s31_s22 = sshll.u32 %s6975_s21, 4  ;;  %s6976_s26 = smov 768   ;;  %s32_s22 = int_to_ptr.vmem [resolvable:$true] %s31_s22 }
   0x5   :  { %s6977_s27 = smov 48   ;;  %s6978_s28 = smov [#allocation2]  }
   0x6   :  { %37 = dma.hbm_to_vmem [thread:$0]  %s30_s20, 19968, %s32_s22, [#allocation6], %s6976_s26, %s6976_s26, %s6977_s27  }
   0x7   :  { %s21_s29 = sshll.u32 %s6978_s28, 4  ;;  %s42_s7 = sshll.u32 %s7497_s2, 4  ;;  %s22_s29 = int_to_ptr.vmem [resolvable:$true] %s21_s29  ;;  %s43_s7 = int_to_ptr.hbm [resolvable:$true] %s42_s7 }
   0x8   :  { %24 = dma.hbm_to_vmem [thread:$0]  %s20_s25, 256, %s22_s29, [#allocation3]  }
   0x9   :  { %s6979_s1 = smov [#allocation7]   ;;  %s57_s0 = sshll.u32 %s7499_s4, 4  ;;  %s58_s0 = int_to_ptr.hbm [resolvable:$true] %s57_s0 }
   0xa   :  { %s44_s8 = sshll.u32 %s6979_s1, 4  ;;  %s6980_s11 = smov 192   ;;  %s45_s8 = int_to_ptr.vmem [resolvable:$true] %s44_s8 }
   0xb   :  { %s6981_s12 = smov 12   ;;  %s6982_s13 = smov [#allocation8]  }
   0xc   :  { %50 = dma.hbm_to_vmem [thread:$0]  %s43_s7, 36864, %s45_s8, [#allocation6], %s6980_s11, %s6980_s11, %s6981_s12  }
   0xd   :  { %s59_s14 = sshll.u32 %s6982_s13, 4  ;;  %s6983_s15 = smov 64   ;;  %s60_s14 = int_to_ptr.vmem [resolvable:$true] %s59_s14 }
   0xe   :  { %s6984_s16 = smov 4  }
   0xf   :  { %65 = dma.hbm_to_vmem [thread:$0]  %s58_s0, 1536, %s60_s14, [#allocation9], %s6983_s15, %s6983_s15, %s6984_s16  }
  0x10   :  { %6967 = dma.done.wait [#allocation3], 256  }
  0x11   :  { %6968 = vsyncadd [#allocation3], 4294967040 }
  0x12   :  { %6969 = dma.done.wait [#allocation6], 56832  }
  0x13   :  { %6970 = vsyncadd [#allocation6], 4294910464 }
  0x14   :  { %6971 = dma.done.wait [#allocation9], 1536  }
  0x15   :  { %6972 = vsyncadd [#allocation9], 4294965760  ;;  %vm1015_vm0 = vcmask 1045504   ;;  %vm1016_vm1 = vcmask 1046528   ;;  %v6985_v0 = vmov 65535   ;;  %vm1011_vm2 = vcmask 629760  }
  0x16   :  { %v1017_v1 = vsel %vm1015_vm0, 4294967295, %v6985_v0  ;;  %v4640_v3 = vld [vmem:[#allocation5 + $0x2a0] sm:$0xf]  ;;  %v6421_v4 = vld [vmem:[#allocation5 + $0x2cc] sm:$0xf0]  ;;  %vm4251_vm3 = vcmask 523264  }
  0x17   :  { %v7029_v2 = vsel %vm1016_vm1, %v1017_v1, 0  ;;  %v6415_v5 = vld [vmem:[#allocation5 + $0x2a4] sm:$0xf]  ;;  %v4641_v6 = vor.u32 %v6421_v4, %v4640_v3  ;;  %v4642_v7 = vld [vmem:[#allocation5 + $0x2d0] sm:$0xf0]  ;;  %s4290_s10 = sshll.u32 %s7500_s5, 4  ;;  %s4291_s10 = int_to_ptr.hbm [resolvable:$true] %s4290_s10 }
  0x18   :  { %v4880_v8 = vld [vmem:[#allocation5 + $0x480] sm:$0xf]  ;;  %v6481_v9 = vld [vmem:[#allocation5 + $0x4ac] sm:$0x70]  ;;  %v4645_v10 = vor.u32 %v6415_v5, %v4642_v7  ;;  %v6475_v12 = vld [vmem:[#allocation5 + $0x484] sm:$0xf] }
  0x19   :  { %v4881_v11 = vor.u32 %v6481_v9, %v4880_v8  ;;  %v4882_v13 = vld [vmem:[#allocation5 + $0x4b0] sm:$0x70]  ;;  %v4592_v14 = vld [vmem:[#allocation5 + $0x240] sm:$0xf]  ;;  %1055 = vmatpush.bf16.msra.mxu0 %v4641_v6  ;;  %v6409_v16 = vld [vmem:[#allocation5 + $0x26c] sm:$0xf0] }
  0x1a   :  { %v4885_v15 = vor.u32 %v6475_v12, %v4882_v13  ;;  %v6403_v17 = vld [vmem:[#allocation5 + $0x244] sm:$0xf]  ;;  %v4594_v18 = vld [vmem:[#allocation5 + $0x270] sm:$0xf0]  ;;  %1081 = vmatpush.bf16.msra.mxu2 %v4645_v10  ;;  %v4593_v20 = vor.u32 %v6409_v16, %v4592_v14  ;;  %v4832_v22 = vld [vmem:[#allocation5 + $0x420] sm:$0xf] }
  0x1b   :  { %v1020_v19 = vand.u32 %v4881_v11, %v7029_v2  ;;  %v4597_v21 = vor.u32 %v6403_v17, %v4594_v18  ;;  %v6469_v23 = vld [vmem:[#allocation5 + $0x44c] sm:$0xf0]  ;;  %v6463_v24 = vld [vmem:[#allocation5 + $0x424] sm:$0xf]  ;;  %v4834_v26 = vld [vmem:[#allocation5 + $0x450] sm:$0xf0] }
  0x1c   :  { %v1023_v25 = vand.u32 %v4885_v15, %v7029_v2  ;;  %v4544_v27 = vld [vmem:[#allocation5 + $0x1e0] sm:$0xf]  ;;  %v6397_v28 = vld [vmem:[#allocation5 + $0x20c] sm:$0xf0]  ;;  %v4833_v29 = vor.u32 %v6469_v23, %v4832_v22  ;;  %v6391_v30 = vld [vmem:[#allocation5 + $0x1e4] sm:$0xf]  ;;  %v4837_v32 = vor.u32 %v6463_v24, %v4834_v26 }
  0x1d   :  { %1071 = vmatpush.bf16.msra.mxu1 %v1020_v19  ;;  %v4546_v31 = vld [vmem:[#allocation5 + $0x210] sm:$0xf0]  ;;  %1056 = vmatpush.bf16.msra.mxu0 %v4593_v20  ;;  %v4545_v33 = vor.u32 %v6397_v28, %v4544_v27  ;;  %v4784_v34 = vld [vmem:[#allocation5 + $0x3c0] sm:$0xf]  ;;  %v6457_v35 = vld [vmem:[#allocation5 + $0x3ec] sm:$0xf0] }
  0x1e   :  { %1097 = vmatpush.bf16.msra.mxu3 %v1023_v25  ;;  %v6451_v36 = vld [vmem:[#allocation5 + $0x3c4] sm:$0xf]  ;;  %1082 = vmatpush.bf16.msra.mxu2 %v4597_v21  ;;  %v4549_v37 = vor.u32 %v6391_v30, %v4546_v31  ;;  %v4786_v38 = vld [vmem:[#allocation5 + $0x3f0] sm:$0xf0]  ;;  %v4496_v39 = vld [vmem:[#allocation5 + $0x180] sm:$0xf]  ;;  %v4785_v43 = vor.u32 %v6457_v35, %v4784_v34 }
  0x1f   :  { %v6385_v40 = vld [vmem:[#allocation5 + $0x1ac] sm:$0xf0]  ;;  %v6379_v41 = vld [vmem:[#allocation5 + $0x184] sm:$0xf]  ;;  %v4498_v42 = vld [vmem:[#allocation5 + $0x1b0] sm:$0xf0]  ;;  %v4789_v44 = vor.u32 %v6451_v36, %v4786_v38 }
  0x20   :  { %v4497_v45 = vor.u32 %v6385_v40, %v4496_v39  ;;  %v4736_v46 = vld [vmem:[#allocation5 + $0x360] sm:$0xf]  ;;  %v6445_v47 = vld [vmem:[#allocation5 + $0x38c] sm:$0xf0]  ;;  %v6439_v48 = vld [vmem:[#allocation5 + $0x364] sm:$0xf]  ;;  %v4501_v49 = vor.u32 %v6379_v41, %v4498_v42 }
  0x21   :  { %1072 = vmatpush.bf16.msra.mxu1 %v4833_v29  ;;  %1057 = vmatpush.bf16.msra.mxu0 %v4545_v33  ;;  %v4738_v50 = vld [vmem:[#allocation5 + $0x390] sm:$0xf0]  ;;  %v4448_v51 = vld [vmem:[#allocation5 + $0x120] sm:$0xf]  ;;  %v6373_v52 = vld [vmem:[#allocation5 + $0x14c] sm:$0xf0]  ;;  %v4737_v55 = vor.u32 %v6445_v47, %v4736_v46 }
  0x22   :  { %1098 = vmatpush.bf16.msra.mxu3 %v4837_v32  ;;  %1083 = vmatpush.bf16.msra.mxu2 %v4549_v37  ;;  %v6367_v53 = vld [vmem:[#allocation5 + $0x124] sm:$0xf]  ;;  %v4450_v54 = vld [vmem:[#allocation5 + $0x150] sm:$0xf0]  ;;  %v4888_v56 = vld [vmem:[#allocation5 + $0x488] sm:$0xf]  ;;  %v4741_v58 = vor.u32 %v6439_v48, %v4738_v50  ;;  %v4449_v59 = vor.u32 %v6373_v52, %v4448_v51 }
  0x23   :  { %v6482_v57 = vld [vmem:[#allocation5 + $0x4b4] sm:$0x70]  ;;  %v4688_v60 = vld [vmem:[#allocation5 + $0x300] sm:$0xf]  ;;  %v6433_v61 = vld [vmem:[#allocation5 + $0x32c] sm:$0xf0]  ;;  %v4453_v63 = vor.u32 %v6367_v53, %v4450_v54 }
  0x24   :  { %v6427_v62 = vld [vmem:[#allocation5 + $0x304] sm:$0xf]  ;;  %v4690_v0 = vld [vmem:[#allocation5 + $0x330] sm:$0xf0]  ;;  %v4648_v1 = vld [vmem:[#allocation5 + $0x2a8] sm:$0xf]  ;;  %v4889_v4 = vor.u32 %v6482_v57, %v4888_v56  ;;  %v4689_v7 = vor.u32 %v6433_v61, %v4688_v60 }
  0x25   :  { %1073 = vmatpush.bf16.msra.mxu1 %v4785_v43  ;;  %1058 = vmatpush.bf16.msra.mxu0 %v4497_v45  ;;  %v6422_v3 = vld [vmem:[#allocation5 + $0x2d4] sm:$0xf0]  ;;  %v4400_v5 = vld [vmem:[#allocation5 + $0xc0] sm:$0xf]  ;;  %v6361_v6 = vld [vmem:[#allocation5 + $0xec] sm:$0xf0]  ;;  %v4693_v10 = vor.u32 %v6427_v62, %v4690_v0 }
  0x26   :  { %1099 = vmatpush.bf16.msra.mxu3 %v4789_v44  ;;  %1084 = vmatpush.bf16.msra.mxu2 %v4501_v49  ;;  %v6355_v8 = vld [vmem:[#allocation5 + $0xc4] sm:$0xf]  ;;  %v4402_v9 = vld [vmem:[#allocation5 + $0xf0] sm:$0xf0]  ;;  %v4649_v11 = vor.u32 %v6422_v3, %v4648_v1  ;;  %v4600_v12 = vld [vmem:[#allocation5 + $0x248] sm:$0xf]  ;;  %v1026_v13 = vand.u32 %v4889_v4, %v7029_v2  ;;  %v4401_v14 = vor.u32 %v6361_v6, %v4400_v5 }
  0x27   :  { %v6410_v15 = vld [vmem:[#allocation5 + $0x274] sm:$0xf0]  ;;  %v4840_v16 = vld [vmem:[#allocation5 + $0x428] sm:$0xf]  ;;  %v4405_v18 = vor.u32 %v6355_v8, %v4402_v9  ;;  %v4352_v19 = vld [vmem:[#allocation5 + $0x60] sm:$0xf] }
  0x28   :  { %v6470_v17 = vld [vmem:[#allocation5 + $0x454] sm:$0xf0]  ;;  %v6349_v20 = vld [vmem:[#allocation5 + $0x8c] sm:$0xf0]  ;;  %v6343_v22 = vld [vmem:[#allocation5 + $0x64] sm:$0xf]  ;;  %v4601_v26 = vor.u32 %v6410_v15, %v4600_v12 }
  0x29   :  { %1074 = vmatpush.bf16.msra.mxu1 %v4737_v55  ;;  %1059 = vmatpush.bf16.msra.mxu0 %v4449_v59  ;;  %v84_v21 = vld [vmem:[#allocation2 + $0x8] sm:$0xff]  ;;  %v4354_v23 = vld [vmem:[#allocation5 + $0x90] sm:$0xf0]  ;;  %v4552_v24 = vld [vmem:[#allocation5 + $0x1e8] sm:$0xf]  ;;  %v4841_v29 = vor.u32 %v6470_v17, %v4840_v16  ;;  %v4353_v30 = vor.u32 %v6349_v20, %v4352_v19 }
  0x2a   :  { %1100 = vmatpush.bf16.msra.mxu3 %v4741_v58  ;;  %1085 = vmatpush.bf16.msra.mxu2 %v4453_v63  ;;  %v7034_v25 = vpack.c.bf16 %v84_v21, %v84_v21  ;;  %v6476_v27 = vld [vmem:[#allocation5 + $0x48c] sm:$0xf]  ;;  %v4890_v28 = vld [vmem:[#allocation5 + $0x4b8] sm:$0x70]  ;;  %v6398_v31 = vld [vmem:[#allocation5 + $0x214] sm:$0xf0]  ;;  %v4357_v34 = vor.u32 %v6343_v22, %v4354_v23 }
  0x2b   :  { %v4792_v32 = vld [vmem:[#allocation5 + $0x3c8] sm:$0xf]  ;;  %v6458_v33 = vld [vmem:[#allocation5 + $0x3f4] sm:$0xf0]  ;;  %v4304_v35 = vld [vmem:[#allocation5] sm:$0xf]  ;;  %v4893_v41 = vor.u32 %v6476_v27, %v4890_v28  ;;  %v4553_v42 = vor.u32 %v6398_v31, %v4552_v24 }
  0x2c   :  { %v6337_v36 = vld [vmem:[#allocation5 + $0x2c] sm:$0xf0]  ;;  %v6331_v37 = vld [vmem:[#allocation5 + $0x4] sm:$0xf]  ;;  %v4306_v38 = vld [vmem:[#allocation5 + $0x30] sm:$0xf0]  ;;  %v4793_v43 = vor.u32 %v6458_v33, %v4792_v32 }
  0x2d   :  { %1075 = vmatpush.bf16.msra.mxu1 %v4689_v7  ;;  %1060 = vmatpush.bf16.msra.mxu0 %v4401_v14  ;;  %v6416_v39 = vld [vmem:[#allocation5 + $0x2ac] sm:$0xf]  ;;  %v4650_v40 = vld [vmem:[#allocation5 + $0x2d8] sm:$0xf0]  ;;  %v4305_v44 = vor.u32 %v6337_v36, %v4304_v35  ;;  %v4504_v45 = vld [vmem:[#allocation5 + $0x188] sm:$0xf]  ;;  %v4309_v47 = vor.u32 %v6331_v37, %v4306_v38  ;;  %v1029_v52 = vand.u32 %v4893_v41, %v7029_v2 }
  0x2e   :  { %1101 = vmatpush.bf16.msra.mxu3 %v4693_v10  ;;  %1086 = vmatpush.bf16.msra.mxu2 %v4405_v18  ;;  %v6386_v46 = vld [vmem:[#allocation5 + $0x1b4] sm:$0xf0]  ;;  %v4653_v48 = vor.u32 %v6416_v39, %v4650_v40  ;;  %v4744_v49 = vld [vmem:[#allocation5 + $0x368] sm:$0xf]  ;;  %v83_v51 = vld [vmem:[#allocation2] sm:$0xff] }
  0x2f   :  { %v6446_v50 = vld [vmem:[#allocation5 + $0x394] sm:$0xf0]  ;;  %v6404_v53 = vld [vmem:[#allocation5 + $0x24c] sm:$0xf]  ;;  %v4602_v54 = vld [vmem:[#allocation5 + $0x278] sm:$0xf0]  ;;  %v4505_v55 = vor.u32 %v6386_v46, %v4504_v45  ;;  %v7041_v61 = vpack.c.bf16 %v83_v51, %v83_v51 }
  0x30   :  { %4926 = vmatmul.msk.bf16.vlgmr.msra.gmra.mxu1 %vm1011_vm2, %v7034_v25  ;;  %v6464_v56 = vld [vmem:[#allocation5 + $0x42c] sm:$0xf]  ;;  %v4842_v57 = vld [vmem:[#allocation5 + $0x458] sm:$0xf0]  ;;  %v4745_v58 = vor.u32 %v6446_v50, %v4744_v49  ;;  %v4456_v59 = vld [vmem:[#allocation5 + $0x128] sm:$0xf]  ;;  %v4605_v62 = vor.u32 %v6404_v53, %v4602_v54 }
  0x31   :  { %1107 = vmatpush.bf16.msrb.mxu1 %v4649_v11  ;;  %4927 = vmatmul.msk.bf16.vlgmr.msra.gmra.mxu3 %vm1011_vm2, %v7034_v25  ;;  %v6374_v60 = vld [vmem:[#allocation5 + $0x154] sm:$0xf0]  ;;  %v4696_v63 = vld [vmem:[#allocation5 + $0x308] sm:$0xf]  ;;  %v4656_v1 = vld [vmem:[#allocation5 + $0x2b0] sm:$0xf]  ;;  %v4845_v3 = vor.u32 %v6464_v56, %v4842_v57 }
  0x32   :  { %1123 = vmatpush.bf16.msrb.mxu3 %v1026_v13  ;;  %1061 = vmatpush.bf16.msra.mxu0 %v4353_v30  ;;  %v6434_v0 = vld [vmem:[#allocation5 + $0x334] sm:$0xf0]  ;;  %v6423_v4 = vld [vmem:[#allocation5 + $0x2dc] sm:$0xf0]  ;;  %v6392_v5 = vld [vmem:[#allocation5 + $0x1ec] sm:$0xf]  ;;  %v4457_v7 = vor.u32 %v6374_v60, %v4456_v59 }
  0x33   :  { %1087 = vmatpush.bf16.msra.mxu2 %v4357_v34  ;;  %v4554_v6 = vld [vmem:[#allocation5 + $0x218] sm:$0xf0]  ;;  %v6452_v8 = vld [vmem:[#allocation5 + $0x3cc] sm:$0xf]  ;;  %v4697_v10 = vor.u32 %v6434_v0, %v4696_v63  ;;  %v4408_v11 = vld [vmem:[#allocation5 + $0xc8] sm:$0xf]  ;;  %v4657_v13 = vor.u32 %v6423_v4, %v4656_v1 }
  0x34   :  { %v4794_v9 = vld [vmem:[#allocation5 + $0x3f8] sm:$0xf0]  ;;  %v6362_v12 = vld [vmem:[#allocation5 + $0xf4] sm:$0xf0]  ;;  %v4557_v14 = vor.u32 %v6392_v5, %v4554_v6  ;;  %v4608_v15 = vld [vmem:[#allocation5 + $0x250] sm:$0xf] }
  0x35   :  { %1108 = vmatpush.bf16.msrb.mxu1 %v4601_v26  ;;  %v4797_v16 = vor.u32 %v6452_v8, %v4794_v9  ;;  %v6411_v17 = vld [vmem:[#allocation5 + $0x27c] sm:$0xf0]  ;;  %v6380_v18 = vld [vmem:[#allocation5 + $0x18c] sm:$0xf]  ;;  %v4506_v19 = vld [vmem:[#allocation5 + $0x1b8] sm:$0xf0]  ;;  %v4409_v20 = vor.u32 %v6362_v12, %v4408_v11 }
  0x36   :  { %1124 = vmatpush.bf16.msrb.mxu3 %v4841_v29  ;;  %1062 = vmatpush.bf16.msra.mxu0 %v4305_v44  ;;  %v6440_v21 = vld [vmem:[#allocation5 + $0x36c] sm:$0xf]  ;;  %v4746_v22 = vld [vmem:[#allocation5 + $0x398] sm:$0xf0]  ;;  %v4360_v23 = vld [vmem:[#allocation5 + $0x68] sm:$0xf]  ;;  %v4609_v26 = vor.u32 %v6411_v17, %v4608_v15  ;;  %v4509_v27 = vor.u32 %v6380_v18, %v4506_v19 }
  0x37   :  { %1088 = vmatpush.bf16.msra.mxu2 %v4309_v47  ;;  %v6350_v24 = vld [vmem:[#allocation5 + $0x94] sm:$0xf0]  ;;  %v4560_v28 = vld [vmem:[#allocation5 + $0x1f0] sm:$0xf]  ;;  %v6483_v30 = vld [vmem:[#allocation5 + $0x4bc] sm:$0x70]  ;;  %v4749_v31 = vor.u32 %v6440_v21, %v4746_v22 }
  0x38   :  { %v4896_v29 = vld [vmem:[#allocation5 + $0x490] sm:$0xf]  ;;  %v6399_v32 = vld [vmem:[#allocation5 + $0x21c] sm:$0xf0]  ;;  %v6368_v33 = vld [vmem:[#allocation5 + $0x12c] sm:$0xf]  ;;  %v4361_v35 = vor.u32 %v6350_v24, %v4360_v23 }
  0x39   :  { %1109 = vmatpush.bf16.msrb.mxu1 %v4553_v42  ;;  %1063 = vmatmul.bf16.vlgmr.msra.gmra.mxu0 %v7041_v61  ;;  %v4458_v34 = vld [vmem:[#allocation5 + $0x158] sm:$0xf0]  ;;  %v6428_v36 = vld [vmem:[#allocation5 + $0x30c] sm:$0xf]  ;;  %v6417_v38 = vld [vmem:[#allocation5 + $0x2b4] sm:$0xf]  ;;  %v4897_v42 = vor.u32 %v6483_v30, %v4896_v29 }
  0x3a   :  { %1125 = vmatpush.bf16.msrb.mxu3 %v4793_v43  ;;  %1133 = vmatpush.bf16.msrb.mxu0 %v4653_v48  ;;  %v4698_v37 = vld [vmem:[#allocation5 + $0x338] sm:$0xf0]  ;;  %v4658_v39 = vld [vmem:[#allocation5 + $0x2e0] sm:$0xf0]  ;;  %v4312_v40 = vld [vmem:[#allocation5 + $0x8] sm:$0xf]  ;;  %v4561_v43 = vor.u32 %v6399_v32, %v4560_v28  ;;  %v4461_v44 = vor.u32 %v6368_v33, %v4458_v34 }
  0x3b   :  { %1149 = vmatpush.bf16.msrb.mxu2 %v1029_v52  ;;  %v6338_v41 = vld [vmem:[#allocation5 + $0x34] sm:$0xf0]  ;;  %v4512_v45 = vld [vmem:[#allocation5 + $0x190] sm:$0xf]  ;;  %v4701_v46 = vor.u32 %v6428_v36, %v4698_v37  ;;  %v6387_v47 = vld [vmem:[#allocation5 + $0x1bc] sm:$0xf0]  ;;  %v4661_v50 = vor.u32 %v6417_v38, %v4658_v39  ;;  %v1032_v52 = vand.u32 %v4897_v42, %v7029_v2 }
  0x3c   :  { %1089 = vmatmul.bf16.vlgmr.msra.gmra.mxu2 %v7041_v61  ;;  %v6356_v48 = vld [vmem:[#allocation5 + $0xcc] sm:$0xf]  ;;  %v4410_v49 = vld [vmem:[#allocation5 + $0xf8] sm:$0xf0]  ;;  %v4313_v51 = vor.u32 %v6338_v41, %v4312_v40  ;;  %v6405_v53 = vld [vmem:[#allocation5 + $0x254] sm:$0xf] }
  0x3d   :  { %1110 = vmatpush.bf16.msrb.mxu1 %v4505_v55  ;;  %v4610_v54 = vld [vmem:[#allocation5 + $0x280] sm:$0xf0]  ;;  %v4513_v55 = vor.u32 %v6387_v47, %v4512_v45  ;;  %v4413_v56 = vor.u32 %v6356_v48, %v4410_v49  ;;  %v4464_v57 = vld [vmem:[#allocation5 + $0x130] sm:$0xf]  ;;  %v6471_v59 = vld [vmem:[#allocation5 + $0x45c] sm:$0xf0] }
  0x3e   :  { %1126 = vmatpush.bf16.msrb.mxu3 %v4745_v58  ;;  %1134 = vmatpush.bf16.msrb.mxu0 %v4605_v62  ;;  %v4848_v58 = vld [vmem:[#allocation5 + $0x430] sm:$0xf]  ;;  %v6375_v60 = vld [vmem:[#allocation5 + $0x15c] sm:$0xf0]  ;;  %v6344_v62 = vld [vmem:[#allocation5 + $0x6c] sm:$0xf]  ;;  %v4613_v0 = vor.u32 %v6405_v53, %v4610_v54 }
  0x3f   :  { %1150 = vmatpush.bf16.msrb.mxu2 %v4845_v3  ;;  %v4362_v63 = vld [vmem:[#allocation5 + $0x98] sm:$0xf0]  ;;  %v6477_v1 = vld [vmem:[#allocation5 + $0x494] sm:$0xf]  ;;  %v4898_v3 = vld [vmem:[#allocation5 + $0x4c0] sm:$0x70]  ;;  %v4849_v4 = vor.u32 %v6471_v59, %v4848_v58 }
  0x40   :  { %v6393_v5 = vld [vmem:[#allocation5 + $0x1f4] sm:$0xf]  ;;  %v4562_v6 = vld [vmem:[#allocation5 + $0x220] sm:$0xf0]  ;;  %v4365_v8 = vor.u32 %v6344_v62, %v4362_v63  ;;  %v4416_v9 = vld [vmem:[#allocation5 + $0xd0] sm:$0xf]  ;;  %v4901_v15 = vor.u32 %v6477_v1, %v4898_v3 }
  0x41   :  { %1111 = vmatpush.bf16.msrb.mxu1 %v4457_v7  ;;  %v4465_v7 = vor.u32 %v6375_v60, %v4464_v57  ;;  %v6459_v11 = vld [vmem:[#allocation5 + $0x3fc] sm:$0xf0]  ;;  %v6381_v18 = vld [vmem:[#allocation5 + $0x194] sm:$0xf]  ;;  %v4514_v19 = vld [vmem:[#allocation5 + $0x1c0] sm:$0xf0] }
  0x42   :  { %1127 = vmatpush.bf16.msrb.mxu3 %v4697_v10  ;;  %1135 = vmatpush.bf16.msrb.mxu0 %v4557_v14  ;;  %v4800_v10 = vld [vmem:[#allocation5 + $0x3d0] sm:$0xf]  ;;  %v6363_v12 = vld [vmem:[#allocation5 + $0xfc] sm:$0xf0]  ;;  %v4314_v14 = vld [vmem:[#allocation5 + $0x38] sm:$0xf0]  ;;  %v1035_v24 = vand.u32 %v4901_v15, %v7029_v2  ;;  %v4517_v29 = vor.u32 %v6381_v18, %v4514_v19 }
  0x43   :  { %1151 = vmatpush.bf16.msrb.mxu2 %v4797_v16  ;;  %v4565_v16 = vor.u32 %v6393_v5, %v4562_v6  ;;  %v4801_v17 = vor.u32 %v6459_v11, %v4800_v10  ;;  %v4752_v22 = vld [vmem:[#allocation5 + $0x370] sm:$0xf]  ;;  %v6447_v23 = vld [vmem:[#allocation5 + $0x39c] sm:$0xf0]  ;;  %v6465_v28 = vld [vmem:[#allocation5 + $0x434] sm:$0xf] }
  0x44   :  { %v4850_v30 = vld [vmem:[#allocation5 + $0x460] sm:$0xf0]  ;;  %v6484_v32 = vld [vmem:[#allocation5 + $0x4c4] sm:$0x70]  ;;  %v4753_v33 = vor.u32 %v6447_v23, %v4752_v22  ;;  %v6369_v34 = vld [vmem:[#allocation5 + $0x134] sm:$0xf] }
  0x45   :  { %1112 = vmatpush.bf16.msrb.mxu1 %v4409_v20  ;;  %4928 = vmatmul.msk.bf16.vlgmr.msrb.gmra.mxu3 %vm1011_vm2, %v7034_v25  ;;  %v4417_v20 = vor.u32 %v6363_v12, %v4416_v9  ;;  %v4320_v37 = vld [vmem:[#allocation5 + $0x10] sm:$0xf]  ;;  %v6435_v39 = vld [vmem:[#allocation5 + $0x33c] sm:$0xf0]  ;;  %v4853_v40 = vor.u32 %v6465_v28, %v4850_v30  ;;  %v4664_v42 = vld [vmem:[#allocation5 + $0x2b8] sm:$0xf] }
  0x46   :  { %1159 = vmatpush.bf16.msra.mxu3 %v4657_v13  ;;  %1136 = vmatpush.bf16.msrb.mxu0 %v4509_v27  ;;  %v6332_v13 = vld [vmem:[#allocation5 + $0xc] sm:$0xf]  ;;  %v6351_v27 = vld [vmem:[#allocation5 + $0x9c] sm:$0xf0]  ;;  %v4704_v38 = vld [vmem:[#allocation5 + $0x310] sm:$0xf] }
  0x47   :  { %1152 = vmatpush.bf16.msrb.mxu2 %v4749_v31  ;;  %v4317_v21 = vor.u32 %v6332_v13, %v4314_v14  ;;  %v4904_v31 = vld [vmem:[#allocation5 + $0x498] sm:$0xf]  ;;  %v6339_v41 = vld [vmem:[#allocation5 + $0x3c] sm:$0xf0]  ;;  %v4802_v47 = vld [vmem:[#allocation5 + $0x400] sm:$0xf0]  ;;  %v4705_v48 = vor.u32 %v6435_v39, %v4704_v38 }
  0x48   :  { %v6357_v49 = vld [vmem:[#allocation5 + $0xd4] sm:$0xf]  ;;  %v4856_v57 = vld [vmem:[#allocation5 + $0x438] sm:$0xf]  ;;  %v6472_v59 = vld [vmem:[#allocation5 + $0x464] sm:$0xf0] }
  0x49   :  { %1113 = vmatpush.bf16.msrb.mxu1 %v4361_v35  ;;  %v4466_v35 = vld [vmem:[#allocation5 + $0x160] sm:$0xf0]  ;;  %v6441_v60 = vld [vmem:[#allocation5 + $0x374] sm:$0xf]  ;;  %v4568_v3 = vld [vmem:[#allocation5 + $0x1f8] sm:$0xf]  ;;  %v4857_v6 = vor.u32 %v6472_v59, %v4856_v57 }
  0x4a   :  { %1160 = vmatpush.bf16.msra.mxu3 %v4609_v26  ;;  %1137 = vmatpush.bf16.msrb.mxu0 %v4461_v44  ;;  %v4368_v26 = vld [vmem:[#allocation5 + $0x70] sm:$0xf]  ;;  %v4905_v44 = vor.u32 %v6484_v32, %v4904_v31  ;;  %v4469_v45 = vor.u32 %v6369_v34, %v4466_v35  ;;  %v4754_v62 = vld [vmem:[#allocation5 + $0x3a0] sm:$0xf0]  ;;  %v6345_v63 = vld [vmem:[#allocation5 + $0x74] sm:$0xf] }
  0x4b   :  { %1153 = vmatpush.bf16.msrb.mxu2 %v4701_v46  ;;  %v4369_v36 = vor.u32 %v6351_v27, %v4368_v26  ;;  %v6453_v46 = vld [vmem:[#allocation5 + $0x3d4] sm:$0xf]  ;;  %v4906_v5 = vld [vmem:[#allocation5 + $0x4c8] sm:$0x70]  ;;  %v4808_v9 = vld [vmem:[#allocation5 + $0x3d8] sm:$0xf] }
  0x4c   :  { %v1038_v53 = vand.u32 %v4905_v44, %v7029_v2  ;;  %v4805_v54 = vor.u32 %v6453_v46, %v4802_v47  ;;  %v6460_v10 = vld [vmem:[#allocation5 + $0x404] sm:$0xf0]  ;;  %v6333_v12 = vld [vmem:[#allocation5 + $0x14] sm:$0xf]  ;;  %v4706_v14 = vld [vmem:[#allocation5 + $0x340] sm:$0xf0] }
  0x4d   :  { %1114 = vmatpush.bf16.msrb.mxu1 %v4313_v51  ;;  %v4321_v51 = vor.u32 %v6339_v41, %v4320_v37  ;;  %v6429_v13 = vld [vmem:[#allocation5 + $0x314] sm:$0xf]  ;;  %v4322_v15 = vld [vmem:[#allocation5 + $0x40] sm:$0xf0]  ;;  %v4520_v22 = vld [vmem:[#allocation5 + $0x198] sm:$0xf] }
  0x4e   :  { %1161 = vmatpush.bf16.msra.mxu3 %v4561_v43  ;;  %1138 = vmatpush.bf16.msrb.mxu0 %v4413_v56  ;;  %v6424_v43 = vld [vmem:[#allocation5 + $0x2e4] sm:$0xf0]  ;;  %v4760_v27 = vld [vmem:[#allocation5 + $0x378] sm:$0xf]  ;;  %v6406_v30 = vld [vmem:[#allocation5 + $0x25c] sm:$0xf] }
  0x4f   :  { %1185 = vmatpush.bf16.msra.mxu2 %v4661_v50  ;;  %v4418_v50 = vld [vmem:[#allocation5 + $0x100] sm:$0xf0]  ;;  %v6412_v56 = vld [vmem:[#allocation5 + $0x284] sm:$0xf0]  ;;  %v4618_v31 = vld [vmem:[#allocation5 + $0x288] sm:$0xf0] }
  0x50   :  { %1115 = vmatmul.bf16.vlgmr.msrb.gmra.mxu1 %v7041_v61  ;;  %4929 = vmatmul.msk.bf16.vlgmr.msrb.gmra.mxu2 %vm1011_vm2, %v7034_v25  ;;  %v4421_v58 = vor.u32 %v6357_v49, %v4418_v50  ;;  %v6388_v23 = vld [vmem:[#allocation5 + $0x1c4] sm:$0xf0]  ;;  %v4858_v34 = vld [vmem:[#allocation5 + $0x468] sm:$0xf0]  ;;  %v4621_v38 = vor.u32 %v6406_v30, %v4618_v31  ;;  %v4712_v39 = vld [vmem:[#allocation5 + $0x318] sm:$0xf] }
  0x51   :  { %1175 = vmatpush.bf16.msra.mxu1 %v1032_v52  ;;  %v4665_v52 = vor.u32 %v6424_v43, %v4664_v42  ;;  %v6448_v28 = vld [vmem:[#allocation5 + $0x3a4] sm:$0xf0]  ;;  %v4521_v32 = vor.u32 %v6388_v23, %v4520_v22  ;;  %v4672_v41 = vld [vmem:[#allocation5 + $0x2c0] sm:$0xf]  ;;  %v6425_v43 = vld [vmem:[#allocation5 + $0x2ec] sm:$0xf0] }
  0x52   :  { %1162 = vmatpush.bf16.msra.mxu3 %v4513_v55  ;;  %1139 = vmatpush.bf16.msrb.mxu0 %v4365_v8  ;;  %v4616_v55 = vld [vmem:[#allocation5 + $0x258] sm:$0xf]  ;;  %v6400_v8 = vld [vmem:[#allocation5 + $0x224] sm:$0xf0]  ;;  %v4761_v35 = vor.u32 %v6448_v28, %v4760_v27  ;;  %v6394_v44 = vld [vmem:[#allocation5 + $0x1fc] sm:$0xf] }
  0x53   :  { %1186 = vmatpush.bf16.msra.mxu2 %v4613_v0  ;;  %v4370_v0 = vld [vmem:[#allocation5 + $0xa0] sm:$0xf0]  ;;  %v4617_v1 = vor.u32 %v6412_v56, %v4616_v55  ;;  %v4569_v19 = vor.u32 %v6400_v8, %v4568_v3  ;;  %v6376_v37 = vld [vmem:[#allocation5 + $0x164] sm:$0xf0]  ;;  %v6454_v47 = vld [vmem:[#allocation5 + $0x3dc] sm:$0xf] }
  0x54   :  { %v4373_v11 = vor.u32 %v6345_v63, %v4370_v0  ;;  %v4424_v50 = vld [vmem:[#allocation5 + $0xd8] sm:$0xf]  ;;  %v6413_v56 = vld [vmem:[#allocation5 + $0x28c] sm:$0xf0]  ;;  %v6382_v57 = vld [vmem:[#allocation5 + $0x19c] sm:$0xf] }
  0x55   :  { %1176 = vmatpush.bf16.msra.mxu1 %v4849_v4  ;;  %v6478_v4 = vld [vmem:[#allocation5 + $0x49c] sm:$0xf]  ;;  %v4376_v63 = vld [vmem:[#allocation5 + $0x78] sm:$0xf]  ;;  %v6352_v0 = vld [vmem:[#allocation5 + $0xa4] sm:$0xf0] }
  0x56   :  { %1163 = vmatpush.bf16.msra.mxu3 %v4465_v7  ;;  %1140 = vmatpush.bf16.msrb.mxu0 %v4317_v21  ;;  %v4757_v7 = vor.u32 %v6441_v60, %v4754_v62  ;;  %v4909_v18 = vor.u32 %v6478_v4, %v4906_v5  ;;  %v4709_v21 = vor.u32 %v6429_v13, %v4706_v14  ;;  %v6442_v60 = vld [vmem:[#allocation5 + $0x37c] sm:$0xf]  ;;  %v4762_v62 = vld [vmem:[#allocation5 + $0x3a8] sm:$0xf0]  ;;  %v4576_v4 = vld [vmem:[#allocation5 + $0x200] sm:$0xf] }
  0x57   :  { %1187 = vmatpush.bf16.msra.mxu2 %v4565_v16  ;;  %v6418_v16 = vld [vmem:[#allocation5 + $0x2bc] sm:$0xf]  ;;  %v4912_v5 = vld [vmem:[#allocation5 + $0x4a0] sm:$0xf]  ;;  %v6401_v8 = vld [vmem:[#allocation5 + $0x22c] sm:$0xf0] }
  0x58   :  { %v4714_v13 = vld [vmem:[#allocation5 + $0x348] sm:$0xf0]  ;;  %v6419_v14 = vld [vmem:[#allocation5 + $0x2c4] sm:$0xf]  ;;  %v6389_v23 = vld [vmem:[#allocation5 + $0x1cc] sm:$0xf0] }
  0x59   :  { %1177 = vmatpush.bf16.msra.mxu1 %v4801_v17  ;;  %1141 = vmatmul.bf16.vlgmr.msrb.gmra.mxu0 %v7041_v61  ;;  %v4666_v17 = vld [vmem:[#allocation5 + $0x2e8] sm:$0xf0]  ;;  %v6407_v30 = vld [vmem:[#allocation5 + $0x264] sm:$0xf]  ;;  %v4626_v31 = vld [vmem:[#allocation5 + $0x290] sm:$0xf0] }
  0x5a   :  { %1164 = vmatpush.bf16.msra.mxu3 %v4417_v20  ;;  %1201 = vmatpush.bf16.msra.mxu0 %v1035_v24  ;;  %v4809_v20 = vor.u32 %v6460_v10, %v4808_v9  ;;  %v4325_v24 = vor.u32 %v6333_v12, %v4322_v15  ;;  %v4669_v26 = vor.u32 %v6418_v16, %v4666_v17  ;;  %v6370_v9 = vld [vmem:[#allocation5 + $0x13c] sm:$0xf]  ;;  %v4474_v10 = vld [vmem:[#allocation5 + $0x168] sm:$0xf0]  ;;  %v4674_v15 = vld [vmem:[#allocation5 + $0x2f0] sm:$0xf0] }
  0x5b   :  { %1188 = vmatpush.bf16.msra.mxu2 %v4517_v29  ;;  %v1041_v29 = vand.u32 %v4909_v18, %v7029_v2  ;;  %v6430_v12 = vld [vmem:[#allocation5 + $0x31c] sm:$0xf]  ;;  %v4328_v16 = vld [vmem:[#allocation5 + $0x18] sm:$0xf]  ;;  %v6340_v17 = vld [vmem:[#allocation5 + $0x44] sm:$0xf0]  ;;  %v4677_v27 = vor.u32 %v6419_v14, %v4674_v15 }
  0x5c   :  { %v4717_v22 = vor.u32 %v6430_v12, %v4714_v13  ;;  %v4329_v28 = vor.u32 %v6340_v17, %v4328_v16  ;;  %v4336_v13 = vld [vmem:[#allocation5 + $0x20] sm:$0xf]  ;;  %v6437_v15 = vld [vmem:[#allocation5 + $0x34c] sm:$0xf0] }
  0x5d   :  { %1178 = vmatpush.bf16.msra.mxu1 %v4753_v33  ;;  %v6466_v33 = vld [vmem:[#allocation5 + $0x43c] sm:$0xf]  ;;  %v4720_v14 = vld [vmem:[#allocation5 + $0x320] sm:$0xf]  ;;  %v6341_v17 = vld [vmem:[#allocation5 + $0x4c] sm:$0xf0] }
  0x5e   :  { %1165 = vmatpush.bf16.msra.mxu3 %v4369_v36  ;;  %1202 = vmatpush.bf16.msra.mxu0 %v4853_v40  ;;  %v4472_v36 = vld [vmem:[#allocation5 + $0x138] sm:$0xf]  ;;  %v6436_v40 = vld [vmem:[#allocation5 + $0x344] sm:$0xf0]  ;;  %v4861_v42 = vor.u32 %v6466_v33, %v4858_v34  ;;  %v4480_v34 = vld [vmem:[#allocation5 + $0x140] sm:$0xf] }
  0x5f   :  { %1189 = vmatpush.bf16.msra.mxu2 %v4469_v45  ;;  %v4570_v45 = vld [vmem:[#allocation5 + $0x228] sm:$0xf0]  ;;  %v4473_v46 = vor.u32 %v6376_v37, %v4472_v36  ;;  %v4713_v49 = vor.u32 %v6436_v40, %v4712_v39  ;;  %v6473_v36 = vld [vmem:[#allocation5 + $0x46c] sm:$0xf0]  ;;  %v4629_v40 = vor.u32 %v6407_v30, %v4626_v31 }
  0x60   :  { %v6377_v37 = vld [vmem:[#allocation5 + $0x16c] sm:$0xf0]  ;;  %v4378_v39 = vld [vmem:[#allocation5 + $0xa8] sm:$0xf0] }
  0x61   :  { %1179 = vmatpush.bf16.msra.mxu1 %v4705_v48  ;;  %v4810_v48 = vld [vmem:[#allocation5 + $0x408] sm:$0xf0] }
  0x62   :  { %1166 = vmatpush.bf16.msra.mxu3 %v4321_v51  ;;  %1203 = vmatpush.bf16.msra.mxu0 %v4805_v54  ;;  %v6364_v51 = vld [vmem:[#allocation5 + $0x104] sm:$0xf0]  ;;  %v4624_v54 = vld [vmem:[#allocation5 + $0x260] sm:$0xf]  ;;  %v4813_v55 = vor.u32 %v6454_v47, %v4810_v48 }
  0x63   :  { %1190 = vmatpush.bf16.msra.mxu2 %v4421_v58  ;;  %v4522_v58 = vld [vmem:[#allocation5 + $0x1c8] sm:$0xf0]  ;;  %v4425_v59 = vor.u32 %v6364_v51, %v4424_v50  ;;  %v4432_v48 = vld [vmem:[#allocation5 + $0xe0] sm:$0xf]  ;;  %v6461_v50 = vld [vmem:[#allocation5 + $0x40c] sm:$0xf0] }
  0x64   :  { %4930 = vmatmul.msk.bf16.vlgmr.msra.gmra.mxu1 %vm1011_vm2, %v7034_v25  ;;  %v4525_v3 = vor.u32 %v6382_v57, %v4522_v58  ;;  %v6365_v51 = vld [vmem:[#allocation5 + $0x10c] sm:$0xf0]  ;;  %v6383_v57 = vld [vmem:[#allocation5 + $0x1a4] sm:$0xf]  ;;  %v4530_v58 = vld [vmem:[#allocation5 + $0x1d0] sm:$0xf0] }
  0x65   :  { %1211 = vmatpush.bf16.msrb.mxu1 %v4665_v52  ;;  %1167 = vmatmul.bf16.vlgmr.msra.gmra.mxu3 %v7041_v61  ;;  %v4673_v52 = vor.u32 %v6425_v43, %v4672_v41  ;;  %v6479_v41 = vld [vmem:[#allocation5 + $0x4a4] sm:$0xf] }
  0x66   :  { %1227 = vmatpush.bf16.msrb.mxu3 %v1038_v53  ;;  %1204 = vmatpush.bf16.msra.mxu0 %v4757_v7  ;;  %v4573_v53 = vor.u32 %v6394_v44, %v4570_v45  ;;  %v4765_v7 = vor.u32 %v6442_v60, %v4762_v62  ;;  %v6395_v44 = vld [vmem:[#allocation5 + $0x204] sm:$0xf]  ;;  %v4578_v45 = vld [vmem:[#allocation5 + $0x230] sm:$0xf0]  ;;  %v4768_v62 = vld [vmem:[#allocation5 + $0x380] sm:$0xf] }
  0x67   :  { %1191 = vmatpush.bf16.msra.mxu2 %v4373_v11  ;;  %v4377_v11 = vor.u32 %v6352_v0, %v4376_v63  ;;  %v6449_v63 = vld [vmem:[#allocation5 + $0x3ac] sm:$0xf0] }
  0x69   :  { %1212 = vmatpush.bf16.msrb.mxu1 %v4617_v1  ;;  %v4625_v1 = vor.u32 %v6413_v56, %v4624_v54 }
  0x6a   :  { %1228 = vmatpush.bf16.msrb.mxu3 %v4857_v6  ;;  %1205 = vmatpush.bf16.msra.mxu0 %v4709_v21  ;;  %v6485_v6 = vld [vmem:[#allocation5 + $0x4cc] sm:$0x70]  ;;  %v4528_v21 = vld [vmem:[#allocation5 + $0x1a0] sm:$0xf] }
  0x6b   :  { %1192 = vmatpush.bf16.msra.mxu2 %v4325_v24  ;;  %v4913_v18 = vor.u32 %v6485_v6, %v4912_v5  ;;  %v6358_v24 = vld [vmem:[#allocation5 + $0xdc] sm:$0xf]  ;;  %v4533_v5 = vor.u32 %v6383_v57, %v4530_v58  ;;  %v4866_v6 = vld [vmem:[#allocation5 + $0x470] sm:$0xf0] }
  0x6d   :  { %1213 = vmatpush.bf16.msrb.mxu1 %v4569_v19  ;;  %4931 = vmatmul.msk.bf16.vlgmr.msra.gmra.mxu0 %vm1011_vm2, %v7034_v25  ;;  %v4577_v19 = vor.u32 %v6401_v8, %v4576_v4  ;;  %v6467_v4 = vld [vmem:[#allocation5 + $0x444] sm:$0xf]  ;;  %v6486_v8 = vld [vmem:[#allocation5 + $0x4d4] sm:$0x70] }
  0x6e   :  { %1229 = vmatpush.bf16.msrb.mxu3 %v4809_v20  ;;  %1237 = vmatpush.bf16.msrb.mxu0 %v4669_v26  ;;  %v4477_v20 = vor.u32 %v6370_v9, %v4474_v10  ;;  %v4426_v26 = vld [vmem:[#allocation5 + $0x108] sm:$0xf0]  ;;  %v4769_v9 = vor.u32 %v6449_v63, %v4768_v62  ;;  %v6371_v10 = vld [vmem:[#allocation5 + $0x144] sm:$0xf]  ;;  %v4869_v16 = vor.u32 %v6467_v4, %v4866_v6  ;;  %v4536_v62 = vld [vmem:[#allocation5 + $0x1a8] sm:$0xf] }
  0x6f   :  { %1253 = vmatpush.bf16.msrb.mxu2 %v1041_v29  ;;  %v1044_v29 = vand.u32 %v4913_v18, %v7029_v2  ;;  %v4429_v33 = vor.u32 %v6358_v24, %v4426_v26  ;;  %v4680_v18 = vld [vmem:[#allocation5 + $0x2c8] sm:$0xf]  ;;  %v4721_v24 = vor.u32 %v6437_v15, %v4720_v14  ;;  %v6359_v26 = vld [vmem:[#allocation5 + $0xe4] sm:$0xf]  ;;  %v6390_v63 = vld [vmem:[#allocation5 + $0x1d4] sm:$0xf0] }
  0x70   :  { %1193 = vmatmul.bf16.vlgmr.msra.gmra.mxu2 %v7041_v61  ;;  %v6450_v4 = vld [vmem:[#allocation5 + $0x3b4] sm:$0xf0]  ;;  %v6408_v6 = vld [vmem:[#allocation5 + $0x26c] sm:$0xf]  ;;  %v4728_v15 = vld [vmem:[#allocation5 + $0x328] sm:$0xf] }
  0x71   :  { %1214 = vmatpush.bf16.msrb.mxu1 %v4521_v32  ;;  %v4529_v32 = vor.u32 %v6389_v23, %v4528_v21  ;;  %v4818_v23 = vld [vmem:[#allocation5 + $0x410] sm:$0xf0] }
  0x72   :  { %1230 = vmatpush.bf16.msrb.mxu3 %v4761_v35  ;;  %1238 = vmatpush.bf16.msrb.mxu0 %v4621_v38  ;;  %v4864_v35 = vld [vmem:[#allocation5 + $0x440] sm:$0xf]  ;;  %v6346_v38 = vld [vmem:[#allocation5 + $0x7c] sm:$0xf] }
  0x73   :  { %1254 = vmatpush.bf16.msrb.mxu2 %v4861_v42  ;;  %v4914_v42 = vld [vmem:[#allocation5 + $0x4d0] sm:$0x70]  ;;  %v4865_v43 = vor.u32 %v6473_v36, %v4864_v35  ;;  %v4381_v47 = vor.u32 %v6346_v38, %v4378_v39  ;;  %v6474_v36 = vld [vmem:[#allocation5 + $0x474] sm:$0xf0]  ;;  %v6347_v39 = vld [vmem:[#allocation5 + $0x84] sm:$0xf] }
  0x74   :  { %v4917_v54 = vor.u32 %v6479_v41, %v4914_v42  ;;  %v4770_v38 = vld [vmem:[#allocation5 + $0x3b0] sm:$0xf0]  ;;  %v4584_v42 = vld [vmem:[#allocation5 + $0x208] sm:$0xf] }
  0x75   :  { %1215 = vmatpush.bf16.msrb.mxu1 %v4473_v46  ;;  %v4481_v46 = vor.u32 %v6377_v37, %v4480_v34  ;;  %v4872_v34 = vld [vmem:[#allocation5 + $0x448] sm:$0xf]  ;;  %v6443_v37 = vld [vmem:[#allocation5 + $0x384] sm:$0xf] }
  0x76   :  { %1231 = vmatpush.bf16.msrb.mxu3 %v4713_v49  ;;  %1239 = vmatpush.bf16.msrb.mxu0 %v4573_v53  ;;  %v4816_v49 = vld [vmem:[#allocation5 + $0x3e0] sm:$0xf]  ;;  %v4330_v53 = vld [vmem:[#allocation5 + $0x48] sm:$0xf0]  ;;  %v1047_v0 = vand.u32 %v4917_v54, %v7029_v2  ;;  %v4338_v54 = vld [vmem:[#allocation5 + $0x50] sm:$0xf0] }
  0x77   :  { %1255 = vmatpush.bf16.msrb.mxu2 %v4813_v55  ;;  %v4581_v55 = vor.u32 %v6395_v44, %v4578_v45  ;;  %v4817_v56 = vor.u32 %v6461_v50, %v4816_v49  ;;  %v4922_v44 = vld [vmem:[#allocation5 + $0x4d8] sm:$0x70]  ;;  %v4873_v45 = vor.u32 %v6474_v36, %v4872_v34  ;;  %v6462_v49 = vld [vmem:[#allocation5 + $0x414] sm:$0xf0]  ;;  %v6444_v36 = vld [vmem:[#allocation5 + $0x38c] sm:$0xf] }
  0x78   :  { %v6506_v34 = vld [vmem:[#allocation7 + $0x98] sm:$0xf0] }
  0x79   :  { %1216 = vmatpush.bf16.msrb.mxu1 %v4425_v59  ;;  %4932 = vmatmul.msk.bf16.vlgmr.msrb.gmra.mxu3 %vm1011_vm2, %v7034_v25  ;;  %v4433_v59 = vor.u32 %v6365_v51, %v4432_v48  ;;  %v4824_v48 = vld [vmem:[#allocation5 + $0x3e8] sm:$0xf]  ;;  %v6335_v51 = vld [vmem:[#allocation5 + $0x24] sm:$0xf] }
  0x7a   :  { %1263 = vmatpush.bf16.msra.mxu3 %v4673_v52  ;;  %1240 = vmatpush.bf16.msrb.mxu0 %v4525_v3  ;;  %v6334_v52 = vld [vmem:[#allocation5 + $0x1c] sm:$0xf]  ;;  %v6353_v3 = vld [vmem:[#allocation5 + $0xac] sm:$0xf0] }
  0x7b   :  { %1256 = vmatpush.bf16.msrb.mxu2 %v4765_v7  ;;  %v4333_v60 = vor.u32 %v6334_v52, %v4330_v53  ;;  %v4920_v7 = vld [vmem:[#allocation5 + $0x4a8] sm:$0xf]  ;;  %v6431_v52 = vld [vmem:[#allocation5 + $0x324] sm:$0xf]  ;;  %v4722_v53 = vld [vmem:[#allocation5 + $0x350] sm:$0xf0] }
  0x7d   :  { %1217 = vmatpush.bf16.msrb.mxu1 %v4377_v11  ;;  %v4482_v11 = vld [vmem:[#allocation5 + $0x170] sm:$0xf0] }
  0x7e   :  { %1264 = vmatpush.bf16.msra.mxu3 %v4625_v1  ;;  %1241 = vmatpush.bf16.msrb.mxu0 %v4477_v20  ;;  %v4384_v1 = vld [vmem:[#allocation5 + $0x80] sm:$0xf]  ;;  %v4921_v20 = vor.u32 %v6486_v8, %v4920_v7  ;;  %v4485_v21 = vor.u32 %v6371_v10, %v4482_v11  ;;  %v4634_v7 = vld [vmem:[#allocation5 + $0x298] sm:$0xf0]  ;;  %v4537_v8 = vor.u32 %v6390_v63, %v4536_v62 }
  0x7f   :  { %1257 = vmatpush.bf16.msrb.mxu2 %v4717_v22  ;;  %v4385_v12 = vor.u32 %v6353_v3, %v4384_v1  ;;  %v6455_v22 = vld [vmem:[#allocation5 + $0x3e4] sm:$0xf]  ;;  %v4776_v3 = vld [vmem:[#allocation5 + $0x388] sm:$0xf]  ;;  %v4874_v10 = vld [vmem:[#allocation5 + $0x478] sm:$0xf0]  ;;  %v4637_v14 = vor.u32 %v6408_v6, %v4634_v7 }
  0x80   :  { %v1050_v30 = vand.u32 %v4921_v20, %v7029_v2  ;;  %v4821_v31 = vor.u32 %v6455_v22, %v4818_v23  ;;  %v4777_v11 = vor.u32 %v6450_v4, %v4776_v3  ;;  %v6509_v20 = vld [vmem:[#allocation7 + $0xb0] sm:$0xf0]  ;;  %v6456_v22 = vld [vmem:[#allocation5 + $0x3ec] sm:$0xf]  ;;  %v4826_v23 = vld [vmem:[#allocation5 + $0x418] sm:$0xf0] }
  0x81   :  { %1218 = vmatpush.bf16.msrb.mxu1 %v4329_v28  ;;  %v4337_v28 = vor.u32 %v6341_v17, %v4336_v13  ;;  %v6378_v13 = vld [vmem:[#allocation5 + $0x174] sm:$0xf0]  ;;  %v6396_v17 = vld [vmem:[#allocation5 + $0x20c] sm:$0xf]  ;;  %v4988_v63 = vld [vmem:[#allocation7 + $0x60] sm:$0xf] }
  0x82   :  { %1265 = vmatpush.bf16.msra.mxu3 %v4577_v19  ;;  %1242 = vmatpush.bf16.msrb.mxu0 %v4429_v33  ;;  %v6426_v19 = vld [vmem:[#allocation5 + $0x2f4] sm:$0xf0]  ;;  %v5204_v4 = vld [vmem:[#allocation7 + $0x210] sm:$0xf] }
  0x83   :  { %1289 = vmatpush.bf16.msra.mxu2 %v4677_v27  ;;  %v4434_v27 = vld [vmem:[#allocation5 + $0x110] sm:$0xf0]  ;;  %v6414_v33 = vld [vmem:[#allocation5 + $0x294] sm:$0xf0]  ;;  %v5108_v7 = vld [vmem:[#allocation7 + $0x150] sm:$0xf] }
  0x84   :  { %1219 = vmatmul.bf16.vlgmr.msrb.gmra.mxu1 %v7041_v61  ;;  %4933 = vmatmul.msk.bf16.vlgmr.msrb.gmra.mxu2 %vm1011_vm2, %v7034_v25  ;;  %v4437_v35 = vor.u32 %v6359_v26, %v4434_v27  ;;  %v4440_v26 = vld [vmem:[#allocation5 + $0xe8] sm:$0xf]  ;;  %v6366_v27 = vld [vmem:[#allocation5 + $0x114] sm:$0xf0] }
  0x85   :  { %1279 = vmatpush.bf16.msra.mxu1 %v1044_v29  ;;  %v4681_v29 = vor.u32 %v6426_v19, %v4680_v18  ;;  %v5024_v19 = vld [vmem:[#allocation7 + $0xa8] sm:$0xf] }
  0x86   :  { %1266 = vmatpush.bf16.msra.mxu3 %v4529_v32  ;;  %1243 = vmatpush.bf16.msrb.mxu0 %v4381_v47  ;;  %v4632_v32 = vld [vmem:[#allocation5 + $0x268] sm:$0xf]  ;;  %v6402_v47 = vld [vmem:[#allocation5 + $0x234] sm:$0xf0] }
  0x87   :  { %1290 = vmatpush.bf16.msra.mxu2 %v4629_v40  ;;  %v4386_v40 = vld [vmem:[#allocation5 + $0xb0] sm:$0xf0]  ;;  %v4633_v41 = vor.u32 %v6414_v33, %v4632_v32  ;;  %v4585_v58 = vor.u32 %v6402_v47, %v4584_v42  ;;  %v4538_v32 = vld [vmem:[#allocation5 + $0x1d8] sm:$0xf0]  ;;  %v5012_v33 = vld [vmem:[#allocation7 + $0x90] sm:$0xf] }
  0x88   :  { %v4389_v50 = vor.u32 %v6347_v39, %v4386_v40  ;;  %v6354_v39 = vld [vmem:[#allocation5 + $0xb4] sm:$0xf0]  ;;  %v5013_v42 = vor.u32 %v6506_v34, %v5012_v33  ;;  %v6524_v33 = vld [vmem:[#allocation7 + $0x128] sm:$0xf0] }
  0x89   :  { %1280 = vmatpush.bf16.msra.mxu1 %v4865_v43  ;;  %v6480_v43 = vld [vmem:[#allocation5 + $0x4ac] sm:$0xf] }
  0x8a   :  { %1267 = vmatpush.bf16.msra.mxu3 %v4481_v46  ;;  %1244 = vmatpush.bf16.msrb.mxu0 %v4333_v60  ;;  %v4773_v46 = vor.u32 %v6443_v37, %v4770_v38  ;;  %v4925_v57 = vor.u32 %v6480_v43, %v4922_v44  ;;  %v4725_v60 = vor.u32 %v6431_v52, %v4722_v53  ;;  %v4778_v37 = vld [vmem:[#allocation5 + $0x3b8] sm:$0xf0]  ;;  %v4392_v38 = vld [vmem:[#allocation5 + $0x88] sm:$0xf]  ;;  %v6557_v53 = vld [vmem:[#allocation7 + $0x230] sm:$0xf0] }
  0x8b   :  { %1291 = vmatpush.bf16.msra.mxu2 %v4581_v55  ;;  %v6420_v55 = vld [vmem:[#allocation5 + $0x2cc] sm:$0xf]  ;;  %v4781_v43 = vor.u32 %v6444_v36, %v4778_v37  ;;  %v4490_v44 = vld [vmem:[#allocation5 + $0x178] sm:$0xf0]  ;;  %v4393_v47 = vor.u32 %v6354_v39, %v4392_v38  ;;  %v5216_v52 = vld [vmem:[#allocation7 + $0x228] sm:$0xf] }
  0x8c   :  { %v4952_v36 = vld [vmem:[#allocation7 + $0x18] sm:$0xf]  ;;  %v6491_v38 = vld [vmem:[#allocation7 + $0x20] sm:$0xf0] }
  0x8d   :  { %1281 = vmatpush.bf16.msra.mxu1 %v4817_v56  ;;  %1245 = vmatmul.bf16.vlgmr.msrb.gmra.mxu0 %v7041_v61  ;;  %v4682_v56 = vld [vmem:[#allocation5 + $0x2f8] sm:$0xf0] }
  0x8e   :  { %1268 = vmatpush.bf16.msra.mxu3 %v4433_v59  ;;  %1305 = vmatpush.bf16.msra.mxu0 %v1047_v0  ;;  %v4825_v59 = vor.u32 %v6462_v49, %v4824_v48  ;;  %v4341_v0 = vor.u32 %v6335_v51, %v4338_v54  ;;  %v4685_v1 = vor.u32 %v6420_v55, %v4682_v56  ;;  %v6432_v48 = vld [vmem:[#allocation5 + $0x32c] sm:$0xf]  ;;  %v4730_v49 = vld [vmem:[#allocation5 + $0x358] sm:$0xf0]  ;;  %v6342_v51 = vld [vmem:[#allocation5 + $0x54] sm:$0xf0] }
  0x8f   :  { %1292 = vmatpush.bf16.msra.mxu2 %v4533_v5  ;;  %v1053_v5 = vand.u32 %v4925_v57, %v7029_v2  ;;  %v4586_v2 = vld [vmem:[#allocation5 + $0x238] sm:$0xf0]  ;;  %v5120_v56 = vld [vmem:[#allocation7 + $0x168] sm:$0xf]  ;;  %v6533_v57 = vld [vmem:[#allocation7 + $0x170] sm:$0xf0] }
  0x90   :  { %v5121_v3 = vor.u32 %v6533_v57, %v5120_v56  ;;  %v6605_v56 = vld [vmem:[#allocation7 + $0x3b0] sm:$0xf0]  ;;  %v5156_v57 = vld [vmem:[#allocation7 + $0x1b0] sm:$0xf] }
  0x91   :  { %1282 = vmatpush.bf16.msra.mxu1 %v4769_v9  ;;  %v6468_v9 = vld [vmem:[#allocation5 + $0x44c] sm:$0xf] }
  0x92   :  { %1269 = vmatpush.bf16.msra.mxu3 %v4385_v12  ;;  %1306 = vmatpush.bf16.msra.mxu0 %v4869_v16  ;;  %v4488_v12 = vld [vmem:[#allocation5 + $0x148] sm:$0xf]  ;;  %v6438_v16 = vld [vmem:[#allocation5 + $0x354] sm:$0xf0]  ;;  %v4877_v18 = vor.u32 %v6468_v9, %v4874_v10  ;;  %v6348_v9 = vld [vmem:[#allocation5 + $0x8c] sm:$0xf] }
  0x93   :  { %1293 = vmatpush.bf16.msra.mxu2 %v4485_v21  ;;  %v4489_v21 = vor.u32 %v6378_v13, %v4488_v12  ;;  %v4394_v10 = vld [vmem:[#allocation5 + $0xb8] sm:$0xf0]  ;;  %v4976_v12 = vld [vmem:[#allocation7 + $0x48] sm:$0xf]  ;;  %v6497_v13 = vld [vmem:[#allocation7 + $0x50] sm:$0xf0] }
  0x95   :  { %1283 = vmatpush.bf16.msra.mxu1 %v4721_v24  ;;  %v4729_v24 = vor.u32 %v6438_v16, %v4728_v15  ;;  %v5192_v16 = vld [vmem:[#allocation7 + $0x1f8] sm:$0xf] }
  0x96   :  { %1270 = vmatpush.bf16.msra.mxu3 %v4337_v28  ;;  %1307 = vmatpush.bf16.msra.mxu0 %v4821_v31  ;;  %v4589_v28 = vor.u32 %v6396_v17, %v4586_v2  ;;  %v4829_v31 = vor.u32 %v6456_v22, %v4826_v23  ;;  %v6551_v17 = vld [vmem:[#allocation7 + $0x200] sm:$0xf0]  ;;  %v5096_v2 = vld [vmem:[#allocation7 + $0x138] sm:$0xf]  ;;  %v4977_v22 = vor.u32 %v6497_v13, %v4976_v12  ;;  %v4964_v23 = vld [vmem:[#allocation7 + $0x30] sm:$0xf] }
  0x97   :  { %1294 = vmatpush.bf16.msra.mxu2 %v4437_v35  ;;  %v4441_v35 = vor.u32 %v6366_v27, %v4440_v26  ;;  %v5193_v26 = vor.u32 %v6551_v17, %v5192_v16  ;;  %v5312_v27 = vld [vmem:[#allocation7 + $0x2e8] sm:$0xf]  ;;  %v5048_v13 = vld [vmem:[#allocation7 + $0xd8] sm:$0xf] }
  0x98   :  { %4934 = vmatmul.msk.bf16.vlgmr.msra.gmra.mxu1 %vm1011_vm2, %v7034_v25 }
  0x99   :  { %1315 = vmatpush.bf16.msrb.mxu1 %v4681_v29  ;;  %1271 = vmatmul.bf16.vlgmr.msra.gmra.mxu3 %v7041_v61  ;;  %v6384_v29 = vld [vmem:[#allocation5 + $0x1ac] sm:$0xf] }
  0x9a   :  { %1331 = vmatpush.bf16.msrb.mxu3 %v1050_v30  ;;  %1308 = vmatpush.bf16.msra.mxu0 %v4773_v46  ;;  %v5025_v30 = vor.u32 %v6509_v20, %v5024_v19  ;;  %v4541_v40 = vor.u32 %v6384_v29, %v4538_v32  ;;  %v6503_v46 = vld [vmem:[#allocation7 + $0x80] sm:$0xf0]  ;;  %v6336_v20 = vld [vmem:[#allocation5 + $0x2c] sm:$0xf]  ;;  %v5084_v32 = vld [vmem:[#allocation7 + $0x120] sm:$0xf] }
  0x9b   :  { %1295 = vmatpush.bf16.msra.mxu2 %v4389_v50  ;;  %v4344_v50 = vld [vmem:[#allocation5 + $0x28] sm:$0xf]  ;;  %v6527_v19 = vld [vmem:[#allocation7 + $0x140] sm:$0xf0] }
  0x9c   :  { %v4345_v62 = vor.u32 %v6342_v51, %v4344_v50  ;;  %v5097_v29 = vor.u32 %v6527_v19, %v5096_v2  ;;  %v5408_v51 = vld [vmem:[#allocation7 + $0x3a8] sm:$0xf]  ;;  %v5036_v2 = vld [vmem:[#allocation7 + $0xc0] sm:$0xf] }
  0x9d   :  { %1316 = vmatpush.bf16.msrb.mxu1 %v4633_v41  ;;  %v6372_v41 = vld [vmem:[#allocation5 + $0x14c] sm:$0xf] }
  0x9e   :  { %1332 = vmatpush.bf16.msrb.mxu3 %v4873_v45  ;;  %1309 = vmatpush.bf16.msra.mxu0 %v4725_v60  ;;  %v5000_v45 = vld [vmem:[#allocation7 + $0x78] sm:$0xf]  ;;  %v4493_v54 = vor.u32 %v6372_v41, %v4490_v44  ;;  %v4442_v60 = vld [vmem:[#allocation5 + $0x118] sm:$0xf0]  ;;  %v6545_v44 = vld [vmem:[#allocation7 + $0x1d0] sm:$0xf0] }
  0x9f   :  { %1296 = vmatpush.bf16.msra.mxu2 %v4341_v0  ;;  %v5001_v55 = vor.u32 %v6503_v46, %v5000_v45  ;;  %v6500_v0 = vld [vmem:[#allocation7 + $0x68] sm:$0xf0]  ;;  %v6578_v41 = vld [vmem:[#allocation7 + $0x2d8] sm:$0xf0]  ;;  %v5072_v45 = vld [vmem:[#allocation7 + $0x108] sm:$0xf] }
  0xa0   :  { %v6521_v46 = vld [vmem:[#allocation7 + $0x110] sm:$0xf0] }
  0xa1   :  { %1317 = vmatpush.bf16.msrb.mxu1 %v4585_v58  ;;  %4935 = vmatmul.msk.bf16.vlgmr.msra.gmra.mxu0 %vm1011_vm2, %v7034_v25  ;;  %v4733_v58 = vor.u32 %v6432_v48, %v4730_v49  ;;  %v4940_v48 = vld [vmem:[#allocation7] sm:$0xf]  ;;  %v6488_v49 = vld [vmem:[#allocation7 + $0x8] sm:$0xf0] }
  0xa2   :  { %1333 = vmatpush.bf16.msrb.mxu3 %v4825_v59  ;;  %1341 = vmatpush.bf16.msrb.mxu0 %v4685_v1  ;;  %v6360_v59 = vld [vmem:[#allocation5 + $0xec] sm:$0xf]  ;;  %v5217_v1 = vor.u32 %v6557_v53, %v5216_v52  ;;  %v5288_v53 = vld [vmem:[#allocation7 + $0x2b8] sm:$0xf] }
  0xa3   :  { %1357 = vmatpush.bf16.msrb.mxu2 %v1053_v5  ;;  %v6554_v5 = vld [vmem:[#allocation7 + $0x218] sm:$0xf0]  ;;  %v4445_v6 = vor.u32 %v6360_v59, %v4442_v60  ;;  %v5060_v60 = vld [vmem:[#allocation7 + $0xf0] sm:$0xf] }
  0xa4   :  { %1297 = vmatmul.bf16.vlgmr.msra.gmra.mxu2 %v7041_v61 }
  0xa5   :  { %1318 = vmatpush.bf16.msrb.mxu1 %v4537_v8  ;;  %v6530_v8 = vld [vmem:[#allocation7 + $0x158] sm:$0xf0] }
  0xa6   :  { %1334 = vmatpush.bf16.msrb.mxu3 %v4777_v11  ;;  %1342 = vmatpush.bf16.msrb.mxu0 %v4637_v14  ;;  %v4989_v11 = vor.u32 %v6500_v0, %v4988_v63  ;;  %v5205_v14 = vor.u32 %v6554_v5, %v5204_v4  ;;  %v5109_v15 = vor.u32 %v6530_v8, %v5108_v7  ;;  %v5396_v4 = vld [vmem:[#allocation7 + $0x390] sm:$0xf]  ;;  %v6572_v7 = vld [vmem:[#allocation7 + $0x2a8] sm:$0xf0] }
  0xa7   :  { %1358 = vmatpush.bf16.msrb.mxu2 %v4877_v18  ;;  %v4397_v18 = vor.u32 %v6348_v9, %v4394_v10  ;;  %v4941_v63 = vor.u32 %v6488_v49, %v4940_v48  ;;  %v6602_v9 = vld [vmem:[#allocation7 + $0x398] sm:$0xf0]  ;;  %v5144_v10 = vld [vmem:[#allocation7 + $0x198] sm:$0xf]  ;;  %v5492_v49 = vld [vmem:[#allocation7 + $0x450] sm:$0xf] }
  0xa9   :  { %1319 = vmatpush.bf16.msrb.mxu1 %v4489_v21  ;;  %v4346_v21 = vld [vmem:[#allocation5 + $0x58] sm:$0xf0] }
  0xaa   :  { %1335 = vmatpush.bf16.msrb.mxu3 %v4729_v24  ;;  %1343 = vmatpush.bf16.msrb.mxu0 %v4589_v28  ;;  %v6494_v24 = vld [vmem:[#allocation7 + $0x38] sm:$0xf0]  ;;  %v6581_v28 = vld [vmem:[#allocation7 + $0x2f0] sm:$0xf0] }
  0xab   :  { %1359 = vmatpush.bf16.msrb.mxu2 %v4829_v31  ;;  %v4349_v31 = vor.u32 %v6336_v20, %v4346_v21  ;;  %v4965_v34 = vor.u32 %v6494_v24, %v4964_v23  ;;  %v5313_v37 = vor.u32 %v6581_v28, %v5312_v27  ;;  %v5264_v20 = vld [vmem:[#allocation7 + $0x288] sm:$0xf]  ;;  %v6569_v21 = vld [vmem:[#allocation7 + $0x290] sm:$0xf0]  ;;  %v6599_v23 = vld [vmem:[#allocation7 + $0x380] sm:$0xf0] }
  0xac   :  { %v5132_v24 = vld [vmem:[#allocation7 + $0x180] sm:$0xf] }
  0xad   :  { %4936 = vmatmul.msk.bf16.vlgmr.msrb.gmra.mxu3 %vm1011_vm2, %v7034_v25  ;;  %1320 = vmatpush.bf16.msrb.mxu1 %v4441_v35  ;;  %v1077_v35 = vpop.f32.mrf.mxu1 }
  0xae   :  { %3311 = vmatpush.bf16.msra.mxu3 %v5025_v30  ;;  %1344 = vmatpush.bf16.msrb.mxu0 %v4541_v40  ;;  %v5180_v30 = vld [vmem:[#allocation7 + $0x1e0] sm:$0xf]  ;;  %v5300_v40 = vld [vmem:[#allocation7 + $0x2d0] sm:$0xf] }
  0xaf   :  { %1360 = vmatpush.bf16.msrb.mxu2 %v4781_v43  ;;  %v5168_v43 = vld [vmem:[#allocation7 + $0x1c8] sm:$0xf]  ;;  %v5301_v50 = vor.u32 %v6578_v41, %v5300_v40  ;;  %v5372_v41 = vld [vmem:[#allocation7 + $0x360] sm:$0xf] }
  0xb0   :  { %v5169_v52 = vor.u32 %v6545_v44, %v5168_v43 }
  0xb1   :  { %1321 = vmatpush.bf16.msrb.mxu1 %v4393_v47  ;;  %v4953_v47 = vor.u32 %v6491_v38, %v4952_v36  ;;  %v6566_v38 = vld [vmem:[#allocation7 + $0x278] sm:$0xf0] }
  0xb2   :  { %3312 = vmatpush.bf16.msra.mxu3 %v5013_v42  ;;  %1345 = vmatpush.bf16.msrb.mxu0 %v4493_v54  ;;  %v5085_v42 = vor.u32 %v6524_v33, %v5084_v32  ;;  %v6575_v54 = vld [vmem:[#allocation7 + $0x2c0] sm:$0xf0]  ;;  %v6629_v32 = vld [vmem:[#allocation7 + $0x470] sm:$0xf0]  ;;  %v5265_v33 = vor.u32 %v6569_v21, %v5264_v20 }
  0xb3   :  { %1361 = vmatpush.bf16.msrb.mxu2 %v4733_v58  ;;  %v6542_v58 = vld [vmem:[#allocation7 + $0x1b8] sm:$0xf0] }
  0xb4   :  { %v1103_v59 = vpop.f32.mrf.mxu3  ;;  %v5157_v5 = vor.u32 %v6542_v58, %v5156_v57  ;;  %v6593_v57 = vld [vmem:[#allocation7 + $0x350] sm:$0xf0] }
  0xb5   :  { %1322 = vmatpush.bf16.msrb.mxu1 %v4345_v62  ;;  %v6518_v62 = vld [vmem:[#allocation7 + $0xf8] sm:$0xf0]  ;;  %v1079_v0 = vpop.f32.mrf.mxu1 }
  0xb6   :  { %3313 = vmatpush.bf16.msra.mxu3 %v5001_v55  ;;  %4937 = vmatmul.msk.bf16.vlgmr.msrb.gmra.mxu2 %vm1011_vm2, %v7034_v25  ;;  %v6548_v25 = vld [vmem:[#allocation7 + $0x1e8] sm:$0xf0]  ;;  %v5073_v55 = vor.u32 %v6521_v46, %v5072_v45  ;;  %v1064_v8 = vpop.f32.mrf.mxu0  ;;  %v5588_v46 = vld [vmem:[#allocation7 + $0x510] sm:$0xf]  ;;  %v5480_v0 = vld [vmem:[#allocation7 + $0x438] sm:$0xf] }
  0xb7   :  { %3337 = vmatpush.bf16.msra.mxu2 %v5217_v1  ;;  %1346 = vmatpush.bf16.msrb.mxu0 %v4445_v6  ;;  %v5181_v39 = vor.u32 %v6548_v25, %v5180_v30  ;;  %v5289_v1 = vor.u32 %v6575_v54, %v5288_v53  ;;  %v5276_v6 = vld [vmem:[#allocation7 + $0x2a0] sm:$0xf]  ;;  %v1078_v12 = vadd.f32 %v1077_v35, %v1064_v8  ;;  %v5600_v30 = vld [vmem:[#allocation7 + $0x528] sm:$0xf]  ;;  %v6653_v25 = vld [vmem:[#allocation7 + $0x530] sm:$0xf0] }
  0xb8   :  { %1323 = vmatmul.bf16.vlgmr.msrb.gmra.mxu1 %v7041_v61  ;;  %v5277_v16 = vor.u32 %v6572_v7, %v5276_v6  ;;  %v5601_v44 = vor.u32 %v6653_v25, %v5600_v30  ;;  %v5240_v53 = vld [vmem:[#allocation7 + $0x258] sm:$0xf]  ;;  %v6563_v54 = vld [vmem:[#allocation7 + $0x260] sm:$0xf0]  ;;  %v5348_v6 = vld [vmem:[#allocation7 + $0x330] sm:$0xf] }
  0xb9   :  { %3324 = vmatpush.bf16.msra.mxu1 %v5121_v3  ;;  %v5409_v3 = vor.u32 %v6605_v56, %v5408_v51  ;;  %v1367_v17 = vmax.f32 %v1078_v12, 0.0  ;;  %v5360_v56 = vld [vmem:[#allocation7 + $0x348] sm:$0xf]  ;;  %v5228_v7 = vld [vmem:[#allocation7 + $0x240] sm:$0xf] }
  0xba   :  { %3314 = vmatpush.bf16.msra.mxu3 %v4989_v11  ;;  %v6539_v11 = vld [vmem:[#allocation7 + $0x1a0] sm:$0xf0]  ;;  %v6590_v8 = vld [vmem:[#allocation7 + $0x338] sm:$0xf0]  ;;  %v6641_v30 = vld [vmem:[#allocation7 + $0x4d0] sm:$0xf0] }
  0xbb   :  { %3338 = vmatpush.bf16.msra.mxu2 %v5205_v14  ;;  %1347 = vmatpush.bf16.msrb.mxu0 %v4397_v18  ;;  %v6515_v14 = vld [vmem:[#allocation7 + $0xe0] sm:$0xf0]  ;;  %v5397_v18 = vor.u32 %v6602_v9, %v5396_v4  ;;  %v5145_v19 = vor.u32 %v6539_v11, %v5144_v10  ;;  %v7083_v27 = vpack.c.bf16 %v1367_v17, %v1367_v17  ;;  %v5696_v10 = vld [vmem:[#allocation7 + $0x5e8] sm:$0xf]  ;;  %v6677_v11 = vld [vmem:[#allocation7 + $0x5f0] sm:$0xf0] }
  0xbc   :  { %v1105_v28 = vpop.f32.mrf.mxu3  ;;  %v5697_v20 = vor.u32 %v6677_v11, %v5696_v10 }
  0xbd   :  { %3325 = vmatpush.bf16.msra.mxu1 %v5109_v15  ;;  %v5384_v15 = vld [vmem:[#allocation7 + $0x378] sm:$0xf] }
  0xbe   :  { %3315 = vmatpush.bf16.msra.mxu3 %v4977_v22  ;;  %v5049_v22 = vor.u32 %v6515_v14, %v5048_v13  ;;  %v5385_v35 = vor.u32 %v6599_v23, %v5384_v15  ;;  %v1066_v43 = vpop.f32.mrf.mxu0  ;;  %v5564_v13 = vld [vmem:[#allocation7 + $0x4e0] sm:$0xf]  ;;  %v6644_v14 = vld [vmem:[#allocation7 + $0x4e8] sm:$0xf0] }
  0xbf   :  { %3339 = vmatpush.bf16.msra.mxu2 %v5193_v26  ;;  %1348 = vmatpush.bf16.msrb.mxu0 %v4349_v31  ;;  %v6536_v26 = vld [vmem:[#allocation7 + $0x188] sm:$0xf0]  ;;  %v5504_v31 = vld [vmem:[#allocation7 + $0x468] sm:$0xf]  ;;  %v5468_v15 = vld [vmem:[#allocation7 + $0x420] sm:$0xf]  ;;  %v5565_v23 = vor.u32 %v6644_v14, %v5564_v13 }
  0xc0   :  { %v5133_v36 = vor.u32 %v6536_v26, %v5132_v24  ;;  %v5505_v45 = vor.u32 %v6629_v32, %v5504_v31  ;;  %v5684_v24 = vld [vmem:[#allocation7 + $0x5d0] sm:$0xf]  ;;  %v6674_v26 = vld [vmem:[#allocation7 + $0x5d8] sm:$0xf0]  ;;  %v5456_v32 = vld [vmem:[#allocation7 + $0x408] sm:$0xf] }
  0xc1   :  { %3326 = vmatpush.bf16.msra.mxu1 %v5097_v29  ;;  %v6512_v29 = vld [vmem:[#allocation7 + $0xc8] sm:$0xf0]  ;;  %v5420_v13 = vld [vmem:[#allocation7 + $0x3c0] sm:$0xf] }
  0xc2   :  { %3316 = vmatpush.bf16.msra.mxu3 %v4965_v34  ;;  %1349 = vmatmul.bf16.vlgmr.msrb.gmra.mxu0 %v7041_v61  ;;  %v5061_v61 = vor.u32 %v6518_v62, %v5060_v60  ;;  %v1090_v34 = vpop.f32.mrf.mxu2  ;;  %v5037_v40 = vor.u32 %v6512_v29, %v5036_v2  ;;  %v5576_v60 = vld [vmem:[#allocation7 + $0x4f8] sm:$0xf]  ;;  %v6647_v62 = vld [vmem:[#allocation7 + $0x500] sm:$0xf0]  ;;  %v5349_v2 = vor.u32 %v6590_v8, %v5348_v6  ;;  %v5552_v29 = vld [vmem:[#allocation7 + $0x4c8] sm:$0xf] }
  0xc3   :  { %3350 = vmatpush.bf16.msra.mxu0 %v5313_v37  ;;  %3340 = vmatpush.bf16.msra.mxu2 %v5181_v39  ;;  %v5252_v37 = vld [vmem:[#allocation7 + $0x270] sm:$0xf]  ;;  %v1104_v39 = vadd.f32 %v1103_v59, %v1090_v34  ;;  %v5577_v9 = vor.u32 %v6647_v62, %v5576_v60  ;;  %v6698_v62 = vld [vmem:[#allocation7 + $0x698] sm:$0xf0]  ;;  %v5648_v8 = vld [vmem:[#allocation7 + $0x588] sm:$0xf] }
  0xc4   :  { %v5253_v51 = vor.u32 %v6566_v38, %v5252_v37  ;;  %v5685_v37 = vor.u32 %v6674_v26, %v5684_v24  ;;  %v5780_v60 = vld [vmem:[#allocation7 + $0x690] sm:$0xf]  ;;  %v6608_v14 = vld [vmem:[#allocation7 + $0x3c8] sm:$0xf0] }
  0xc5   :  { %3327 = vmatpush.bf16.msra.mxu1 %v5085_v42  ;;  %v6596_v42 = vld [vmem:[#allocation7 + $0x368] sm:$0xf0]  ;;  %v1368_v48 = vmax.f32 %v1104_v39, 0.0  ;;  %v5792_v39 = vld [vmem:[#allocation7 + $0x6a8] sm:$0xf] }
  0xc6   :  { %3317 = vmatpush.bf16.msra.mxu3 %v4953_v47  ;;  %v6650_v47 = vld [vmem:[#allocation7 + $0x518] sm:$0xf0]  ;;  %v5636_v26 = vld [vmem:[#allocation7 + $0x570] sm:$0xf] }
  0xc7   :  { %3351 = vmatpush.bf16.msra.mxu0 %v5301_v50  ;;  %3341 = vmatpush.bf16.msra.mxu2 %v5169_v52  ;;  %v6626_v50 = vld [vmem:[#allocation7 + $0x458] sm:$0xf0]  ;;  %v5373_v52 = vor.u32 %v6596_v42, %v5372_v41  ;;  %v5589_v58 = vor.u32 %v6650_v47, %v5588_v46  ;;  %v5672_v41 = vld [vmem:[#allocation7 + $0x5b8] sm:$0xf]  ;;  %v6671_v42 = vld [vmem:[#allocation7 + $0x5c0] sm:$0xf0] }
  0xc8   :  { %v5493_v59 = vor.u32 %v6626_v50, %v5492_v49  ;;  %v5540_v46 = vld [vmem:[#allocation7 + $0x4b0] sm:$0xf]  ;;  %v6638_v47 = vld [vmem:[#allocation7 + $0x4b8] sm:$0xf0] }
  0xc9   :  { %3328 = vmatpush.bf16.msra.mxu1 %v5073_v55  ;;  %v7086_v55 = vpack.c.bf16 %v1368_v48, %v1368_v48  ;;  %v5444_v48 = vld [vmem:[#allocation7 + $0x3f0] sm:$0xf]  ;;  %v6614_v49 = vld [vmem:[#allocation7 + $0x3f8] sm:$0xf0] }
  0xca   :  { %3318 = vmatpush.bf16.msra.mxu3 %v4941_v63  ;;  %v1129_v63 = vpop.f32.mrf.mxu3  ;;  %v1092_v4 = vpop.f32.mrf.mxu2 }
  0xcb   :  { %3352 = vmatpush.bf16.msra.mxu0 %v5289_v1  ;;  %3342 = vmatpush.bf16.msra.mxu2 %v5157_v5  ;;  %v6623_v1 = vld [vmem:[#allocation7 + $0x440] sm:$0xf0]  ;;  %v5361_v5 = vor.u32 %v6593_v57, %v5360_v56  ;;  %v5660_v56 = vld [vmem:[#allocation7 + $0x5a0] sm:$0xf]  ;;  %v6668_v57 = vld [vmem:[#allocation7 + $0x5a8] sm:$0xf0] }
  0xcc   :  { %v5481_v12 = vor.u32 %v6623_v1, %v5480_v0  ;;  %v6611_v1 = vld [vmem:[#allocation7 + $0x3e0] sm:$0xf0]  ;;  %v5661_v6 = vor.u32 %v6668_v57, %v5660_v56 }
  0xcd   :  { %3329 = vmatpush.bf16.msra.mxu1 %v5061_v61  ;;  %3319 = vmatmul.bf16.vlgmr.msra.gmra.mxu3 %v7083_v27  ;;  %v6560_v61 = vld [vmem:[#allocation7 + $0x248] sm:$0xf0]  ;;  %v6635_v4 = vld [vmem:[#allocation7 + $0x4a0] sm:$0xf0] }
  0xce   :  { %3363 = vmatpush.bf16.msrb.mxu3 %v5409_v3  ;;  %v5241_v3 = vor.u32 %v6563_v54, %v5240_v53  ;;  %v5229_v17 = vor.u32 %v6560_v61, %v5228_v7  ;;  %v5541_v54 = vor.u32 %v6638_v47, %v5540_v46  ;;  %v5781_v61 = vor.u32 %v6698_v62, %v5780_v60  ;;  %v5864_v47 = vld [vmem:[#allocation7 + $0x738] sm:$0xf]  ;;  %v6656_v60 = vld [vmem:[#allocation7 + $0x548] sm:$0xf0]  ;;  %v6686_v62 = vld [vmem:[#allocation7 + $0x638] sm:$0xf0] }
  0xcf   :  { %3353 = vmatpush.bf16.msra.mxu0 %v5277_v16  ;;  %3343 = vmatpush.bf16.msra.mxu2 %v5145_v19  ;;  %v6620_v16 = vld [vmem:[#allocation7 + $0x428] sm:$0xf0]  ;;  %v5336_v19 = vld [vmem:[#allocation7 + $0x318] sm:$0xf] }
  0xd0   :  { %v5469_v28 = vor.u32 %v6620_v16, %v5468_v15 }
  0xd1   :  { %3330 = vmatpush.bf16.msra.mxu1 %v5049_v22  ;;  %v6587_v22 = vld [vmem:[#allocation7 + $0x320] sm:$0xf0] }
  0xd2   :  { %3364 = vmatpush.bf16.msrb.mxu3 %v5397_v18  ;;  %v1116_v18 = vpop.f32.mrf.mxu1  ;;  %v1131_v31 = vpop.f32.mrf.mxu3  ;;  %v5337_v34 = vor.u32 %v6587_v22, %v5336_v19  ;;  %v6725_v19 = vld [vmem:[#allocation7 + $0x770] sm:$0xf0] }
  0xd3   :  { %3354 = vmatpush.bf16.msra.mxu0 %v5265_v33  ;;  %3344 = vmatpush.bf16.msra.mxu2 %v5133_v36  ;;  %v1130_v21 = vadd.f32 %v1129_v63, %v1116_v18  ;;  %v6617_v33 = vld [vmem:[#allocation7 + $0x410] sm:$0xf0]  ;;  %v6584_v36 = vld [vmem:[#allocation7 + $0x308] sm:$0xf0]  ;;  %v1155_v43 = vpop.f32.mrf.mxu2  ;;  %v5432_v63 = vld [vmem:[#allocation7 + $0x3d8] sm:$0xf] }
  0xd4   :  { %v5433_v10 = vor.u32 %v6611_v1, %v5432_v63  ;;  %v5516_v18 = vld [vmem:[#allocation7 + $0x480] sm:$0xf]  ;;  %v6749_v22 = vld [vmem:[#allocation7 + $0x830] sm:$0xf0]  ;;  %v6692_v31 = vld [vmem:[#allocation7 + $0x668] sm:$0xf0] }
  0xd5   :  { %3331 = vmatpush.bf16.msra.mxu1 %v5037_v40  ;;  %v1369_v25 = vmax.f32 %v1130_v21, 0.0  ;;  %v5553_v40 = vor.u32 %v6641_v30, %v5552_v29  ;;  %v5984_v21 = vld [vmem:[#allocation7 + $0x828] sm:$0xf]  ;;  %v5421_v30 = vor.u32 %v6608_v14, %v5420_v13  ;;  %v6740_v13 = vld [vmem:[#allocation7 + $0x7e8] sm:$0xf0] }
  0xd6   :  { %3365 = vmatpush.bf16.msrb.mxu3 %v5385_v35  ;;  %v5324_v35 = vld [vmem:[#allocation7 + $0x300] sm:$0xf]  ;;  %v6080_v63 = vld [vmem:[#allocation7 + $0x8e8] sm:$0xf]  ;;  %v6683_v14 = vld [vmem:[#allocation7 + $0x620] sm:$0xf0] }
  0xd7   :  { %3389 = vmatpush.bf16.msrb.mxu2 %v5601_v44  ;;  %3355 = vmatpush.bf16.msra.mxu0 %v5253_v51  ;;  %v7089_v38 = vpack.c.bf16 %v1369_v25, %v1369_v25  ;;  %v5457_v44 = vor.u32 %v6617_v33, %v5456_v32  ;;  %v5325_v51 = vor.u32 %v6584_v36, %v5324_v35  ;;  %v5756_v25 = vld [vmem:[#allocation7 + $0x660] sm:$0xf]  ;;  %v6722_v36 = vld [vmem:[#allocation7 + $0x758] sm:$0xf0] }
  0xd8   :  { %3332 = vmatmul.bf16.vlgmr.msra.gmra.mxu1 %v7086_v55  ;;  %v5985_v35 = vor.u32 %v6749_v22, %v5984_v21 }
  0xd9   :  { %3376 = vmatpush.bf16.msrb.mxu1 %v5505_v45  ;;  %v6701_v45 = vld [vmem:[#allocation7 + $0x6b0] sm:$0xf0]  ;;  %3345 = vmatmul.bf16.vlgmr.msra.gmra.mxu2 %v7089_v38 }
  0xda   :  { %3366 = vmatpush.bf16.msrb.mxu3 %v5373_v52  ;;  %v1118_v50 = vpop.f32.mrf.mxu1  ;;  %v5673_v52 = vor.u32 %v6671_v42, %v5672_v41  ;;  %v5793_v53 = vor.u32 %v6701_v45, %v5792_v39  ;;  %v5972_v39 = vld [vmem:[#allocation7 + $0x810] sm:$0xf]  ;;  %v5757_v41 = vor.u32 %v6692_v31, %v5756_v25  ;;  %v5624_v42 = vld [vmem:[#allocation7 + $0x558] sm:$0xf]  ;;  %v6689_v45 = vld [vmem:[#allocation7 + $0x650] sm:$0xf0] }
  0xdb   :  { %3390 = vmatpush.bf16.msrb.mxu2 %v5589_v58  ;;  %3356 = vmatpush.bf16.msra.mxu0 %v5241_v3  ;;  %v1142_v58 = vpop.f32.mrf.mxu0  ;;  %v5528_v3 = vld [vmem:[#allocation7 + $0x498] sm:$0xf]  ;;  %v1157_v11 = vpop.f32.mrf.mxu2  ;;  %v6719_v50 = vld [vmem:[#allocation7 + $0x740] sm:$0xf0]  ;;  %v6508_v25 = vld [vmem:[#allocation7 + $0xac] sm:$0xf] }
  0xdc   :  { %v1156_v0 = vadd.f32 %v1155_v43, %v1142_v58  ;;  %v5529_v15 = vor.u32 %v6635_v4, %v5528_v3  ;;  %v6659_v43 = vld [vmem:[#allocation7 + $0x560] sm:$0xf0]  ;;  %v5865_v4 = vor.u32 %v6719_v50, %v5864_v47  ;;  %v5014_v50 = vld [vmem:[#allocation7 + $0x9c] sm:$0xf0] }
  0xdd   :  { %3377 = vmatpush.bf16.msrb.mxu1 %v5493_v59  ;;  %v5445_v59 = vor.u32 %v6614_v49, %v5444_v48  ;;  %v6743_v58 = vld [vmem:[#allocation7 + $0x800] sm:$0xf0] }
  0xde   :  { %3367 = vmatpush.bf16.msrb.mxu3 %v5361_v5  ;;  %v5768_v5 = vld [vmem:[#allocation7 + $0x678] sm:$0xf]  ;;  %v1370_v7 = vmax.f32 %v1156_v0, 0.0  ;;  %v6773_v0 = vld [vmem:[#allocation7 + $0x8f0] sm:$0xf0] }
  0xdf   :  { %3391 = vmatpush.bf16.msrb.mxu2 %v5577_v9  ;;  %3357 = vmatpush.bf16.msra.mxu0 %v5229_v17  ;;  %v6665_v9 = vld [vmem:[#allocation7 + $0x590] sm:$0xf0]  ;;  %v5888_v17 = vld [vmem:[#allocation7 + $0x768] sm:$0xf]  ;;  %v6081_v11 = vor.u32 %v6773_v0, %v6080_v63  ;;  %v6502_v63 = vld [vmem:[#allocation7 + $0x7c] sm:$0xf] }
  0xe0   :  { %v7092_v16 = vpack.c.bf16 %v1370_v7, %v1370_v7  ;;  %v5889_v33 = vor.u32 %v6725_v19, %v5888_v17  ;;  %v6770_v17 = vld [vmem:[#allocation7 + $0x8d8] sm:$0xf0]  ;;  %v5840_v19 = vld [vmem:[#allocation7 + $0x708] sm:$0xf] }
  0xe1   :  { %3378 = vmatpush.bf16.msrb.mxu1 %v5481_v12  ;;  %v6695_v12 = vld [vmem:[#allocation7 + $0x680] sm:$0xf0] }
  0xe2   :  { %3368 = vmatpush.bf16.msrb.mxu3 %v5349_v2  ;;  %v6632_v2 = vld [vmem:[#allocation7 + $0x488] sm:$0xf0]  ;;  %3358 = vmatmul.bf16.vlgmr.msra.gmra.mxu0 %v7092_v16  ;;  %v5769_v24 = vor.u32 %v6695_v12, %v5768_v5  ;;  %v5852_v5 = vld [vmem:[#allocation7 + $0x720] sm:$0xf] }
  0xe3   :  { %3402 = vmatpush.bf16.msrb.mxu0 %v5697_v20  ;;  %3392 = vmatpush.bf16.msrb.mxu2 %v5565_v23  ;;  %v5649_v20 = vor.u32 %v6665_v9, %v5648_v8  ;;  %v1181_v23 = vpop.f32.mrf.mxu1  ;;  %v1144_v29 = vpop.f32.mrf.mxu0  ;;  %v5517_v32 = vor.u32 %v6632_v2, %v5516_v18  ;;  %v5948_v12 = vld [vmem:[#allocation7 + $0x7e0] sm:$0xf] }
  0xe4   :  { %v5949_v21 = vor.u32 %v6740_v13, %v5948_v12  ;;  %v5708_v29 = vld [vmem:[#allocation7 + $0x600] sm:$0xf]  ;;  %v6728_v12 = vld [vmem:[#allocation7 + $0x788] sm:$0xf0] }
  0xe5   :  { %3379 = vmatpush.bf16.msrb.mxu1 %v5469_v28  ;;  %v6662_v28 = vld [vmem:[#allocation7 + $0x578] sm:$0xf0] }
  0xe6   :  { %3369 = vmatpush.bf16.msrb.mxu3 %v5337_v34  ;;  %v5876_v34 = vld [vmem:[#allocation7 + $0x750] sm:$0xf] }
  0xe7   :  { %3403 = vmatpush.bf16.msrb.mxu0 %v5685_v37  ;;  %3393 = vmatpush.bf16.msrb.mxu2 %v5553_v40  ;;  %v5637_v37 = vor.u32 %v6662_v28, %v5636_v26  ;;  %v6746_v40 = vld [vmem:[#allocation7 + $0x818] sm:$0xf0]  ;;  %v5877_v46 = vor.u32 %v6722_v36, %v5876_v34  ;;  %v6737_v26 = vld [vmem:[#allocation7 + $0x7d0] sm:$0xf0]  ;;  %v6767_v36 = vld [vmem:[#allocation7 + $0x8c0] sm:$0xf0] }
  0xe8   :  { %v5973_v48 = vor.u32 %v6746_v40, %v5972_v39  ;;  %v1168_v49 = vpop.f32.mrf.mxu3  ;;  %v6710_v39 = vld [vmem:[#allocation7 + $0x6f8] sm:$0xf0] }
  0xe9   :  { %3380 = vmatpush.bf16.msrb.mxu1 %v5457_v44  ;;  %v5744_v44 = vld [vmem:[#allocation7 + $0x648] sm:$0xf] }
  0xea   :  { %3370 = vmatpush.bf16.msrb.mxu3 %v5325_v51  ;;  %v5732_v51 = vld [vmem:[#allocation7 + $0x630] sm:$0xf]  ;;  %v5745_v56 = vor.u32 %v6689_v45, %v5744_v44  ;;  %v6734_v44 = vld [vmem:[#allocation7 + $0x7b8] sm:$0xf0] }
  0xeb   :  { %3404 = vmatpush.bf16.msrb.mxu0 %v5673_v52  ;;  %3394 = vmatpush.bf16.msrb.mxu2 %v5541_v54  ;;  %v5625_v52 = vor.u32 %v6659_v43, %v5624_v42  ;;  %v1182_v54 = vadd.f32 %v1181_v23, %v1168_v49  ;;  %v1183_v57 = vpop.f32.mrf.mxu1  ;;  %v1207_v3 = vpop.f32.mrf.mxu0  ;;  %v5733_v9 = vor.u32 %v6686_v62, %v5732_v51  ;;  %v5924_v43 = vld [vmem:[#allocation7 + $0x7b0] sm:$0xf]  ;;  %v6044_v51 = vld [vmem:[#allocation7 + $0x8a0] sm:$0xf] }
  0xed   :  { %3381 = vmatpush.bf16.msrb.mxu1 %v5445_v59  ;;  %v5612_v59 = vld [vmem:[#allocation7 + $0x540] sm:$0xf]  ;;  %v1371_v1 = vmax.f32 %v1182_v54, 0.0  ;;  %v6707_v54 = vld [vmem:[#allocation7 + $0x6e0] sm:$0xf0] }
  0xee   :  { %3415 = vmatpush.bf16.msra.mxu3 %v5793_v53  ;;  %v5960_v53 = vld [vmem:[#allocation7 + $0x7f8] sm:$0xf] }
  0xef   :  { %3405 = vmatpush.bf16.msrb.mxu0 %v5661_v6  ;;  %3395 = vmatpush.bf16.msrb.mxu2 %v5529_v15  ;;  %v6716_v6 = vld [vmem:[#allocation7 + $0x728] sm:$0xf0]  ;;  %v5961_v7 = vor.u32 %v6743_v58, %v5960_v53  ;;  %v7095_v8 = vpack.c.bf16 %v1371_v1, %v1371_v1  ;;  %v6068_v15 = vld [vmem:[#allocation7 + $0x8d0] sm:$0xf]  ;;  %v5816_v53 = vld [vmem:[#allocation7 + $0x6d8] sm:$0xf] }
  0xf0   :  { %v5853_v18 = vor.u32 %v6716_v6, %v5852_v5  ;;  %v1170_v2 = vpop.f32.mrf.mxu3  ;;  %v6069_v23 = vor.u32 %v6770_v17, %v6068_v15  ;;  %v5912_v58 = vld [vmem:[#allocation7 + $0x798] sm:$0xf]  ;;  %v5817_v1 = vor.u32 %v6707_v54, %v5816_v53  ;;  %v6761_v5 = vld [vmem:[#allocation7 + $0x890] sm:$0xf0]  ;;  %v5804_v6 = vld [vmem:[#allocation7 + $0x6c0] sm:$0xf] }
  0xf1   :  { %3382 = vmatpush.bf16.msrb.mxu1 %v5433_v10  ;;  %v5720_v10 = vld [vmem:[#allocation7 + $0x618] sm:$0xf]  ;;  %3371 = vmatmul.bf16.vlgmr.msrb.gmra.mxu3 %v7095_v8  ;;  %v6499_v15 = vld [vmem:[#allocation7 + $0x64] sm:$0xf]  ;;  %v6550_v53 = vld [vmem:[#allocation7 + $0x1fc] sm:$0xf] }
  0xf2   :  { %3416 = vmatpush.bf16.msra.mxu3 %v5781_v61  ;;  %v5613_v61 = vor.u32 %v6656_v60, %v5612_v59  ;;  %v5721_v22 = vor.u32 %v6683_v14, %v5720_v10  ;;  %v6731_v59 = vld [vmem:[#allocation7 + $0x7a0] sm:$0xf0]  ;;  %v5122_v10 = vld [vmem:[#allocation7 + $0x174] sm:$0xf0]  ;;  %v5194_v54 = vld [vmem:[#allocation7 + $0x204] sm:$0xf0] }
  0xf3   :  { %3406 = vmatpush.bf16.msrb.mxu0 %v5649_v20  ;;  %3396 = vmatpush.bf16.msrb.mxu2 %v5517_v32  ;;  %v6713_v20 = vld [vmem:[#allocation7 + $0x710] sm:$0xf0]  ;;  %v1194_v28 = vpop.f32.mrf.mxu2  ;;  %v1209_v34 = vpop.f32.mrf.mxu0 }
  0xf4   :  { %v1208_v31 = vadd.f32 %v1207_v3, %v1194_v28  ;;  %v5841_v32 = vor.u32 %v6713_v20, %v5840_v19  ;;  %v5002_v3 = vld [vmem:[#allocation7 + $0x84] sm:$0xf0]  ;;  %v4990_v19 = vld [vmem:[#allocation7 + $0x6c] sm:$0xf0]  ;;  %v6556_v20 = vld [vmem:[#allocation7 + $0x22c] sm:$0xf] }
  0xf5   :  { %3383 = vmatpush.bf16.msrb.mxu1 %v5421_v30  ;;  %v6680_v30 = vld [vmem:[#allocation7 + $0x608] sm:$0xf0]  ;;  %v5005_v14 = vor.u32 %v6502_v63, %v5002_v3  ;;  %v5996_v63 = vld [vmem:[#allocation7 + $0x840] sm:$0xf]  ;;  %v4954_v3 = vld [vmem:[#allocation7 + $0x24] sm:$0xf0] }
  0xf6   :  { %3417 = vmatpush.bf16.msra.mxu3 %v5769_v24  ;;  %v5936_v24 = vld [vmem:[#allocation7 + $0x7c8] sm:$0xf]  ;;  %v5709_v42 = vor.u32 %v6680_v30, %v5708_v29  ;;  %v6529_v30 = vld [vmem:[#allocation7 + $0x154] sm:$0xf] }
  0xf7   :  { %3441 = vmatpush.bf16.msra.mxu2 %v5985_v35  ;;  %3407 = vmatpush.bf16.msrb.mxu0 %v5637_v37  ;;  %v6056_v35 = vld [vmem:[#allocation7 + $0x8b8] sm:$0xf]  ;;  %v5828_v37 = vld [vmem:[#allocation7 + $0x6f0] sm:$0xf]  ;;  %v5937_v40 = vor.u32 %v6737_v26, %v5936_v24  ;;  %v6758_v26 = vld [vmem:[#allocation7 + $0x878] sm:$0xf0] }
  0xf8   :  { %v6057_v47 = vor.u32 %v6767_v36, %v6056_v35  ;;  %v5829_v49 = vor.u32 %v6710_v39, %v5828_v37  ;;  %v6020_v24 = vld [vmem:[#allocation7 + $0x870] sm:$0xf]  ;;  %v4978_v35 = vld [vmem:[#allocation7 + $0x54] sm:$0xf0]  ;;  %v6553_v37 = vld [vmem:[#allocation7 + $0x214] sm:$0xf] }
  0xf9   :  { %3428 = vmatpush.bf16.msra.mxu1 %v5889_v33  ;;  %v5026_v33 = vld [vmem:[#allocation7 + $0xb4] sm:$0xf0]  ;;  %v6021_v36 = vor.u32 %v6758_v26, %v6020_v24  ;;  %v5206_v39 = vld [vmem:[#allocation7 + $0x21c] sm:$0xf0]  ;;  %v6544_v24 = vld [vmem:[#allocation7 + $0x1cc] sm:$0xf] }
  0xfa   :  { %3418 = vmatpush.bf16.msra.mxu3 %v5757_v41  ;;  %v1372_v41 = vmax.f32 %v1208_v31, 0.0  ;;  %v5029_v45 = vor.u32 %v6508_v25, %v5026_v33  ;;  %v5110_v25 = vld [vmem:[#allocation7 + $0x15c] sm:$0xf0]  ;;  %v4993_v31 = vor.u32 %v6499_v15, %v4990_v19  ;;  %v5074_v15 = vld [vmem:[#allocation7 + $0x114] sm:$0xf0] }
  0xfb   :  { %3442 = vmatpush.bf16.msra.mxu2 %v5973_v48  ;;  %3408 = vmatpush.bf16.msrb.mxu0 %v5625_v52  ;;  %v6764_v52 = vld [vmem:[#allocation7 + $0x8a8] sm:$0xf0]  ;;  %v1196_v60 = vpop.f32.mrf.mxu2  ;;  %v5170_v26 = vld [vmem:[#allocation7 + $0x1d4] sm:$0xf0] }
  0xfc   :  { %v7098_v48 = vpack.c.bf16 %v1372_v41, %v1372_v41  ;;  %v1233_v57 = vpop.f32.mrf.mxu3  ;;  %v6045_v0 = vor.u32 %v6764_v52, %v6044_v51  ;;  %v5113_v41 = vor.u32 %v6529_v30, %v5110_v25  ;;  %v4966_v51 = vld [vmem:[#allocation7 + $0x3c] sm:$0xf0]  ;;  %v6517_v30 = vld [vmem:[#allocation7 + $0xf4] sm:$0xf] }
  0xfd   :  { %3429 = vmatpush.bf16.msra.mxu1 %v5877_v46  ;;  %v6505_v46 = vld [vmem:[#allocation7 + $0x94] sm:$0xf]  ;;  %v5062_v25 = vld [vmem:[#allocation7 + $0xfc] sm:$0xf0] }
  0xfe   :  { %3419 = vmatpush.bf16.msra.mxu3 %v5745_v56  ;;  %v5925_v56 = vor.u32 %v6734_v44, %v5924_v43  ;;  %3384 = vmatmul.bf16.vlgmr.msrb.gmra.mxu1 %v7098_v48  ;;  %v5017_v62 = vor.u32 %v6505_v46, %v5014_v50  ;;  %v6755_v43 = vld [vmem:[#allocation7 + $0x860] sm:$0xf0]  ;;  %v6526_v44 = vld [vmem:[#allocation7 + $0x13c] sm:$0xf]  ;;  %v5209_v50 = vor.u32 %v6553_v37, %v5206_v39  ;;  %v6541_v37 = vld [vmem:[#allocation7 + $0x1b4] sm:$0xf] }
  0xff   :  { %3443 = vmatpush.bf16.msra.mxu2 %v5961_v7  ;;  %3409 = vmatpush.bf16.msrb.mxu0 %v5613_v61  ;;  %v6704_v7 = vld [vmem:[#allocation7 + $0x6c8] sm:$0xf0]  ;;  %v5158_v39 = vld [vmem:[#allocation7 + $0x1bc] sm:$0xf0] }
 0x100   :  { %v6532_v61 = vld [vmem:[#allocation7 + $0x16c] sm:$0xf]  ;;  %v5805_v2 = vor.u32 %v6704_v7, %v5804_v6  ;;  %v5314_v6 = vld [vmem:[#allocation7 + $0x2f4] sm:$0xf0] }
 0x101   :  { %3430 = vmatpush.bf16.msra.mxu1 %v5865_v4  ;;  %v6032_v4 = vld [vmem:[#allocation7 + $0x888] sm:$0xf]  ;;  %v1220_v13 = vpop.f32.mrf.mxu1 }
 0x102   :  { %3420 = vmatpush.bf16.msra.mxu3 %v5733_v9  ;;  %v5913_v9 = vor.u32 %v6731_v59, %v5912_v58  ;;  %v6033_v17 = vor.u32 %v6761_v5, %v6032_v4  ;;  %v6523_v58 = vld [vmem:[#allocation7 + $0x124] sm:$0xf]  ;;  %v5086_v59 = vld [vmem:[#allocation7 + $0x12c] sm:$0xf0]  ;;  %v5197_v4 = vor.u32 %v6550_v53, %v5194_v54  ;;  %v6580_v5 = vld [vmem:[#allocation7 + $0x2ec] sm:$0xf] }
 0x103   :  { %3454 = vmatpush.bf16.msra.mxu0 %v6081_v11  ;;  %3444 = vmatpush.bf16.msra.mxu2 %v5949_v21  ;;  %v5900_v11 = vld [vmem:[#allocation7 + $0x780] sm:$0xf]  ;;  %v5218_v21 = vld [vmem:[#allocation7 + $0x234] sm:$0xf0]  ;;  %v6538_v53 = vld [vmem:[#allocation7 + $0x19c] sm:$0xf] }
 0x104   :  { %v1235_v29 = vpop.f32.mrf.mxu3  ;;  %v5221_v33 = vor.u32 %v6556_v20, %v5218_v21  ;;  %v6577_v20 = vld [vmem:[#allocation7 + $0x2d4] sm:$0xf]  ;;  %v5302_v21 = vld [vmem:[#allocation7 + $0x2dc] sm:$0xf0]  ;;  %v5146_v54 = vld [vmem:[#allocation7 + $0x1a4] sm:$0xf0] }
 0x105   :  { %3431 = vmatpush.bf16.msra.mxu1 %v5853_v18  ;;  %v1234_v18 = vadd.f32 %v1233_v57, %v1220_v13 }
 0x106   :  { %3421 = vmatpush.bf16.msra.mxu3 %v5721_v22  ;;  %v5125_v22 = vor.u32 %v6532_v61, %v5122_v10  ;;  %v6547_v61 = vld [vmem:[#allocation7 + $0x1e4] sm:$0xf]  ;;  %v5089_v10 = vor.u32 %v6523_v58, %v5086_v59 }
 0x107   :  { %3455 = vmatpush.bf16.msra.mxu0 %v6069_v23  ;;  %3445 = vmatpush.bf16.msra.mxu2 %v5937_v40  ;;  %v5901_v23 = vor.u32 %v6728_v12, %v5900_v11  ;;  %v1373_v28 = vmax.f32 %v1234_v18, 0.0  ;;  %v1259_v40 = vpop.f32.mrf.mxu2  ;;  %v6511_v59 = vld [vmem:[#allocation7 + $0xc4] sm:$0xf] }
 0x109   :  { %3432 = vmatpush.bf16.msra.mxu1 %v5841_v32  ;;  %v6496_v32 = vld [vmem:[#allocation7 + $0x4c] sm:$0xf]  ;;  %v7101_v34 = vpack.c.bf16 %v1373_v28, %v1373_v28  ;;  %v1222_v46 = vpop.f32.mrf.mxu1 }
 0x10a   :  { %3422 = vmatpush.bf16.msra.mxu3 %v5709_v42  ;;  %v6008_v42 = vld [vmem:[#allocation7 + $0x858] sm:$0xf]  ;;  %v5161_v46 = vor.u32 %v6541_v37, %v5158_v39 }
 0x10b   :  { %3456 = vmatpush.bf16.msra.mxu0 %v6057_v47  ;;  %3446 = vmatpush.bf16.msra.mxu2 %v5925_v56  ;;  %v4981_v47 = vor.u32 %v6496_v32, %v4978_v35  ;;  %v6009_v52 = vor.u32 %v6755_v43, %v6008_v42  ;;  %v1246_v56 = vpop.f32.mrf.mxu0  ;;  %v6574_v35 = vld [vmem:[#allocation7 + $0x2bc] sm:$0xf]  ;;  %v5050_v42 = vld [vmem:[#allocation7 + $0xe4] sm:$0xf0] }
 0x10c   :  { %3397 = vmatmul.bf16.vlgmr.msrb.gmra.mxu2 %v7101_v34  ;;  %v1260_v60 = vadd.f32 %v1259_v40, %v1246_v56  ;;  %v5065_v40 = vor.u32 %v6517_v30, %v5062_v25  ;;  %v6595_v25 = vld [vmem:[#allocation7 + $0x364] sm:$0xf] }
 0x10d   :  { %3433 = vmatpush.bf16.msra.mxu1 %v5829_v49  ;;  %v6493_v49 = vld [vmem:[#allocation7 + $0x34] sm:$0xf] }
 0x10e   :  { %3467 = vmatpush.bf16.msrb.mxu3 %v5029_v45  ;;  %v5098_v45 = vld [vmem:[#allocation7 + $0x144] sm:$0xf0]  ;;  %v1374_v7 = vmax.f32 %v1260_v60, 0.0  ;;  %v5038_v60 = vld [vmem:[#allocation7 + $0xcc] sm:$0xf0] }
 0x10f   :  { %3457 = vmatpush.bf16.msra.mxu0 %v6045_v0  ;;  %3447 = vmatpush.bf16.msra.mxu2 %v5913_v9  ;;  %v5101_v57 = vor.u32 %v6526_v44, %v5098_v45  ;;  %v6752_v0 = vld [vmem:[#allocation7 + $0x848] sm:$0xf0]  ;;  %v5182_v9 = vld [vmem:[#allocation7 + $0x1ec] sm:$0xf0]  ;;  %v1261_v11 = vpop.f32.mrf.mxu2 }
 0x110   :  { %v5997_v12 = vor.u32 %v6752_v0, %v5996_v63  ;;  %v7104_v13 = vpack.c.bf16 %v1374_v7, %v1374_v7  ;;  %v5185_v19 = vor.u32 %v6547_v61, %v5182_v9  ;;  %v6604_v45 = vld [vmem:[#allocation7 + $0x3ac] sm:$0xf]  ;;  %v6601_v0 = vld [vmem:[#allocation7 + $0x394] sm:$0xf]  ;;  %v6535_v7 = vld [vmem:[#allocation7 + $0x184] sm:$0xf]  ;;  %v5041_v9 = vor.u32 %v6511_v59, %v5038_v60 }
 0x111   :  { %3434 = vmatpush.bf16.msra.mxu1 %v5817_v1  ;;  %v4969_v1 = vor.u32 %v6493_v49, %v4966_v51  ;;  %v5278_v49 = vld [vmem:[#allocation7 + $0x2ac] sm:$0xf0]  ;;  %v5410_v51 = vld [vmem:[#allocation7 + $0x3b4] sm:$0xf0]  ;;  %v6652_v60 = vld [vmem:[#allocation7 + $0x52c] sm:$0xf] }
 0x112   :  { %3468 = vmatpush.bf16.msrb.mxu3 %v5017_v62  ;;  %v6490_v62 = vld [vmem:[#allocation7 + $0x1c] sm:$0xf]  ;;  %3410 = vmatmul.bf16.vlgmr.msrb.gmra.mxu0 %v7104_v13  ;;  %v5413_v63 = vor.u32 %v6604_v45, %v5410_v51  ;;  %v5134_v61 = vld [vmem:[#allocation7 + $0x18c] sm:$0xf0] }
 0x113   :  { %3458 = vmatpush.bf16.msra.mxu0 %v6033_v17  ;;  %3448 = vmatpush.bf16.msra.mxu2 %v5901_v23  ;;  %v5317_v17 = vor.u32 %v6580_v5, %v5314_v6  ;;  %v4957_v18 = vor.u32 %v6490_v62, %v4954_v3  ;;  %v4942_v23 = vld [vmem:[#allocation7 + $0xc] sm:$0xf0]  ;;  %v1248_v28 = vpop.f32.mrf.mxu0  ;;  %v6568_v3 = vld [vmem:[#allocation7 + $0x28c] sm:$0xf]  ;;  %v5398_v6 = vld [vmem:[#allocation7 + $0x39c] sm:$0xf0] }
 0x114   :  { %v6562_v28 = vld [vmem:[#allocation7 + $0x25c] sm:$0xf]  ;;  %v5470_v59 = vld [vmem:[#allocation7 + $0x42c] sm:$0xf0] }
 0x115   :  { %3435 = vmatpush.bf16.msra.mxu1 %v5805_v2  ;;  %v6487_v2 = vld [vmem:[#allocation7 + $0x4] sm:$0xf] }
 0x116   :  { %3469 = vmatpush.bf16.msrb.mxu3 %v5005_v14  ;;  %v6520_v14 = vld [vmem:[#allocation7 + $0x10c] sm:$0xf]  ;;  %v4945_v32 = vor.u32 %v6487_v2, %v4942_v23  ;;  %v5386_v2 = vld [vmem:[#allocation7 + $0x384] sm:$0xf0]  ;;  %v5506_v23 = vld [vmem:[#allocation7 + $0x474] sm:$0xf0] }
 0x117   :  { %3493 = vmatpush.bf16.msrb.mxu2 %v5221_v33  ;;  %3459 = vmatpush.bf16.msra.mxu0 %v6021_v36  ;;  %v5077_v29 = vor.u32 %v6520_v14, %v5074_v15  ;;  %v5173_v33 = vor.u32 %v6544_v24, %v5170_v26  ;;  %v5290_v36 = vld [vmem:[#allocation7 + $0x2c4] sm:$0xf0]  ;;  %v5137_v14 = vor.u32 %v6535_v7, %v5134_v61  ;;  %v6565_v15 = vld [vmem:[#allocation7 + $0x274] sm:$0xf]  ;;  %v6616_v61 = vld [vmem:[#allocation7 + $0x40c] sm:$0xf] }
 0x118   :  { %v5293_v43 = vor.u32 %v6574_v35, %v5290_v36  ;;  %v6625_v35 = vld [vmem:[#allocation7 + $0x454] sm:$0xf]  ;;  %v5494_v36 = vld [vmem:[#allocation7 + $0x45c] sm:$0xf0] }
 0x119   :  { %3480 = vmatpush.bf16.msrb.mxu1 %v5125_v22  ;;  %v1285_v22 = vpop.f32.mrf.mxu1 }
 0x11a   :  { %3470 = vmatpush.bf16.msrb.mxu3 %v4993_v31  ;;  %v5305_v31 = vor.u32 %v6577_v20, %v5302_v21 }
 0x11b   :  { %3494 = vmatpush.bf16.msrb.mxu2 %v5209_v50  ;;  %3460 = vmatpush.bf16.msra.mxu0 %v6009_v52 }
 0x11c   :  { %v1272_v44 = vpop.f32.mrf.mxu3 }
 0x11d   :  { %3481 = vmatpush.bf16.msrb.mxu1 %v5113_v41  ;;  %v6514_v41 = vld [vmem:[#allocation7 + $0xdc] sm:$0xf]  ;;  %v1286_v50 = vadd.f32 %v1285_v22, %v1272_v44  ;;  %v6628_v22 = vld [vmem:[#allocation7 + $0x46c] sm:$0xf]  ;;  %v5362_v44 = vld [vmem:[#allocation7 + $0x354] sm:$0xf0] }
 0x11e   :  { %3471 = vmatpush.bf16.msrb.mxu3 %v4981_v47  ;;  %v6571_v47 = vld [vmem:[#allocation7 + $0x2a4] sm:$0xf]  ;;  %v5053_v56 = vor.u32 %v6514_v41, %v5050_v42  ;;  %v1311_v58 = vpop.f32.mrf.mxu0  ;;  %v5230_v41 = vld [vmem:[#allocation7 + $0x24c] sm:$0xf0] }
 0x11f   :  { %3495 = vmatpush.bf16.msrb.mxu2 %v5197_v4  ;;  %3461 = vmatpush.bf16.msra.mxu0 %v5997_v12  ;;  %v5281_v62 = vor.u32 %v6571_v47, %v5278_v49  ;;  %v5266_v4 = vld [vmem:[#allocation7 + $0x294] sm:$0xf0]  ;;  %v5401_v12 = vor.u32 %v6601_v0, %v5398_v6  ;;  %v6622_v47 = vld [vmem:[#allocation7 + $0x43c] sm:$0xf]  ;;  %v5482_v49 = vld [vmem:[#allocation7 + $0x444] sm:$0xf0] }
 0x121   :  { %3482 = vmatpush.bf16.msrb.mxu1 %v5101_v57  ;;  %v1287_v52 = vpop.f32.mrf.mxu1  ;;  %v1375_v57 = vmax.f32 %v1286_v50, 0.0 }
 0x122   :  { %3472 = vmatpush.bf16.msrb.mxu3 %v4969_v1  ;;  %v5149_v1 = vor.u32 %v6538_v53, %v5146_v54  ;;  %v6589_v52 = vld [vmem:[#allocation7 + $0x334] sm:$0xf]  ;;  %v5350_v53 = vld [vmem:[#allocation7 + $0x33c] sm:$0xf0] }
 0x123   :  { %3506 = vmatpush.bf16.msrb.mxu0 %v5317_v17  ;;  %3496 = vmatpush.bf16.msrb.mxu2 %v5185_v19  ;;  %v7107_v5 = vpack.c.bf16 %v1375_v57, %v1375_v57  ;;  %v5254_v17 = vld [vmem:[#allocation7 + $0x27c] sm:$0xf0]  ;;  %v6619_v57 = vld [vmem:[#allocation7 + $0x424] sm:$0xf] }
 0x124   :  { %v1274_v11 = vpop.f32.mrf.mxu3  ;;  %v5257_v24 = vor.u32 %v6565_v15, %v5254_v17  ;;  %v5473_v6 = vor.u32 %v6619_v57, %v5470_v59  ;;  %v6583_v17 = vld [vmem:[#allocation7 + $0x304] sm:$0xf]  ;;  %v5770_v57 = vld [vmem:[#allocation7 + $0x684] sm:$0xf0]  ;;  %v5422_v59 = vld [vmem:[#allocation7 + $0x3cc] sm:$0xf0] }
 0x125   :  { %3483 = vmatpush.bf16.msrb.mxu1 %v5089_v10  ;;  %3423 = vmatmul.bf16.vlgmr.msra.gmra.mxu3 %v7107_v5  ;;  %v5269_v10 = vor.u32 %v6568_v3, %v5266_v4  ;;  %v6586_v3 = vld [vmem:[#allocation7 + $0x31c] sm:$0xf]  ;;  %v5338_v4 = vld [vmem:[#allocation7 + $0x324] sm:$0xf0]  ;;  %v5458_v11 = vld [vmem:[#allocation7 + $0x414] sm:$0xf0] }
 0x126   :  { %3473 = vmatpush.bf16.msrb.mxu3 %v4957_v18  ;;  %v6598_v18 = vld [vmem:[#allocation7 + $0x37c] sm:$0xf]  ;;  %v1313_v21 = vpop.f32.mrf.mxu0  ;;  %v5341_v15 = vor.u32 %v6586_v3, %v5338_v4  ;;  %v5890_v3 = vld [vmem:[#allocation7 + $0x774] sm:$0xf0] }
 0x127   :  { %3507 = vmatpush.bf16.msrb.mxu0 %v5305_v31  ;;  %3497 = vmatpush.bf16.msrb.mxu2 %v5173_v33  ;;  %v1298_v19 = vpop.f32.mrf.mxu2  ;;  %v5389_v26 = vor.u32 %v6598_v18, %v5386_v2  ;;  %v5374_v31 = vld [vmem:[#allocation7 + $0x36c] sm:$0xf0]  ;;  %v6700_v21 = vld [vmem:[#allocation7 + $0x6ac] sm:$0xf] }
 0x128   :  { %v1312_v20 = vadd.f32 %v1311_v58, %v1298_v19  ;;  %v5377_v39 = vor.u32 %v6595_v25, %v5374_v31  ;;  %v5326_v18 = vld [vmem:[#allocation7 + $0x30c] sm:$0xf0]  ;;  %v5461_v19 = vor.u32 %v6616_v61, %v5458_v11  ;;  %v6691_v11 = vld [vmem:[#allocation7 + $0x664] sm:$0xf] }
 0x129   :  { %3484 = vmatpush.bf16.msrb.mxu1 %v5077_v29  ;;  %v5242_v29 = vld [vmem:[#allocation7 + $0x264] sm:$0xf0] }
 0x12a   :  { %3474 = vmatpush.bf16.msrb.mxu3 %v4945_v32  ;;  %v1376_v30 = vmax.f32 %v1312_v20, 0.0  ;;  %v5509_v32 = vor.u32 %v6628_v22, %v5506_v23  ;;  %v5245_v37 = vor.u32 %v6562_v28, %v5242_v29  ;;  %v5794_v22 = vld [vmem:[#allocation7 + $0x6b4] sm:$0xf0]  ;;  %v6613_v23 = vld [vmem:[#allocation7 + $0x3f4] sm:$0xf] }
 0x12b   :  { %3508 = vmatpush.bf16.msrb.mxu0 %v5293_v43  ;;  %3498 = vmatpush.bf16.msrb.mxu2 %v5161_v46  ;;  %v6592_v43 = vld [vmem:[#allocation7 + $0x34c] sm:$0xf]  ;;  %v5497_v46 = vor.u32 %v6625_v35, %v5494_v36  ;;  %v5578_v28 = vld [vmem:[#allocation7 + $0x504] sm:$0xf0]  ;;  %v5797_v31 = vor.u32 %v6700_v21, %v5794_v22  ;;  %v5698_v35 = vld [vmem:[#allocation7 + $0x5f4] sm:$0xf0] }
 0x12c   :  { %v7110_v33 = vpack.c.bf16 %v1376_v30, %v1376_v30  ;;  %v5365_v51 = vor.u32 %v6592_v43, %v5362_v44  ;;  %v5329_v30 = vor.u32 %v6583_v17, %v5326_v18  ;;  %v6697_v36 = vld [vmem:[#allocation7 + $0x694] sm:$0xf]  ;;  %v5542_v17 = vld [vmem:[#allocation7 + $0x4bc] sm:$0xf0]  ;;  %v6667_v21 = vld [vmem:[#allocation7 + $0x5a4] sm:$0xf] }
 0x12d   :  { %3485 = vmatpush.bf16.msrb.mxu1 %v5065_v40  ;;  %v6559_v40 = vld [vmem:[#allocation7 + $0x244] sm:$0xf]  ;;  %v5662_v22 = vld [vmem:[#allocation7 + $0x5ac] sm:$0xf0] }
 0x12e   :  { %3519 = vmatpush.bf16.msra.mxu3 %v5413_v63  ;;  %3436 = vmatmul.bf16.vlgmr.msra.gmra.mxu1 %v7110_v33  ;;  %v5233_v50 = vor.u32 %v6559_v40, %v5230_v41  ;;  %v5353_v63 = vor.u32 %v6589_v52, %v5350_v53  ;;  %v5782_v40 = vld [vmem:[#allocation7 + $0x69c] sm:$0xf0]  ;;  %v6610_v41 = vld [vmem:[#allocation7 + $0x3dc] sm:$0xf] }
 0x12f   :  { %3509 = vmatpush.bf16.msrb.mxu0 %v5281_v62  ;;  %3499 = vmatpush.bf16.msrb.mxu2 %v5149_v1  ;;  %v1300_v45 = vpop.f32.mrf.mxu2  ;;  %v5602_v62 = vld [vmem:[#allocation7 + $0x534] sm:$0xf0]  ;;  %v5686_v52 = vld [vmem:[#allocation7 + $0x5dc] sm:$0xf0] }
 0x130   :  { %v1337_v42 = vpop.f32.mrf.mxu3  ;;  %v5605_v7 = vor.u32 %v6652_v60, %v5602_v62  ;;  %v6643_v45 = vld [vmem:[#allocation7 + $0x4e4] sm:$0xf]  ;;  %v6640_v60 = vld [vmem:[#allocation7 + $0x4cc] sm:$0xf]  ;;  %v5554_v62 = vld [vmem:[#allocation7 + $0x4d4] sm:$0xf0] }
 0x131   :  { %3486 = vmatpush.bf16.msrb.mxu1 %v5053_v56  ;;  %v5485_v56 = vor.u32 %v6622_v47, %v5482_v49 }
 0x132   :  { %3520 = vmatpush.bf16.msra.mxu3 %v5401_v12  ;;  %v6649_v12 = vld [vmem:[#allocation7 + $0x514] sm:$0xf] }
 0x133   :  { %3510 = vmatpush.bf16.msrb.mxu0 %v5269_v10  ;;  %3500 = vmatpush.bf16.msrb.mxu2 %v5137_v14  ;;  %v5590_v14 = vld [vmem:[#allocation7 + $0x51c] sm:$0xf0] }
 0x134   :  { %v5593_v20 = vor.u32 %v6649_v12, %v5590_v14  ;;  %v5758_v12 = vld [vmem:[#allocation7 + $0x66c] sm:$0xf0] }
 0x135   :  { %3487 = vmatpush.bf16.msrb.mxu1 %v5041_v9  ;;  %v1324_v54 = vpop.f32.mrf.mxu1  ;;  %3475 = vmatmul.bf16.vlgmr.msrb.gmra.mxu3 %v7083_v27 }
 0x136   :  { %3521 = vmatpush.bf16.msra.mxu3 %v5389_v26  ;;  %v1338_v58 = vadd.f32 %v1337_v42, %v1324_v54  ;;  %v6646_v26 = vld [vmem:[#allocation7 + $0x4fc] sm:$0xf]  ;;  %v5434_v42 = vld [vmem:[#allocation7 + $0x3e4] sm:$0xf0] }
 0x137   :  { %3511 = vmatpush.bf16.msrb.mxu0 %v5257_v24  ;;  %v5446_v24 = vld [vmem:[#allocation7 + $0x3fc] sm:$0xf0]  ;;  %v5437_v53 = vor.u32 %v6610_v41, %v5434_v42 }
 0x138   :  { %v1377_v0 = vmax.f32 %v1338_v58, 0.0  ;;  %v1339_v1 = vpop.f32.mrf.mxu3  ;;  %v6607_v58 = vld [vmem:[#allocation7 + $0x3c4] sm:$0xf]  ;;  %v5734_v41 = vld [vmem:[#allocation7 + $0x63c] sm:$0xf0] }
 0x139   :  { %3532 = vmatpush.bf16.msra.mxu1 %v5509_v32  ;;  %v1363_v10 = vpop.f32.mrf.mxu2  ;;  %v6676_v32 = vld [vmem:[#allocation7 + $0x5ec] sm:$0xf]  ;;  %v5425_v61 = vor.u32 %v6607_v58, %v5422_v59  ;;  %v5638_v58 = vld [vmem:[#allocation7 + $0x57c] sm:$0xf0] }
 0x13a   :  { %3522 = vmatpush.bf16.msra.mxu3 %v5377_v39  ;;  %v7114_v9 = vpack.c.bf16 %v1377_v0, %v1377_v0  ;;  %v5581_v39 = vor.u32 %v6646_v26, %v5578_v28  ;;  %v5701_v47 = vor.u32 %v6676_v32, %v5698_v35  ;;  %v6724_v1 = vld [vmem:[#allocation7 + $0x76c] sm:$0xf]  ;;  %v5746_v26 = vld [vmem:[#allocation7 + $0x654] sm:$0xf0]  ;;  %v5866_v32 = vld [vmem:[#allocation7 + $0x744] sm:$0xf0] }
 0x13b   :  { %3512 = vmatpush.bf16.msrb.mxu0 %v5245_v37  ;;  %v5449_v37 = vor.u32 %v6613_v23, %v5446_v24  ;;  %v5893_v14 = vor.u32 %v6724_v1, %v5890_v3  ;;  %v6688_v24 = vld [vmem:[#allocation7 + $0x64c] sm:$0xf] }
 0x13c   :  { %3449 = vmatmul.bf16.vlgmr.msra.gmra.mxu2 %v7114_v9  ;;  %v5749_v35 = vor.u32 %v6688_v24, %v5746_v26  ;;  %v6712_v1 = vld [vmem:[#allocation7 + $0x70c] sm:$0xf]  ;;  %v6742_v24 = vld [vmem:[#allocation7 + $0x7fc] sm:$0xf]  ;;  %v5962_v26 = vld [vmem:[#allocation7 + $0x804] sm:$0xf0] }
 0x13d   :  { %3533 = vmatpush.bf16.msra.mxu1 %v5497_v46  ;;  %3545 = vmatpush.bf16.msra.mxu2 %v5605_v7  ;;  %v1326_v2 = vpop.f32.mrf.mxu1  ;;  %v5566_v46 = vld [vmem:[#allocation7 + $0x4ec] sm:$0xf0]  ;;  %v5674_v7 = vld [vmem:[#allocation7 + $0x5c4] sm:$0xf0] }
 0x13e   :  { %3523 = vmatpush.bf16.msra.mxu3 %v5365_v51  ;;  %3488 = vmatmul.bf16.vlgmr.msrb.gmra.mxu1 %v7086_v55  ;;  %v6673_v51 = vld [vmem:[#allocation7 + $0x5d4] sm:$0xf]  ;;  %v5569_v54 = vor.u32 %v6643_v45, %v5566_v46  ;;  %v6631_v45 = vld [vmem:[#allocation7 + $0x484] sm:$0xf]  ;;  %v5518_v46 = vld [vmem:[#allocation7 + $0x48c] sm:$0xf0] }
 0x13f   :  { %3513 = vmatpush.bf16.msrb.mxu0 %v5233_v50  ;;  %v1350_v29 = vpop.f32.mrf.mxu0  ;;  %v5785_v50 = vor.u32 %v6697_v36, %v5782_v40  ;;  %v5689_v0 = vor.u32 %v6673_v51, %v5686_v52  ;;  %v6721_v2 = vld [vmem:[#allocation7 + $0x754] sm:$0xf]  ;;  %v6664_v36 = vld [vmem:[#allocation7 + $0x58c] sm:$0xf]  ;;  %v5854_v51 = vld [vmem:[#allocation7 + $0x72c] sm:$0xf0]  ;;  %v5521_v59 = vor.u32 %v6631_v45, %v5518_v46 }
 0x140   :  { %v1364_v25 = vadd.f32 %v1363_v10, %v1350_v29  ;;  %v5557_v10 = vor.u32 %v6640_v60, %v5554_v62  ;;  %v6634_v29 = vld [vmem:[#allocation7 + $0x49c] sm:$0xf]  ;;  %v6685_v40 = vld [vmem:[#allocation7 + $0x634] sm:$0xf]  ;;  %v6748_v52 = vld [vmem:[#allocation7 + $0x82c] sm:$0xf] }
 0x141   :  { %3534 = vmatpush.bf16.msra.mxu1 %v5485_v56  ;;  %3546 = vmatpush.bf16.msra.mxu2 %v5593_v20  ;;  %v1365_v44 = vpop.f32.mrf.mxu2  ;;  %v6694_v56 = vld [vmem:[#allocation7 + $0x67c] sm:$0xf]  ;;  %v5761_v20 = vor.u32 %v6691_v11, %v5758_v12  ;;  %v5722_v62 = vld [vmem:[#allocation7 + $0x624] sm:$0xf0]  ;;  %v6679_v12 = vld [vmem:[#allocation7 + $0x604] sm:$0xf] }
 0x142   :  { %3524 = vmatpush.bf16.msra.mxu3 %v5353_v63  ;;  %v1378_v43 = vmax.f32 %v1364_v25, 0.0  ;;  %v5773_v4 = vor.u32 %v6694_v56, %v5770_v57  ;;  %v5665_v25 = vor.u32 %v6667_v21, %v5662_v22  ;;  %v5737_v56 = vor.u32 %v6685_v40, %v5734_v41  ;;  %v6661_v57 = vld [vmem:[#allocation7 + $0x574] sm:$0xf]  ;;  %v6682_v60 = vld [vmem:[#allocation7 + $0x61c] sm:$0xf] }
 0x143   :  { %v5641_v3 = vor.u32 %v6661_v57, %v5638_v58  ;;  %v5626_v11 = vld [vmem:[#allocation7 + $0x564] sm:$0xf0]  ;;  %v6709_v21 = vld [vmem:[#allocation7 + $0x6f4] sm:$0xf]  ;;  %v6706_v40 = vld [vmem:[#allocation7 + $0x6dc] sm:$0xf] }
 0x144   :  { %v7118_v49 = vpack.c.bf16 %v1378_v43, %v1378_v43  ;;  %v6703_v57 = vld [vmem:[#allocation7 + $0x6c4] sm:$0xf] }
 0x145   :  { %3535 = vmatpush.bf16.msra.mxu1 %v5473_v6  ;;  %3547 = vmatpush.bf16.msra.mxu2 %v5581_v39  ;;  %v6670_v6 = vld [vmem:[#allocation7 + $0x5bc] sm:$0xf] }
 0x146   :  { %3525 = vmatpush.bf16.msra.mxu3 %v5341_v15  ;;  %3462 = vmatmul.bf16.vlgmr.msra.gmra.mxu0 %v7118_v49  ;;  %v6637_v15 = vld [vmem:[#allocation7 + $0x4b4] sm:$0xf]  ;;  %v5677_v18 = vor.u32 %v6670_v6, %v5674_v7  ;;  %v5974_v7 = vld [vmem:[#allocation7 + $0x81c] sm:$0xf0] }
 0x147   :  { %3558 = vmatpush.bf16.msra.mxu0 %v5701_v47  ;;  %v1352_v63 = vpop.f32.mrf.mxu0  ;;  %v5545_v23 = vor.u32 %v6637_v15, %v5542_v17  ;;  %v6715_v47 = vld [vmem:[#allocation7 + $0x724] sm:$0xf]  ;;  %v6745_v6 = vld [vmem:[#allocation7 + $0x814] sm:$0xf] }
 0x148   :  { %v5857_v63 = vor.u32 %v6715_v47, %v5854_v51  ;;  %v6769_v47 = vld [vmem:[#allocation7 + $0x8d4] sm:$0xf] }
 0x149   :  { %3536 = vmatpush.bf16.msra.mxu1 %v5461_v19  ;;  %3548 = vmatpush.bf16.msra.mxu2 %v5569_v54  ;;  %v5878_v19 = vld [vmem:[#allocation7 + $0x75c] sm:$0xf0] }
 0x14a   :  { %3526 = vmatpush.bf16.msra.mxu3 %v5329_v30  ;;  %v5881_v28 = vor.u32 %v6721_v2, %v5878_v19  ;;  %v5530_v30 = vld [vmem:[#allocation7 + $0x4a4] sm:$0xf0]  ;;  %v5977_v2 = vor.u32 %v6745_v6, %v5974_v7  ;;  %v5032_v19 = vld [vmem:[#allocation7 + $0xb0] sm:$0xf]  ;;  %v6766_v6 = vld [vmem:[#allocation7 + $0x8bc] sm:$0xf] }
 0x14b   :  { %3559 = vmatpush.bf16.msra.mxu0 %v5689_v0  ;;  %v5533_v39 = vor.u32 %v6634_v29, %v5530_v30  ;;  %v6655_v29 = vld [vmem:[#allocation7 + $0x544] sm:$0xf]  ;;  %v5614_v30 = vld [vmem:[#allocation7 + $0x54c] sm:$0xf0]  ;;  %v6058_v7 = vld [vmem:[#allocation7 + $0x8c4] sm:$0xf0] }
 0x14c   :  { %3501 = vmatmul.bf16.vlgmr.msrb.gmra.mxu2 %v7089_v38  ;;  %v5617_v41 = vor.u32 %v6655_v29, %v5614_v30  ;;  %v6730_v30 = vld [vmem:[#allocation7 + $0x79c] sm:$0xf] }
 0x14d   :  { %3537 = vmatpush.bf16.msra.mxu1 %v5449_v37  ;;  %3527 = vmatmul.bf16.vlgmr.msra.gmra.mxu3 %v7095_v8  ;;  %v5650_v37 = vld [vmem:[#allocation7 + $0x594] sm:$0xf0] }
 0x14e   :  { %3571 = vmatpush.bf16.msrb.mxu3 %v5797_v31  ;;  %3549 = vmatpush.bf16.msra.mxu2 %v5557_v10  ;;  %v6718_v31 = vld [vmem:[#allocation7 + $0x73c] sm:$0xf] }
 0x14f   :  { %3560 = vmatpush.bf16.msra.mxu0 %v5677_v18  ;;  %v5869_v43 = vor.u32 %v6718_v31, %v5866_v32  ;;  %v6658_v10 = vld [vmem:[#allocation7 + $0x55c] sm:$0xf]  ;;  %v6772_v31 = vld [vmem:[#allocation7 + $0x8ec] sm:$0xf]  ;;  %v6082_v32 = vld [vmem:[#allocation7 + $0x8f4] sm:$0xf0] }
 0x150   :  { %v3320_v42 = vpop.f32.mrf.mxu3  ;;  %v5629_v22 = vor.u32 %v6658_v10, %v5626_v11  ;;  %v6085_v45 = vor.u32 %v6772_v31, %v6082_v32  ;;  %v4996_v11 = vld [vmem:[#allocation7 + $0x68] sm:$0xf] }
 0x151   :  { %3538 = vmatpush.bf16.msra.mxu1 %v5437_v53  ;;  %v5986_v53 = vld [vmem:[#allocation7 + $0x834] sm:$0xf0] }
 0x152   :  { %3572 = vmatpush.bf16.msrb.mxu3 %v5785_v50  ;;  %3550 = vmatpush.bf16.msra.mxu2 %v5545_v23  ;;  %v5653_v50 = vor.u32 %v6664_v36, %v5650_v37  ;;  %v5989_v0 = vor.u32 %v6748_v52, %v5986_v53  ;;  %v5830_v23 = vld [vmem:[#allocation7 + $0x6fc] sm:$0xf0]  ;;  %v5965_v36 = vor.u32 %v6742_v24, %v5962_v26  ;;  %v5020_v37 = vld [vmem:[#allocation7 + $0x98] sm:$0xf]  ;;  %v4984_v26 = vld [vmem:[#allocation7 + $0x50] sm:$0xf] }
 0x153   :  { %3561 = vmatpush.bf16.msra.mxu0 %v5665_v25  ;;  %v5008_v53 = vld [vmem:[#allocation7 + $0x80] sm:$0xf] }
 0x155   :  { %3539 = vmatpush.bf16.msra.mxu1 %v5425_v61  ;;  %v3333_v44 = vpop.f32.mrf.mxu1  ;;  %v5725_v61 = vor.u32 %v6682_v60, %v5722_v62  ;;  %v6736_v60 = vld [vmem:[#allocation7 + $0x7cc] sm:$0xf]  ;;  %v5938_v62 = vld [vmem:[#allocation7 + $0x7d4] sm:$0xf0] }
 0x156   :  { %3573 = vmatpush.bf16.msrb.mxu3 %v5773_v4  ;;  %v7124_v54 = vadd.f32 %v3333_v44, %v3320_v42  ;;  %3551 = vmatpush.bf16.msra.mxu2 %v5533_v39  ;;  %v5842_v4 = vld [vmem:[#allocation7 + $0x714] sm:$0xf0]  ;;  %v6507_v39 = vld [vmem:[#allocation7 + $0xa0] sm:$0xf0]  ;;  %v5818_v42 = vld [vmem:[#allocation7 + $0x6e4] sm:$0xf0]  ;;  %v5941_v10 = vor.u32 %v6736_v60, %v5938_v62 }
 0x157   :  { %3514 = vmatmul.bf16.vlgmr.msrb.gmra.mxu0 %v7092_v16  ;;  %v5845_v17 = vor.u32 %v6712_v1, %v5842_v4  ;;  %v5950_v44 = vld [vmem:[#allocation7 + $0x7ec] sm:$0xf0]  ;;  %v5021_v46 = vor.u32 %v6507_v39, %v5020_v37  ;;  %v5821_v51 = vor.u32 %v6706_v40, %v5818_v42  ;;  %v6760_v39 = vld [vmem:[#allocation7 + $0x88c] sm:$0xf]  ;;  %v6034_v40 = vld [vmem:[#allocation7 + $0x894] sm:$0xf0] }
 0x158   :  { %3540 = vmatmul.bf16.vlgmr.msra.gmra.mxu1 %v7098_v48  ;;  %3562 = vmatpush.bf16.msra.mxu0 %v5653_v50  ;;  %v3322_v15 = vpop.f32.mrf.mxu3  ;;  %v6070_v50 = vld [vmem:[#allocation7 + $0x8dc] sm:$0xf0]  ;;  %v5128_v1 = vld [vmem:[#allocation7 + $0x170] sm:$0xf]  ;;  %v4972_v42 = vld [vmem:[#allocation7 + $0x38] sm:$0xf] }
 0x159   :  { %3584 = vmatpush.bf16.msrb.mxu1 %v5893_v14  ;;  %v5710_v14 = vld [vmem:[#allocation7 + $0x60c] sm:$0xf0]  ;;  %v4960_v62 = vld [vmem:[#allocation7 + $0x20] sm:$0xf] }
 0x15a   :  { %3574 = vmatpush.bf16.msrb.mxu3 %v5761_v20  ;;  %3552 = vmatpush.bf16.msra.mxu2 %v5521_v59  ;;  %v6510_v20 = vld [vmem:[#allocation7 + $0xb8] sm:$0xf0]  ;;  %v5806_v59 = vld [vmem:[#allocation7 + $0x6cc] sm:$0xf0] }
 0x15b   :  { %v5033_v25 = vor.u32 %v6510_v20, %v5032_v19  ;;  %v5116_v19 = vld [vmem:[#allocation7 + $0x158] sm:$0xf]  ;;  %v6531_v20 = vld [vmem:[#allocation7 + $0x160] sm:$0xf0] }
 0x15c   :  { %3563 = vmatpush.bf16.msra.mxu0 %v5641_v3  ;;  %v3346_v58 = vpop.f32.mrf.mxu2  ;;  %v6534_v3 = vld [vmem:[#allocation7 + $0x178] sm:$0xf0]  ;;  %v5117_v29 = vor.u32 %v6531_v20, %v5116_v19  ;;  %v5068_v20 = vld [vmem:[#allocation7 + $0xf8] sm:$0xf] }
 0x15d   :  { %3585 = vmatpush.bf16.msrb.mxu1 %v5881_v28  ;;  %v3335_v18 = vpop.f32.mrf.mxu1  ;;  %3553 = vmatmul.bf16.vlgmr.msra.gmra.mxu2 %v7101_v34  ;;  %v5713_v28 = vor.u32 %v6679_v12, %v5710_v14  ;;  %v6501_v12 = vld [vmem:[#allocation7 + $0x70] sm:$0xf0]  ;;  %v5129_v15 = vor.u32 %v6534_v3, %v5128_v1  ;;  %v5080_v3 = vld [vmem:[#allocation7 + $0x110] sm:$0xf]  ;;  %v6606_v19 = vld [vmem:[#allocation7 + $0x3b8] sm:$0xf0] }
 0x15e   :  { %3575 = vmatpush.bf16.msrb.mxu3 %v5749_v35  ;;  %3597 = vmatpush.bf16.msrb.mxu2 %v5989_v0  ;;  %v5833_v35 = vor.u32 %v6709_v21, %v5830_v23  ;;  %v6073_v0 = vor.u32 %v6769_v47, %v6070_v50  ;;  %v4997_v21 = vor.u32 %v6501_v12, %v4996_v11  ;;  %v6046_v23 = vld [vmem:[#allocation7 + $0x8ac] sm:$0xf0]  ;;  %v5092_v47 = vld [vmem:[#allocation7 + $0x128] sm:$0xf]  ;;  %v6754_v11 = vld [vmem:[#allocation7 + $0x85c] sm:$0xf] }
 0x15f   :  { %v3359_v14 = vpop.f32.mrf.mxu0  ;;  %v6010_v12 = vld [vmem:[#allocation7 + $0x864] sm:$0xf0] }
 0x160   :  { %3564 = vmatpush.bf16.msra.mxu0 %v5629_v22  ;;  %v6763_v22 = vld [vmem:[#allocation7 + $0x8a4] sm:$0xf] }
 0x161   :  { %3586 = vmatpush.bf16.msrb.mxu1 %v5869_v43  ;;  %v6739_v43 = vld [vmem:[#allocation7 + $0x7e4] sm:$0xf]  ;;  %v6049_v32 = vor.u32 %v6763_v22, %v6046_v23  ;;  %v5200_v23 = vld [vmem:[#allocation7 + $0x200] sm:$0xf] }
 0x162   :  { %3576 = vmatpush.bf16.msrb.mxu3 %v5737_v56  ;;  %3598 = vmatpush.bf16.msrb.mxu2 %v5977_v2  ;;  %v5953_v52 = vor.u32 %v6739_v43, %v5950_v44  ;;  %v6504_v56 = vld [vmem:[#allocation7 + $0x88] sm:$0xf0]  ;;  %v6061_v2 = vor.u32 %v6766_v6, %v6058_v7  ;;  %v6495_v43 = vld [vmem:[#allocation7 + $0x40] sm:$0xf0]  ;;  %v6522_v6 = vld [vmem:[#allocation7 + $0x118] sm:$0xf0] }
 0x163   :  { %v5009_v4 = vor.u32 %v6504_v56, %v5008_v53  ;;  %v5224_v53 = vld [vmem:[#allocation7 + $0x230] sm:$0xf]  ;;  %v6558_v56 = vld [vmem:[#allocation7 + $0x238] sm:$0xf0]  ;;  %v5212_v7 = vld [vmem:[#allocation7 + $0x218] sm:$0xf] }
 0x164   :  { %3565 = vmatpush.bf16.msra.mxu0 %v5617_v41  ;;  %v3348_v31 = vpop.f32.mrf.mxu2  ;;  %v5225_v1 = vor.u32 %v6558_v56, %v5224_v53  ;;  %v6519_v22 = vld [vmem:[#allocation7 + $0x100] sm:$0xf0]  ;;  %v5392_v56 = vld [vmem:[#allocation7 + $0x380] sm:$0xf] }
 0x165   :  { %3587 = vmatpush.bf16.msrb.mxu1 %v5857_v63  ;;  %v3347_v63 = vadd.f32 %v3346_v58, %v7124_v54  ;;  %v5926_v54 = vld [vmem:[#allocation7 + $0x7bc] sm:$0xf0]  ;;  %v6757_v58 = vld [vmem:[#allocation7 + $0x874] sm:$0xf]  ;;  %v6582_v31 = vld [vmem:[#allocation7 + $0x2f8] sm:$0xf0] }
 0x166   :  { %3577 = vmatpush.bf16.msrb.mxu3 %v5725_v61  ;;  %3599 = vmatpush.bf16.msrb.mxu2 %v5965_v36  ;;  %v5809_v61 = vor.u32 %v6703_v57, %v5806_v59  ;;  %v6528_v36 = vld [vmem:[#allocation7 + $0x148] sm:$0xf0]  ;;  %v4973_v57 = vor.u32 %v6495_v43, %v4972_v42  ;;  %v6022_v59 = vld [vmem:[#allocation7 + $0x87c] sm:$0xf0] }
 0x167   :  { %3566 = vmatmul.bf16.vlgmr.msra.gmra.mxu0 %v7104_v13  ;;  %v7131_v18 = vadd.f32 %v3359_v14, %v3347_v63  ;;  %v3361_v50 = vpop.f32.mrf.mxu0  ;;  %v6492_v63 = vld [vmem:[#allocation7 + $0x28] sm:$0xf0]  ;;  %v4948_v14 = vld [vmem:[#allocation7 + $0x8] sm:$0xf]  ;;  %v5056_v42 = vld [vmem:[#allocation7 + $0xe0] sm:$0xf] }
 0x168   :  { %3610 = vmatpush.bf16.msrb.mxu0 %v6085_v45  ;;  %v6727_v45 = vld [vmem:[#allocation7 + $0x784] sm:$0xf]  ;;  %v6516_v43 = vld [vmem:[#allocation7 + $0xe8] sm:$0xf0]  ;;  %v5308_v50 = vld [vmem:[#allocation7 + $0x2d8] sm:$0xf] }
 0x169   :  { %3588 = vmatpush.bf16.msrb.mxu1 %v5845_v17  ;;  %v6733_v17 = vld [vmem:[#allocation7 + $0x7b4] sm:$0xf]  ;;  %v5057_v53 = vor.u32 %v6516_v43, %v5056_v42 }
 0x16a   :  { %3578 = vmatpush.bf16.msrb.mxu3 %v5713_v28  ;;  %3600 = vmatpush.bf16.msrb.mxu2 %v5953_v52  ;;  %v5929_v24 = vor.u32 %v6733_v17, %v5926_v54  ;;  %v6498_v28 = vld [vmem:[#allocation7 + $0x58] sm:$0xf0]  ;;  %v6525_v52 = vld [vmem:[#allocation7 + $0x130] sm:$0xf0]  ;;  %v5081_v17 = vor.u32 %v6522_v6, %v5080_v3  ;;  %v5296_v6 = vld [vmem:[#allocation7 + $0x2c0] sm:$0xf] }
 0x16b   :  { %v4985_v37 = vor.u32 %v6498_v28, %v4984_v26  ;;  %v6751_v28 = vld [vmem:[#allocation7 + $0x844] sm:$0xf]  ;;  %v6630_v3 = vld [vmem:[#allocation7 + $0x478] sm:$0xf0] }
 0x16c   :  { %3611 = vmatpush.bf16.msrb.mxu0 %v6073_v0  ;;  %v5093_v0 = vor.u32 %v6525_v52, %v5092_v47 }
 0x16d   :  { %3589 = vmatpush.bf16.msrb.mxu1 %v5833_v35  ;;  %3579 = vmatmul.bf16.vlgmr.msrb.gmra.mxu3 %v7107_v5  ;;  %v5104_v35 = vld [vmem:[#allocation7 + $0x140] sm:$0xf] }
 0x16e   :  { %3623 = vmatpush.bf16.msra.mxu3 %v5033_v25  ;;  %3601 = vmatpush.bf16.msrb.mxu2 %v5941_v10  ;;  %v5914_v25 = vld [vmem:[#allocation7 + $0x7a4] sm:$0xf0]  ;;  %v5105_v44 = vor.u32 %v6528_v36, %v5104_v35  ;;  %v4961_v10 = vor.u32 %v6492_v63, %v4960_v62  ;;  %v5069_v35 = vor.u32 %v6519_v22, %v5068_v20  ;;  %v5176_v62 = vld [vmem:[#allocation7 + $0x1d0] sm:$0xf]  ;;  %v6573_v22 = vld [vmem:[#allocation7 + $0x2b0] sm:$0xf0] }
 0x16f   :  { %v5917_v41 = vor.u32 %v6730_v30, %v5914_v25  ;;  %v5320_v25 = vld [vmem:[#allocation7 + $0x2f0] sm:$0xf] }
 0x170   :  { %3612 = vmatpush.bf16.msrb.mxu0 %v6061_v2  ;;  %v5416_v2 = vld [vmem:[#allocation7 + $0x3b0] sm:$0xf] }
 0x171   :  { %3590 = vmatpush.bf16.msrb.mxu1 %v5821_v51  ;;  %v6037_v51 = vor.u32 %v6760_v39, %v6034_v40  ;;  %v5417_v30 = vor.u32 %v6606_v19, %v5416_v2  ;;  %v6603_v39 = vld [vmem:[#allocation7 + $0x3a0] sm:$0xf0]  ;;  %v5500_v2 = vld [vmem:[#allocation7 + $0x458] sm:$0xf] }
 0x172   :  { %3624 = vmatpush.bf16.msra.mxu3 %v5021_v46  ;;  %3602 = vmatpush.bf16.msrb.mxu2 %v5929_v24  ;;  %v5902_v46 = vld [vmem:[#allocation7 + $0x78c] sm:$0xf0]  ;;  %v6552_v24 = vld [vmem:[#allocation7 + $0x208] sm:$0xf0]  ;;  %v6627_v19 = vld [vmem:[#allocation7 + $0x460] sm:$0xf0] }
 0x173   :  { %v5905_v60 = vor.u32 %v6727_v45, %v5902_v46  ;;  %v5201_v36 = vor.u32 %v6552_v24, %v5200_v23  ;;  %v5188_v45 = vld [vmem:[#allocation7 + $0x1e8] sm:$0xf]  ;;  %v6549_v46 = vld [vmem:[#allocation7 + $0x1f0] sm:$0xf0]  ;;  %v5368_v23 = vld [vmem:[#allocation7 + $0x350] sm:$0xf] }
 0x174   :  { %3613 = vmatpush.bf16.msrb.mxu0 %v6049_v32  ;;  %v3372_v32 = vpop.f32.mrf.mxu3  ;;  %v6594_v24 = vld [vmem:[#allocation7 + $0x358] sm:$0xf0] }
 0x175   :  { %3591 = vmatpush.bf16.msrb.mxu1 %v5809_v61  ;;  %v6555_v61 = vld [vmem:[#allocation7 + $0x220] sm:$0xf0]  ;;  %v3373_v40 = vadd.f32 %v3372_v32, %v7131_v18  ;;  %v5189_v18 = vor.u32 %v6549_v46, %v5188_v45  ;;  %v5488_v32 = vld [vmem:[#allocation7 + $0x440] sm:$0xf]  ;;  %v6537_v45 = vld [vmem:[#allocation7 + $0x190] sm:$0xf0] }
 0x176   :  { %3625 = vmatpush.bf16.msra.mxu3 %v5009_v4  ;;  %3603 = vmatpush.bf16.msrb.mxu2 %v5917_v41  ;;  %v6025_v4 = vor.u32 %v6757_v58, %v6022_v59  ;;  %v5213_v54 = vor.u32 %v6555_v61, %v5212_v7  ;;  %v5044_v59 = vld [vmem:[#allocation7 + $0xc8] sm:$0xf]  ;;  %v6576_v7 = vld [vmem:[#allocation7 + $0x2c8] sm:$0xf0] }
 0x178   :  { %3592 = vmatmul.bf16.vlgmr.msrb.gmra.mxu1 %v7110_v33  ;;  %3614 = vmatpush.bf16.msrb.mxu0 %v6037_v51  ;;  %v6579_v51 = vld [vmem:[#allocation7 + $0x2e0] sm:$0xf0] }
 0x179   :  { %3636 = vmatpush.bf16.msra.mxu1 %v5129_v15  ;;  %v6489_v15 = vld [vmem:[#allocation7 + $0x10] sm:$0xf0]  ;;  %v5309_v63 = vor.u32 %v6579_v51, %v5308_v50  ;;  %v5608_v51 = vld [vmem:[#allocation7 + $0x530] sm:$0xf] }
 0x17a   :  { %3626 = vmatpush.bf16.msra.mxu3 %v4997_v21  ;;  %3604 = vmatpush.bf16.msrb.mxu2 %v5905_v60  ;;  %v6013_v21 = vor.u32 %v6754_v11, %v6010_v12  ;;  %v4949_v26 = vor.u32 %v6489_v15, %v4948_v14  ;;  %v6513_v60 = vld [vmem:[#allocation7 + $0xd0] sm:$0xf0]  ;;  %v5164_v15 = vld [vmem:[#allocation7 + $0x1b8] sm:$0xf] }
 0x17b   :  { %v3385_v52 = vpop.f32.mrf.mxu1  ;;  %v5045_v61 = vor.u32 %v6513_v60, %v5044_v59  ;;  %v6621_v50 = vld [vmem:[#allocation7 + $0x430] sm:$0xf0] }
 0x17c   :  { %3615 = vmatpush.bf16.msrb.mxu0 %v6025_v4  ;;  %v7136_v58 = vadd.f32 %v3385_v52, %v3373_v40  ;;  %v3374_v11 = vpop.f32.mrf.mxu3  ;;  %v5356_v40 = vld [vmem:[#allocation7 + $0x338] sm:$0xf] }
 0x17d   :  { %3637 = vmatpush.bf16.msra.mxu1 %v5117_v29  ;;  %3605 = vmatmul.bf16.vlgmr.msrb.gmra.mxu2 %v7114_v9  ;;  %v5998_v29 = vld [vmem:[#allocation7 + $0x84c] sm:$0xf0]  ;;  %v6585_v11 = vld [vmem:[#allocation7 + $0x310] sm:$0xf0] }
 0x17e   :  { %3627 = vmatpush.bf16.msra.mxu3 %v4985_v37  ;;  %3649 = vmatpush.bf16.msra.mxu2 %v5225_v1  ;;  %v5404_v37 = vld [vmem:[#allocation7 + $0x398] sm:$0xf]  ;;  %v6001_v41 = vor.u32 %v6751_v28, %v5998_v29  ;;  %v5512_v1 = vld [vmem:[#allocation7 + $0x470] sm:$0xf]  ;;  %v5501_v29 = vor.u32 %v6627_v19, %v5500_v2 }
 0x17f   :  { %v5405_v47 = vor.u32 %v6603_v39, %v5404_v37  ;;  %v5513_v14 = vor.u32 %v6630_v3, %v5512_v1  ;;  %v5272_v37 = vld [vmem:[#allocation7 + $0x290] sm:$0xf]  ;;  %v6570_v39 = vld [vmem:[#allocation7 + $0x298] sm:$0xf0]  ;;  %v5452_v19 = vld [vmem:[#allocation7 + $0x3f8] sm:$0xf] }
 0x180   :  { %3616 = vmatpush.bf16.msrb.mxu0 %v6013_v21  ;;  %v5284_v21 = vld [vmem:[#allocation7 + $0x2a8] sm:$0xf]  ;;  %v5273_v46 = vor.u32 %v6570_v39, %v5272_v37  ;;  %v5464_v1 = vld [vmem:[#allocation7 + $0x410] sm:$0xf]  ;;  %v6618_v3 = vld [vmem:[#allocation7 + $0x418] sm:$0xf0] }
 0x181   :  { %3638 = vmatpush.bf16.msra.mxu1 %v5105_v44  ;;  %v5321_v44 = vor.u32 %v6582_v31, %v5320_v25  ;;  %v5285_v25 = vor.u32 %v6573_v22, %v5284_v21  ;;  %v6540_v31 = vld [vmem:[#allocation7 + $0x1a8] sm:$0xf0]  ;;  %v5584_v22 = vld [vmem:[#allocation7 + $0x500] sm:$0xf] }
 0x182   :  { %3628 = vmatpush.bf16.msra.mxu3 %v4973_v57  ;;  %3650 = vmatpush.bf16.msra.mxu2 %v5213_v54  ;;  %v6600_v57 = vld [vmem:[#allocation7 + $0x388] sm:$0xf0]  ;;  %v6543_v54 = vld [vmem:[#allocation7 + $0x1c0] sm:$0xf0] }
 0x183   :  { %v5393_v4 = vor.u32 %v6600_v57, %v5392_v56  ;;  %v5165_v28 = vor.u32 %v6543_v54, %v5164_v15  ;;  %v6567_v56 = vld [vmem:[#allocation7 + $0x280] sm:$0xf0]  ;;  %v5344_v57 = vld [vmem:[#allocation7 + $0x320] sm:$0xf]  ;;  %v6702_v15 = vld [vmem:[#allocation7 + $0x6b8] sm:$0xf0] }
 0x184   :  { %3617 = vmatpush.bf16.msrb.mxu0 %v6001_v41  ;;  %v6591_v41 = vld [vmem:[#allocation7 + $0x340] sm:$0xf0]  ;;  %v6612_v37 = vld [vmem:[#allocation7 + $0x3e8] sm:$0xf0] }
 0x185   :  { %3639 = vmatpush.bf16.msra.mxu1 %v5093_v0  ;;  %v6546_v0 = vld [vmem:[#allocation7 + $0x1d8] sm:$0xf0]  ;;  %v5357_v52 = vor.u32 %v6591_v41, %v5356_v40  ;;  %v5572_v41 = vld [vmem:[#allocation7 + $0x4e8] sm:$0xf] }
 0x186   :  { %3629 = vmatpush.bf16.msra.mxu3 %v4961_v10  ;;  %3651 = vmatpush.bf16.msra.mxu2 %v5201_v36  ;;  %v5380_v10 = vld [vmem:[#allocation7 + $0x368] sm:$0xf]  ;;  %v5177_v12 = vor.u32 %v6546_v0, %v5176_v62  ;;  %v5369_v36 = vor.u32 %v6594_v24, %v5368_v23  ;;  %v6648_v23 = vld [vmem:[#allocation7 + $0x508] sm:$0xf0] }
 0x187   :  { %3618 = vmatmul.bf16.vlgmr.msrb.gmra.mxu0 %v7118_v49 }
 0x188   :  { %3662 = vmatpush.bf16.msra.mxu0 %v5321_v44  ;;  %v5140_v44 = vld [vmem:[#allocation7 + $0x188] sm:$0xf] }
 0x189   :  { %3640 = vmatpush.bf16.msra.mxu1 %v5081_v17  ;;  %v5297_v17 = vor.u32 %v6576_v7, %v5296_v6  ;;  %v5141_v59 = vor.u32 %v6537_v45, %v5140_v44  ;;  %v6651_v7 = vld [vmem:[#allocation7 + $0x520] sm:$0xf0]  ;;  %v5692_v44 = vld [vmem:[#allocation7 + $0x5d8] sm:$0xf] }
 0x18a   :  { %3630 = vmatpush.bf16.msra.mxu3 %v4949_v26  ;;  %3652 = vmatpush.bf16.msra.mxu2 %v5189_v18  ;;  %v3387_v26 = vpop.f32.mrf.mxu1  ;;  %v6588_v18 = vld [vmem:[#allocation7 + $0x328] sm:$0xf0] }
 0x18b   :  { %v5345_v6 = vor.u32 %v6588_v18, %v5344_v57  ;;  %v5236_v26 = vld [vmem:[#allocation7 + $0x248] sm:$0xf]  ;;  %v6642_v57 = vld [vmem:[#allocation7 + $0x4d8] sm:$0xf0]  ;;  %v5896_v18 = vld [vmem:[#allocation7 + $0x770] sm:$0xf] }
 0x18c   :  { %3663 = vmatpush.bf16.msra.mxu0 %v5309_v63 }
 0x18d   :  { %3641 = vmatpush.bf16.msra.mxu1 %v5069_v35  ;;  %3631 = vmatmul.bf16.vlgmr.msra.gmra.mxu3 %v7083_v27  ;;  %v6597_v27 = vld [vmem:[#allocation7 + $0x370] sm:$0xf0]  ;;  %v6624_v35 = vld [vmem:[#allocation7 + $0x448] sm:$0xf0] }
 0x18e   :  { %3675 = vmatpush.bf16.msrb.mxu3 %v5417_v30  ;;  %v5381_v20 = vor.u32 %v6597_v27, %v5380_v10  ;;  %3653 = vmatpush.bf16.msra.mxu2 %v5177_v12  ;;  %v5152_v30 = vld [vmem:[#allocation7 + $0x1a0] sm:$0xf]  ;;  %v5489_v43 = vor.u32 %v6624_v35, %v5488_v32  ;;  %v6564_v10 = vld [vmem:[#allocation7 + $0x268] sm:$0xf0]  ;;  %v5332_v27 = vld [vmem:[#allocation7 + $0x308] sm:$0xf]  ;;  %v5465_v12 = vor.u32 %v6618_v3, %v5464_v1 }
 0x18f   :  { %v5153_v42 = vor.u32 %v6540_v31, %v5152_v30  ;;  %v7141_v62 = vpop.f32.mrf.mxu2  ;;  %v5333_v21 = vor.u32 %v6585_v11, %v5332_v27  ;;  %v5788_v31 = vld [vmem:[#allocation7 + $0x698] sm:$0xf]  ;;  %v6699_v32 = vld [vmem:[#allocation7 + $0x6a0] sm:$0xf0]  ;;  %v5585_v35 = vor.u32 %v6648_v23, %v5584_v22  ;;  %v5680_v1 = vld [vmem:[#allocation7 + $0x5c0] sm:$0xf] }
 0x190   :  { %3664 = vmatpush.bf16.msra.mxu0 %v5297_v17  ;;  %v7143_v17 = vpop.f32.mrf.mxu0  ;;  %v6672_v3 = vld [vmem:[#allocation7 + $0x5c8] sm:$0xf0]  ;;  %v5884_v27 = vld [vmem:[#allocation7 + $0x758] sm:$0xf]  ;;  %v6723_v11 = vld [vmem:[#allocation7 + $0x760] sm:$0xf0] }
 0x191   :  { %3642 = vmatpush.bf16.msra.mxu1 %v5057_v53  ;;  %v5260_v53 = vld [vmem:[#allocation7 + $0x278] sm:$0xf]  ;;  %v6636_v22 = vld [vmem:[#allocation7 + $0x4a8] sm:$0xf0]  ;;  %v5872_v23 = vld [vmem:[#allocation7 + $0x740] sm:$0xf] }
 0x192   :  { %3676 = vmatpush.bf16.msrb.mxu3 %v5405_v47  ;;  %3654 = vmatpush.bf16.msra.mxu2 %v5165_v28  ;;  %v5476_v47 = vld [vmem:[#allocation7 + $0x428] sm:$0xf]  ;;  %v5261_v0 = vor.u32 %v6567_v56, %v5260_v53  ;;  %v6561_v28 = vld [vmem:[#allocation7 + $0x250] sm:$0xf0]  ;;  %v5560_v56 = vld [vmem:[#allocation7 + $0x4d0] sm:$0xf] }
 0x193   :  { %v5477_v60 = vor.u32 %v6621_v50, %v5476_v47  ;;  %v5237_v40 = vor.u32 %v6561_v28, %v5236_v26  ;;  %v5776_v47 = vld [vmem:[#allocation7 + $0x680] sm:$0xf]  ;;  %v6696_v50 = vld [vmem:[#allocation7 + $0x688] sm:$0xf0] }
 0x194   :  { %3665 = vmatpush.bf16.msra.mxu0 %v5285_v25  ;;  %v6678_v25 = vld [vmem:[#allocation7 + $0x5f8] sm:$0xf0] }
 0x195   :  { %3643 = vmatpush.bf16.msra.mxu1 %v5045_v61  ;;  %v5248_v61 = vld [vmem:[#allocation7 + $0x260] sm:$0xf] }
 0x196   :  { %3677 = vmatpush.bf16.msrb.mxu3 %v5393_v4  ;;  %3655 = vmatpush.bf16.msra.mxu2 %v5153_v42  ;;  %v5596_v4 = vld [vmem:[#allocation7 + $0x518] sm:$0xf]  ;;  %v5249_v2 = vor.u32 %v6564_v10, %v5248_v61  ;;  %v6645_v42 = vld [vmem:[#allocation7 + $0x4f0] sm:$0xf0]  ;;  %v6639_v10 = vld [vmem:[#allocation7 + $0x4c0] sm:$0xf0] }
 0x197   :  { %v5597_v54 = vor.u32 %v6651_v7, %v5596_v4  ;;  %v3400_v39 = vpop.f32.mrf.mxu2  ;;  %v6693_v7 = vld [vmem:[#allocation7 + $0x670] sm:$0xf0]  ;;  %v5548_v61 = vld [vmem:[#allocation7 + $0x4b8] sm:$0xf] }
 0x198   :  { %3644 = vmatmul.bf16.vlgmr.msra.gmra.mxu1 %v7086_v55  ;;  %v6654_v55 = vld [vmem:[#allocation7 + $0x538] sm:$0xf0]  ;;  %3666 = vmatpush.bf16.msra.mxu0 %v5273_v46  ;;  %v6675_v46 = vld [vmem:[#allocation7 + $0x5e0] sm:$0xf0]  ;;  %v3413_v53 = vpop.f32.mrf.mxu0  ;;  %v6633_v39 = vld [vmem:[#allocation7 + $0x490] sm:$0xf0] }
 0x199   :  { %3688 = vmatpush.bf16.msrb.mxu1 %v5513_v14  ;;  %v5609_v63 = vor.u32 %v6654_v55, %v5608_v51  ;;  %v5800_v14 = vld [vmem:[#allocation7 + $0x6b0] sm:$0xf]  ;;  %v5573_v51 = vor.u32 %v6645_v42, %v5572_v41  ;;  %v6609_v55 = vld [vmem:[#allocation7 + $0x3d0] sm:$0xf0] }
 0x19a   :  { %3678 = vmatpush.bf16.msrb.mxu3 %v5381_v20  ;;  %3656 = vmatpush.bf16.msra.mxu2 %v5141_v59  ;;  %v6615_v20 = vld [vmem:[#allocation7 + $0x400] sm:$0xf0]  ;;  %v5801_v24 = vor.u32 %v6702_v15, %v5800_v14  ;;  %v6726_v59 = vld [vmem:[#allocation7 + $0x778] sm:$0xf0]  ;;  %v5668_v15 = vld [vmem:[#allocation7 + $0x5a8] sm:$0xf] }
 0x19b   :  { %v5453_v30 = vor.u32 %v6615_v20, %v5452_v19  ;;  %v5897_v4 = vor.u32 %v6726_v59, %v5896_v18  ;;  %v5752_v19 = vld [vmem:[#allocation7 + $0x650] sm:$0xf]  ;;  %v6690_v20 = vld [vmem:[#allocation7 + $0x658] sm:$0xf0]  ;;  %v6717_v41 = vld [vmem:[#allocation7 + $0x730] sm:$0xf0] }
 0x19c   :  { %3667 = vmatpush.bf16.msra.mxu0 %v5261_v0  ;;  %v5753_v28 = vor.u32 %v6690_v20, %v5752_v19  ;;  %v5992_v42 = vld [vmem:[#allocation7 + $0x830] sm:$0xf]  ;;  %v5980_v18 = vld [vmem:[#allocation7 + $0x818] sm:$0xf]  ;;  %v6747_v59 = vld [vmem:[#allocation7 + $0x820] sm:$0xf0] }
 0x19d   :  { %3689 = vmatpush.bf16.msrb.mxu1 %v5501_v29  ;;  %3657 = vmatmul.bf16.vlgmr.msra.gmra.mxu2 %v7089_v38  ;;  %v5704_v29 = vld [vmem:[#allocation7 + $0x5f0] sm:$0xf] }
 0x19e   :  { %3679 = vmatpush.bf16.msrb.mxu3 %v5369_v36  ;;  %3701 = vmatpush.bf16.msrb.mxu2 %v5609_v63  ;;  %v5440_v36 = vld [vmem:[#allocation7 + $0x3e0] sm:$0xf]  ;;  %v5705_v38 = vor.u32 %v6678_v25, %v5704_v29  ;;  %v5777_v63 = vor.u32 %v6696_v50, %v5776_v47  ;;  %v5656_v29 = vld [vmem:[#allocation7 + $0x590] sm:$0xf] }
 0x19f   :  { %v5441_v45 = vor.u32 %v6612_v37, %v5440_v36  ;;  %v6687_v36 = vld [vmem:[#allocation7 + $0x640] sm:$0xf0]  ;;  %v5524_v37 = vld [vmem:[#allocation7 + $0x488] sm:$0xf]  ;;  %v5848_v53 = vld [vmem:[#allocation7 + $0x710] sm:$0xf] }
 0x1a0   :  { %3668 = vmatpush.bf16.msra.mxu0 %v5249_v2  ;;  %v5549_v2 = vor.u32 %v6639_v10, %v5548_v61  ;;  %v5525_v47 = vor.u32 %v6633_v39, %v5524_v37  ;;  %v6790_v61 = vld [vmem:[%s7498_s3 + $0x74] sm:$0xf0]  ;;  %v5836_v10 = vld [vmem:[#allocation7 + $0x6f8] sm:$0xf] }
 0x1a1   :  { %3690 = vmatpush.bf16.msrb.mxu1 %v5489_v43  ;;  %v5789_v43 = vor.u32 %v6699_v32, %v5788_v31  ;;  %v6076_v39 = vld [vmem:[#allocation7 + $0x8d8] sm:$0xf] }
 0x1a2   :  { %3680 = vmatpush.bf16.msrb.mxu3 %v5357_v52  ;;  %3702 = vmatpush.bf16.msrb.mxu2 %v5597_v54  ;;  %v5428_v52 = vld [vmem:[#allocation7 + $0x3c8] sm:$0xf]  ;;  %v6669_v54 = vld [vmem:[#allocation7 + $0x5b0] sm:$0xf0] }
 0x1a3   :  { %v5429_v0 = vor.u32 %v6609_v55, %v5428_v52  ;;  %v5669_v26 = vor.u32 %v6669_v54, %v5668_v15  ;;  %v6684_v52 = vld [vmem:[#allocation7 + $0x628] sm:$0xf0]  ;;  %v5620_v54 = vld [vmem:[#allocation7 + $0x548] sm:$0xf] }
 0x1a4   :  { %3669 = vmatpush.bf16.msra.mxu0 %v5237_v40  ;;  %v5860_v40 = vld [vmem:[#allocation7 + $0x728] sm:$0xf] }
 0x1a5   :  { %3691 = vmatpush.bf16.msrb.mxu1 %v5477_v60  ;;  %v5693_v60 = vor.u32 %v6675_v46, %v5692_v44  ;;  %v5644_v44 = vld [vmem:[#allocation7 + $0x578] sm:$0xf]  ;;  %v5861_v50 = vor.u32 %v6717_v41, %v5860_v40  ;;  %v6771_v40 = vld [vmem:[#allocation7 + $0x8e0] sm:$0xf0]  ;;  %v6132_v41 = vld [vmem:[%s7498_s3 + $0x50] sm:$0xf] }
 0x1a6   :  { %3681 = vmatpush.bf16.msrb.mxu3 %v5345_v6  ;;  %3703 = vmatpush.bf16.msrb.mxu2 %v5585_v35  ;;  %v5764_v6 = vld [vmem:[#allocation7 + $0x668] sm:$0xf]  ;;  %v5740_v35 = vld [vmem:[#allocation7 + $0x638] sm:$0xf] }
 0x1a7   :  { %3670 = vmatmul.bf16.vlgmr.msra.gmra.mxu0 %v7092_v16  ;;  %v5765_v14 = vor.u32 %v6693_v7, %v5764_v6  ;;  %v5885_v16 = vor.u32 %v6723_v11, %v5884_v27  ;;  %v6148_v6 = vld [vmem:[%s7498_s3 + $0x70] sm:$0xf]  ;;  %v5981_v7 = vor.u32 %v6747_v59, %v5980_v18  ;;  %v6711_v27 = vld [vmem:[#allocation7 + $0x700] sm:$0xf0]  ;;  %v5932_v59 = vld [vmem:[#allocation7 + $0x7b8] sm:$0xf] }
 0x1a8   :  { %3714 = vmatpush.bf16.msrb.mxu0 %v5705_v38  ;;  %v7149_v25 = vpop.f32.mrf.mxu3  ;;  %v6750_v38 = vld [vmem:[#allocation7 + $0x838] sm:$0xf0]  ;;  %v6149_v19 = vor.u32 %v6790_v61, %v6148_v6  ;;  %v5837_v20 = vor.u32 %v6711_v27, %v5836_v10  ;;  %v6782_v6 = vld [vmem:[%s7498_s3 + $0x34] sm:$0xf0]  ;;  %v5920_v61 = vld [vmem:[#allocation7 + $0x7a0] sm:$0xf]  ;;  %v3399_v27 = vadd.f32 %v7141_v62, %v7136_v58 }
 0x1a9   :  { %3692 = vmatpush.bf16.msrb.mxu1 %v5465_v12  ;;  %v5681_v12 = vor.u32 %v6672_v3, %v5680_v1  ;;  %v5993_v55 = vor.u32 %v6750_v38, %v5992_v42  ;;  %v6786_v42 = vld [vmem:[%s7498_s3 + $0x54] sm:$0xf0]  ;;  %v6732_v10 = vld [vmem:[#allocation7 + $0x7a8] sm:$0xf0]  ;;  %v6780_v58 = vld [vmem:[%s7498_s3 + $0x24] sm:$0xf0] }
 0x1aa   :  { %3682 = vmatpush.bf16.msrb.mxu3 %v5333_v21  ;;  %3704 = vmatpush.bf16.msrb.mxu2 %v5573_v51  ;;  %v5536_v21 = vld [vmem:[#allocation7 + $0x4a0] sm:$0xf]  ;;  %v5812_v38 = vld [vmem:[#allocation7 + $0x6c8] sm:$0xf] }
 0x1ab   :  { %v5537_v31 = vor.u32 %v6636_v22, %v5536_v21  ;;  %v7151_v46 = vpop.f32.mrf.mxu1  ;;  %v5728_v51 = vld [vmem:[#allocation7 + $0x620] sm:$0xf]  ;;  %v6088_v21 = vld [vmem:[#allocation7 + $0x8f0] sm:$0xf]  ;;  %v6774_v22 = vld [vmem:[#allocation7 + $0x8f8] sm:$0xf0] }
 0x1ac   :  { %3715 = vmatpush.bf16.msrb.mxu0 %v5693_v60  ;;  %v5729_v60 = vor.u32 %v6684_v52, %v5728_v51  ;;  %v6133_v51 = vor.u32 %v6786_v42, %v6132_v41 }
 0x1ad   :  { %3693 = vmatpush.bf16.msrb.mxu1 %v5453_v30  ;;  %3683 = vmatmul.bf16.vlgmr.msrb.gmra.mxu3 %v7095_v8  ;;  %v5561_v8 = vor.u32 %v6642_v57, %v5560_v56  ;;  %v6666_v30 = vld [vmem:[#allocation7 + $0x598] sm:$0xf0] }
 0x1ae   :  { %3727 = vmatpush.bf16.msra.mxu3 %v5801_v24  ;;  %v6720_v24 = vld [vmem:[#allocation7 + $0x748] sm:$0xf0]  ;;  %v6714_v56 = vld [vmem:[#allocation7 + $0x718] sm:$0xf0] }
 0x1af   :  { %3705 = vmatpush.bf16.msrb.mxu2 %v5561_v8  ;;  %v5873_v32 = vor.u32 %v6720_v24, %v5872_v23  ;;  %v5849_v3 = vor.u32 %v6714_v56, %v5848_v53  ;;  %v5716_v8 = vld [vmem:[#allocation7 + $0x608] sm:$0xf]  ;;  %v6140_v23 = vld [vmem:[%s7498_s3 + $0x60] sm:$0xf]  ;;  %v6768_v53 = vld [vmem:[#allocation7 + $0x8c8] sm:$0xf0] }
 0x1b0   :  { %3716 = vmatpush.bf16.msrb.mxu0 %v5681_v12  ;;  %v3426_v1 = vpop.f32.mrf.mxu3  ;;  %v5968_v12 = vld [vmem:[#allocation7 + $0x800] sm:$0xf] }
 0x1b1   :  { %3694 = vmatpush.bf16.msrb.mxu1 %v5441_v45  ;;  %v6663_v45 = vld [vmem:[#allocation7 + $0x580] sm:$0xf0] }
 0x1b2   :  { %3728 = vmatpush.bf16.msra.mxu3 %v5789_v43  ;;  %v5741_v43 = vor.u32 %v6687_v36, %v5740_v35  ;;  %v5645_v57 = vor.u32 %v6663_v45, %v5644_v44  ;;  %v5944_v44 = vld [vmem:[#allocation7 + $0x7d0] sm:$0xf]  ;;  %v6738_v45 = vld [vmem:[#allocation7 + $0x7d8] sm:$0xf0] }
 0x1b3   :  { %3706 = vmatpush.bf16.msrb.mxu2 %v5549_v2  ;;  %v6657_v2 = vld [vmem:[#allocation7 + $0x550] sm:$0xf0]  ;;  %v5945_v56 = vor.u32 %v6738_v45, %v5944_v44  ;;  %v6092_v44 = vld [vmem:[%s7498_s3] sm:$0xf] }
 0x1b4   :  { %3717 = vmatpush.bf16.msrb.mxu0 %v5669_v26  ;;  %v6788_v26 = vld [vmem:[%s7498_s3 + $0x64] sm:$0xf0] }
 0x1b5   :  { %3695 = vmatpush.bf16.msrb.mxu1 %v5429_v0  ;;  %v6660_v0 = vld [vmem:[#allocation7 + $0x568] sm:$0xf0]  ;;  %v6141_v36 = vor.u32 %v6788_v26, %v6140_v23 }
 0x1b6   :  { %3729 = vmatpush.bf16.msra.mxu3 %v5777_v63  ;;  %v5632_v63 = vld [vmem:[#allocation7 + $0x560] sm:$0xf] }
 0x1b7   :  { %3707 = vmatpush.bf16.msrb.mxu2 %v5537_v31  ;;  %v5633_v11 = vor.u32 %v6660_v0, %v5632_v63  ;;  %v6741_v31 = vld [vmem:[#allocation7 + $0x7f0] sm:$0xf0] }
 0x1b8   :  { %3696 = vmatmul.bf16.vlgmr.msrb.gmra.mxu1 %v7098_v48  ;;  %v5657_v48 = vor.u32 %v6666_v30, %v5656_v29  ;;  %v5621_v29 = vor.u32 %v6657_v2, %v5620_v54  ;;  %v5956_v30 = vld [vmem:[#allocation7 + $0x7e8] sm:$0xf]  ;;  %v7166_v35 = vpop.f32.mrf.mxu3  ;;  %v6762_v54 = vld [vmem:[#allocation7 + $0x898] sm:$0xf0]  ;;  %v3412_v2 = vadd.f32 %v7143_v17, %v3399_v27 }
 0x1b9   :  { %3740 = vmatpush.bf16.msra.mxu1 %v5897_v4  ;;  %v6681_v4 = vld [vmem:[#allocation7 + $0x610] sm:$0xf0]  ;;  %v6806_v17 = vld [vmem:[%s7498_s3 + $0xf4] sm:$0xf0] }
 0x1ba   :  { %3730 = vmatpush.bf16.msra.mxu3 %v5765_v14  ;;  %3718 = vmatpush.bf16.msrb.mxu0 %v5657_v48  ;;  %v6744_v14 = vld [vmem:[#allocation7 + $0x808] sm:$0xf0]  ;;  %v5717_v15 = vor.u32 %v6681_v4, %v5716_v8  ;;  %v5957_v48 = vor.u32 %v6741_v31, %v5956_v30  ;;  %v6116_v4 = vld [vmem:[%s7498_s3 + $0x30] sm:$0xf] }
 0x1bb   :  { %3708 = vmatpush.bf16.msrb.mxu2 %v5525_v47  ;;  %v5969_v24 = vor.u32 %v6744_v14, %v5968_v12  ;;  %v6077_v47 = vor.u32 %v6771_v40, %v6076_v39  ;;  %v6117_v14 = vor.u32 %v6782_v6, %v6116_v4  ;;  %v6803_v6 = vld [vmem:[%s7498_s3 + $0xe4] sm:$0xf] }
 0x1bd   :  { %3741 = vmatpush.bf16.msra.mxu1 %v5885_v16  ;;  %v3439_v16 = vpop.f32.mrf.mxu1 }
 0x1be   :  { %3731 = vmatpush.bf16.msra.mxu3 %v5753_v28  ;;  %3719 = vmatpush.bf16.msrb.mxu0 %v5645_v57  ;;  %v6708_v28 = vld [vmem:[#allocation7 + $0x6e8] sm:$0xf0]  ;;  %v6784_v57 = vld [vmem:[%s7498_s3 + $0x44] sm:$0xf0]  ;;  %v5921_v16 = vor.u32 %v6732_v10, %v5920_v61 }
 0x1bf   :  { %3753 = vmatpush.bf16.msra.mxu2 %v5993_v55  ;;  %v6064_v55 = vld [vmem:[#allocation7 + $0x8c0] sm:$0xf]  ;;  %v3450_v18 = vpop.f32.mrf.mxu2 }
 0x1c0   :  { %3709 = vmatmul.bf16.vlgmr.msrb.gmra.mxu2 %v7101_v34  ;;  %v5824_v34 = vld [vmem:[#allocation7 + $0x6e0] sm:$0xf]  ;;  %v6065_v63 = vor.u32 %v6768_v53, %v6064_v55  ;;  %v3478_v0 = vpop.f32.mrf.mxu3  ;;  %v6805_v53 = vld [vmem:[%s7498_s3 + $0xf4] sm:$0xf] }
 0x1c1   :  { %3742 = vmatpush.bf16.msra.mxu1 %v5873_v32  ;;  %v6089_v32 = vor.u32 %v6774_v22, %v6088_v21  ;;  %v5825_v37 = vor.u32 %v6708_v28, %v5824_v34  ;;  %v6212_v21 = vld [vmem:[%s7498_s3 + $0xf0] sm:$0xf]  ;;  %v3425_v22 = vadd.f32 %v7149_v25, %v3412_v2  ;;  %v6028_v28 = vld [vmem:[#allocation7 + $0x878] sm:$0xf]  ;;  %v6778_v25 = vld [vmem:[%s7498_s3 + $0x14] sm:$0xf0] }
 0x1c2   :  { %3732 = vmatpush.bf16.msra.mxu3 %v5741_v43  ;;  %3720 = vmatpush.bf16.msrb.mxu0 %v5633_v11  ;;  %v6705_v43 = vld [vmem:[#allocation7 + $0x6d0] sm:$0xf0]  ;;  %v6789_v0 = vld [vmem:[%s7498_s3 + $0x74] sm:$0xf] }
 0x1c3   :  { %3754 = vmatpush.bf16.msra.mxu2 %v5981_v7  ;;  %v5813_v52 = vor.u32 %v6705_v43, %v5812_v38  ;;  %v3463_v7 = vpop.f32.mrf.mxu0  ;;  %v3438_v30 = vadd.f32 %v7151_v46, %v3425_v22  ;;  %v6804_v46 = vld [vmem:[%s7498_s3 + $0xe4] sm:$0xf0]  ;;  %v6016_v38 = vld [vmem:[#allocation7 + $0x860] sm:$0xf]  ;;  %v6756_v43 = vld [vmem:[#allocation7 + $0x868] sm:$0xf0] }
 0x1c4   :  { %v6801_v2 = vld [vmem:[%s7498_s3 + $0xd4] sm:$0xf] }
 0x1c5   :  { %3743 = vmatpush.bf16.msra.mxu1 %v5861_v50  ;;  %v7175_v50 = vpop.f32.mrf.mxu1  ;;  %v3451_v39 = vadd.f32 %v3450_v18, %v3438_v30  ;;  %v6004_v18 = vld [vmem:[#allocation7 + $0x848] sm:$0xf] }
 0x1c6   :  { %3733 = vmatpush.bf16.msra.mxu3 %v5729_v60  ;;  %3721 = vmatpush.bf16.msrb.mxu0 %v5621_v29  ;;  %v6735_v60 = vld [vmem:[#allocation7 + $0x7c0] sm:$0xf0] }
 0x1c7   :  { %3755 = vmatpush.bf16.msra.mxu2 %v5969_v24  ;;  %v5933_v8 = vor.u32 %v6735_v60, %v5932_v59  ;;  %v3452_v62 = vpop.f32.mrf.mxu2  ;;  %v6213_v24 = vor.u32 %v6806_v17, %v6212_v21  ;;  %v6759_v29 = vld [vmem:[#allocation7 + $0x880] sm:$0xf0]  ;;  %v3464_v45 = vadd.f32 %v3463_v7, %v3451_v39  ;;  %v6206_v7 = vld [vmem:[%s7498_s3 + $0xe8] sm:$0xf0]  ;;  %v6134_v17 = vld [vmem:[%s7498_s3 + $0x58] sm:$0xf0] }
 0x1c8   :  { %v6029_v40 = vor.u32 %v6759_v29, %v6028_v28  ;;  %v6785_v21 = vld [vmem:[%s7498_s3 + $0x54] sm:$0xf]  ;;  %v6172_v28 = vld [vmem:[%s7498_s3 + $0xa0] sm:$0xf]  ;;  %v6796_v29 = vld [vmem:[%s7498_s3 + $0xa4] sm:$0xf0] }
 0x1c9   :  { %3744 = vmatpush.bf16.msra.mxu1 %v5849_v3  ;;  %3722 = vmatmul.bf16.vlgmr.msrb.gmra.mxu0 %v7104_v13  ;;  %v6052_v13 = vld [vmem:[#allocation7 + $0x8a8] sm:$0xf]  ;;  %v6765_v3 = vld [vmem:[#allocation7 + $0x8b0] sm:$0xf0]  ;;  %v6173_v30 = vor.u32 %v6796_v29, %v6172_v28  ;;  %v6164_v39 = vld [vmem:[%s7498_s3 + $0x90] sm:$0xf] }
 0x1ca   :  { %3734 = vmatpush.bf16.msra.mxu3 %v5717_v15  ;;  %3766 = vmatpush.bf16.msra.mxu0 %v6089_v32  ;;  %v6053_v11 = vor.u32 %v6765_v3, %v6052_v13  ;;  %v6040_v15 = vld [vmem:[#allocation7 + $0x890] sm:$0xf]  ;;  %v6100_v32 = vld [vmem:[%s7498_s3 + $0x10] sm:$0xf]  ;;  %v3779_v13 = vmax.f32 %v3464_v45, 0.0 }
 0x1cb   :  { %3756 = vmatpush.bf16.msra.mxu2 %v5957_v48  ;;  %v6041_v23 = vor.u32 %v6762_v54, %v6040_v15  ;;  %v6101_v42 = vor.u32 %v6778_v25, %v6100_v32  ;;  %v6142_v15 = vld [vmem:[%s7498_s3 + $0x68] sm:$0xf0]  ;;  %v6209_v54 = vor.u32 %v6803_v6, %v6206_v7  ;;  %v6795_v45 = vld [vmem:[%s7498_s3 + $0xa4] sm:$0xf] }
 0x1cc   :  { %v6126_v32 = vld [vmem:[%s7498_s3 + $0x48] sm:$0xf0]  ;;  %v6791_v7 = vld [vmem:[%s7498_s3 + $0x84] sm:$0xf] }
 0x1cd   :  { %3745 = vmatpush.bf16.msra.mxu1 %v5837_v20  ;;  %3735 = vmatmul.bf16.vlgmr.msra.gmra.mxu3 %v7107_v5  ;;  %v6124_v5 = vld [vmem:[%s7498_s3 + $0x40] sm:$0xf]  ;;  %v3491_v12 = vpop.f32.mrf.mxu1  ;;  %v6729_v20 = vld [vmem:[#allocation7 + $0x790] sm:$0xf0] }
 0x1ce   :  { %4073 = vmatpush.bf16.msrb.mxu3 %v6149_v19  ;;  %3767 = vmatpush.bf16.msra.mxu0 %v6077_v47  ;;  %v6125_v1 = vor.u32 %v6784_v57, %v6124_v5  ;;  %v6108_v19 = vld [vmem:[%s7498_s3 + $0x20] sm:$0xf]  ;;  %v6776_v47 = vld [vmem:[%s7498_s3 + $0x4] sm:$0xf0]  ;;  %v6017_v57 = vor.u32 %v6756_v43, %v6016_v38  ;;  %v7265_v12 = vpack.c.bf16 %v3779_v13, %v3779_v13  ;;  %v6781_v38 = vld [vmem:[%s7498_s3 + $0x34] sm:$0xf] }
 0x1cf   :  { %3757 = vmatpush.bf16.msra.mxu2 %v5945_v56  ;;  %v6109_v34 = vor.u32 %v6780_v58, %v6108_v19  ;;  %v7236_v55 = vpop.f32.mrf.mxu2  ;;  %v6214_v56 = vld [vmem:[%s7498_s3 + $0xf8] sm:$0xf0]  ;;  %v6093_v60 = vor.u32 %v6776_v47, %v6092_v44  ;;  %v6180_v58 = vld [vmem:[%s7498_s3 + $0xb0] sm:$0xf]  ;;  %v6174_v47 = vld [vmem:[%s7498_s3 + $0xa8] sm:$0xf0] }
 0x1d0   :  { %v7207_v26 = vpop.f32.mrf.mxu3  ;;  %v6217_v3 = vor.u32 %v6805_v53, %v6214_v56  ;;  %v6198_v19 = vld [vmem:[%s7498_s3 + $0xd8] sm:$0xf0] }
 0x1d1   :  { %3746 = vmatpush.bf16.msra.mxu1 %v5825_v37  ;;  %v6204_v37 = vld [vmem:[%s7498_s3 + $0xe0] sm:$0xf]  ;;  %v6201_v22 = vor.u32 %v6801_v2, %v6198_v19  ;;  %v6118_v43 = vld [vmem:[%s7498_s3 + $0x38] sm:$0xf0] }
 0x1d2   :  { %4074 = vmatpush.bf16.msrb.mxu3 %v6141_v36  ;;  %3768 = vmatpush.bf16.msra.mxu0 %v6065_v63  ;;  %v3465_v36 = vpop.f32.mrf.mxu0  ;;  %v6205_v41 = vor.u32 %v6804_v46, %v6204_v37  ;;  %v6753_v63 = vld [vmem:[#allocation7 + $0x850] sm:$0xf0]  ;;  %v6182_v46 = vld [vmem:[%s7498_s3 + $0xb8] sm:$0xf0] }
 0x1d3   :  { %3758 = vmatpush.bf16.msra.mxu2 %v5933_v8  ;;  %v6188_v8 = vld [vmem:[%s7498_s3 + $0xc0] sm:$0xf]  ;;  %v6005_v10 = vor.u32 %v6753_v63, %v6004_v18  ;;  %v6797_v36 = vld [vmem:[%s7498_s3 + $0xb4] sm:$0xf]  ;;  %v6177_v63 = vor.u32 %v6795_v45, %v6174_v47  ;;  %v6270_v45 = vld [vmem:[%s7498_s3 + $0x168] sm:$0xf0] }
 0x1d4   :  { %v6185_v44 = vor.u32 %v6797_v36, %v6182_v46  ;;  %v6821_v36 = vld [vmem:[%s7498_s3 + $0x174] sm:$0xf]  ;;  %v6278_v46 = vld [vmem:[%s7498_s3 + $0x178] sm:$0xf0] }
 0x1d5   :  { %3747 = vmatpush.bf16.msra.mxu1 %v5813_v52  ;;  %v7222_v48 = vpop.f32.mrf.mxu1  ;;  %v6802_v52 = vld [vmem:[%s7498_s3 + $0xd4] sm:$0xf0] }
 0x1d6   :  { %4075 = vmatpush.bf16.msrb.mxu3 %v6133_v51  ;;  %3769 = vmatpush.bf16.msra.mxu0 %v6053_v11  ;;  %v6196_v51 = vld [vmem:[%s7498_s3 + $0xd0] sm:$0xf] }
 0x1d7   :  { %3759 = vmatpush.bf16.msra.mxu2 %v5921_v16  ;;  %v6197_v5 = vor.u32 %v6802_v52, %v6196_v51  ;;  %v3504_v16 = vpop.f32.mrf.mxu2  ;;  %v6156_v51 = vld [vmem:[%s7498_s3 + $0x80] sm:$0xf]  ;;  %v6792_v52 = vld [vmem:[%s7498_s3 + $0x84] sm:$0xf0] }
 0x1d8   :  { %3748 = vmatmul.bf16.vlgmr.msra.gmra.mxu1 %v7110_v33  ;;  %v5908_v33 = vld [vmem:[#allocation7 + $0x788] sm:$0xf]  ;;  %v3530_v59 = vpop.f32.mrf.mxu3  ;;  %v6157_v56 = vor.u32 %v6792_v52, %v6156_v51 }
 0x1d9   :  { %v5909_v31 = vor.u32 %v6729_v20, %v5908_v33  ;;  %4086 = vmatpush.bf16.msrb.mxu1 %v6213_v24  ;;  %v6798_v33 = vld [vmem:[%s7498_s3 + $0xb4] sm:$0xf0]  ;;  %v6779_v59 = vld [vmem:[%s7498_s3 + $0x24] sm:$0xf] }
 0x1da   :  { %4076 = vmatpush.bf16.msrb.mxu3 %v6125_v1  ;;  %3770 = vmatpush.bf16.msra.mxu0 %v6041_v23  ;;  %v6150_v1 = vld [vmem:[%s7498_s3 + $0x78] sm:$0xf0]  ;;  %v7257_v4 = vpop.f32.mrf.mxu0  ;;  %v6181_v62 = vor.u32 %v6798_v33, %v6180_v58  ;;  %v6799_v23 = vld [vmem:[%s7498_s3 + $0xc4] sm:$0xf] }
 0x1db   :  { %3760 = vmatpush.bf16.msra.mxu2 %v5909_v31  ;;  %v6153_v11 = vor.u32 %v6789_v0, %v6150_v1  ;;  %v6137_v31 = vor.u32 %v6785_v21, %v6134_v17 }
 0x1dd   :  { %4087 = vmatpush.bf16.msrb.mxu1 %v6205_v41  ;;  %v3543_v27 = vpop.f32.mrf.mxu1 }
 0x1de   :  { %4077 = vmatpush.bf16.msrb.mxu3 %v6117_v14  ;;  %3771 = vmatpush.bf16.msra.mxu0 %v6029_v40  ;;  %v6787_v14 = vld [vmem:[%s7498_s3 + $0x64] sm:$0xf]  ;;  %v6794_v40 = vld [vmem:[%s7498_s3 + $0x94] sm:$0xf0] }
 0x1df   :  { %3761 = vmatmul.bf16.vlgmr.msra.gmra.mxu2 %v7114_v9  ;;  %v6800_v9 = vld [vmem:[%s7498_s3 + $0xc4] sm:$0xf0]  ;;  %v6145_v20 = vor.u32 %v6787_v14, %v6142_v15  ;;  %v6165_v41 = vor.u32 %v6794_v40, %v6164_v39  ;;  %v6775_v14 = vld [vmem:[%s7498_s3 + $0x4] sm:$0xf]  ;;  %v6094_v15 = vld [vmem:[%s7498_s3 + $0x8] sm:$0xf0]  ;;  %v6281_v40 = vor.u32 %v6821_v36, %v6278_v46 }
 0x1e0   :  { %v6189_v61 = vor.u32 %v6800_v9, %v6188_v8  ;;  %v3554_v37 = vpop.f32.mrf.mxu2  ;;  %v6777_v9 = vld [vmem:[%s7498_s3 + $0x14] sm:$0xf]  ;;  %v6097_v16 = vor.u32 %v6775_v14, %v6094_v15  ;;  %v6238_v14 = vld [vmem:[%s7498_s3 + $0x128] sm:$0xf0] }
 0x1e1   :  { %4088 = vmatpush.bf16.msrb.mxu1 %v6197_v5  ;;  %v3490_v5 = vadd.f32 %v7175_v50, %v7166_v35  ;;  %v6793_v35 = vld [vmem:[%s7498_s3 + $0x94] sm:$0xf]  ;;  %v6166_v50 = vld [vmem:[%s7498_s3 + $0x98] sm:$0xf0] }
 0x1e2   :  { %4078 = vmatpush.bf16.msrb.mxu3 %v6109_v34  ;;  %3772 = vmatpush.bf16.msra.mxu0 %v6017_v57  ;;  %v3517_v24 = vpop.f32.mrf.mxu0  ;;  %v6190_v34 = vld [vmem:[%s7498_s3 + $0xc8] sm:$0xf0]  ;;  %v6121_v57 = vor.u32 %v6781_v38, %v6118_v43  ;;  %v6169_v6 = vor.u32 %v6793_v35, %v6166_v50  ;;  %v6820_v38 = vld [vmem:[%s7498_s3 + $0x164] sm:$0xf0]  ;;  %v6819_v43 = vld [vmem:[%s7498_s3 + $0x164] sm:$0xf] }
 0x1e3   :  { %v6193_v25 = vor.u32 %v6799_v23, %v6190_v34  ;;  %v3503_v0 = vadd.f32 %v7236_v55, %v3490_v5  ;;  %v6102_v55 = vld [vmem:[%s7498_s3 + $0x18] sm:$0xf0]  ;;  %v6273_v51 = vor.u32 %v6819_v43, %v6270_v45  ;;  %v6817_v5 = vld [vmem:[%s7498_s3 + $0x154] sm:$0xf]  ;;  %v6254_v50 = vld [vmem:[%s7498_s3 + $0x148] sm:$0xf0] }
 0x1e4   :  { %v6105_v27 = vor.u32 %v6777_v9, %v6102_v55  ;;  %v6813_v9 = vld [vmem:[%s7498_s3 + $0x134] sm:$0xf]  ;;  %v6246_v55 = vld [vmem:[%s7498_s3 + $0x138] sm:$0xf0] }
 0x1e5   :  { %4089 = vmatpush.bf16.msrb.mxu1 %v6189_v61  ;;  %v3516_v13 = vadd.f32 %v7257_v4, %v3503_v0  ;;  %v6158_v4 = vld [vmem:[%s7498_s3 + $0x88] sm:$0xf0]  ;;  %v6816_v0 = vld [vmem:[%s7498_s3 + $0x144] sm:$0xf0] }
 0x1e6   :  { %4079 = vmatpush.bf16.msrb.mxu3 %v6101_v42  ;;  %3773 = vmatpush.bf16.msra.mxu0 %v6005_v10 }
 0x1e7   :  { %v3529_v10 = vadd.f32 %v7207_v26, %v3516_v13  ;;  %v6244_v13 = vld [vmem:[%s7498_s3 + $0x130] sm:$0xf] }
 0x1e8   :  { %v3556_v1 = vpop.f32.mrf.mxu2 }
 0x1e9   :  { %4090 = vmatpush.bf16.msrb.mxu1 %v6181_v62  ;;  %3774 = vmatmul.bf16.vlgmr.msra.gmra.mxu0 %v7118_v49  ;;  %v6783_v49 = vld [vmem:[%s7498_s3 + $0x44] sm:$0xf]  ;;  %v3542_v2 = vadd.f32 %v7222_v48, %v3529_v10  ;;  %v6812_v10 = vld [vmem:[%s7498_s3 + $0x124] sm:$0xf0] }
 0x1ea   :  { %4080 = vmatpush.bf16.msrb.mxu3 %v6093_v60  ;;  %4112 = vmatpush.bf16.msrb.mxu0 %v6153_v11  ;;  %v6129_v42 = vor.u32 %v6783_v49, %v6126_v32  ;;  %v3567_v53 = vpop.f32.mrf.mxu0  ;;  %v6110_v60 = vld [vmem:[%s7498_s3 + $0x28] sm:$0xf0]  ;;  %v6276_v32 = vld [vmem:[%s7498_s3 + $0x170] sm:$0xf]  ;;  %v6815_v1 = vld [vmem:[%s7498_s3 + $0x144] sm:$0xf] }
 0x1eb   :  { %v3555_v26 = vadd.f32 %v3554_v37, %v3542_v2  ;;  %v6810_v2 = vld [vmem:[%s7498_s3 + $0x114] sm:$0xf0] }
 0x1ed   :  { %4081 = vmatmul.bf16.vlgmr.msrb.gmra.mxu3 %v7265_v12  ;;  %4091 = vmatpush.bf16.msrb.mxu1 %v6173_v30  ;;  %v3568_v58 = vadd.f32 %v3567_v53, %v3555_v26  ;;  %v6260_v53 = vld [vmem:[%s7498_s3 + $0x150] sm:$0xf] }
 0x1ee   :  { %4125 = vmatpush.bf16.msra.mxu3 %v6217_v3  ;;  %4113 = vmatpush.bf16.msrb.mxu0 %v6145_v20  ;;  %v6113_v3 = vor.u32 %v6779_v59, %v6110_v60 }
 0x1f0   :  { %v3580_v18 = vpop.f32.mrf.mxu3 }
 0x1f1   :  { %4092 = vmatpush.bf16.msrb.mxu1 %v6165_v41  ;;  %v3581_v33 = vadd.f32 %v3580_v18, %v3568_v58  ;;  %v6262_v18 = vld [vmem:[%s7498_s3 + $0x158] sm:$0xf0] }
 0x1f2   :  { %4126 = vmatpush.bf16.msra.mxu3 %v6209_v54  ;;  %4114 = vmatpush.bf16.msrb.mxu0 %v6137_v31  ;;  %v3569_v61 = vpop.f32.mrf.mxu0  ;;  %v6161_v54 = vor.u32 %v6791_v7, %v6158_v4  ;;  %v6265_v60 = vor.u32 %v6817_v5, %v6262_v18  ;;  %v6249_v4 = vor.u32 %v6813_v9, %v6246_v55  ;;  %v6230_v58 = vld [vmem:[%s7498_s3 + $0x118] sm:$0xf0] }
 0x1f3   :  { %v6236_v61 = vld [vmem:[%s7498_s3 + $0x120] sm:$0xf]  ;;  %v6832_v55 = vld [vmem:[#allocation8 + $0x48] sm:$0xff] }
 0x1f5   :  { %4093 = vmatpush.bf16.msrb.mxu1 %v6157_v56  ;;  %v3593_v8 = vpop.f32.mrf.mxu1  ;;  %v6818_v56 = vld [vmem:[%s7498_s3 + $0x154] sm:$0xf0] }
 0x1f6   :  { %4127 = vmatpush.bf16.msra.mxu3 %v6201_v22  ;;  %4115 = vmatpush.bf16.msrb.mxu0 %v6129_v42  ;;  %v3594_v20 = vadd.f32 %v3593_v8, %v3581_v33  ;;  %v6268_v42 = vld [vmem:[%s7498_s3 + $0x160] sm:$0xf]  ;;  %v6257_v8 = vor.u32 %v6815_v1, %v6254_v50  ;;  %v6826_v1 = vld [vmem:[#allocation8 + $0x18] sm:$0xff] }
 0x1f8   :  { %v3582_v11 = vpop.f32.mrf.mxu3 }
 0x1f9   :  { %4138 = vmatpush.bf16.msra.mxu1 %v6281_v40  ;;  %v6237_v11 = vor.u32 %v6812_v10, %v6236_v61  ;;  %v6823_v61 = vld [vmem:[#allocation8] sm:$0xff] }
 0x1fa   :  { %4128 = vmatpush.bf16.msra.mxu3 %v6193_v25  ;;  %4116 = vmatpush.bf16.msrb.mxu0 %v6121_v57  ;;  %v6822_v25 = vld [vmem:[%s7498_s3 + $0x174] sm:$0xf0]  ;;  %v6261_v57 = vor.u32 %v6818_v56, %v6260_v53 }
 0x1fb   :  { %v6277_v37 = vor.u32 %v6822_v25, %v6276_v32 }
 0x1fd   :  { %v3595_v19 = vpop.f32.mrf.mxu1  ;;  %4099 = vmatpush.bf16.msrb.mxu2 %v6277_v37  ;;  %4139 = vmatpush.bf16.msra.mxu1 %v6273_v51 }
 0x1fe   :  { %4129 = vmatpush.bf16.msra.mxu3 %v6185_v44  ;;  %4117 = vmatpush.bf16.msrb.mxu0 %v6113_v3  ;;  %v6269_v44 = vor.u32 %v6820_v38, %v6268_v42  ;;  %v6814_v3 = vld [vmem:[%s7498_s3 + $0x134] sm:$0xf0] }
 0x1ff   :  { %v6245_v7 = vor.u32 %v6814_v3, %v6244_v13 }
 0x200   :  { %v3606_v62 = vpop.f32.mrf.mxu2 }
 0x201   :  { %v3607_v21 = vadd.f32 %v3606_v62, %v3594_v20  ;;  %4100 = vmatpush.bf16.msrb.mxu2 %v6269_v44  ;;  %4140 = vmatpush.bf16.msra.mxu1 %v6265_v60  ;;  %v6220_v62 = vld [vmem:[%s7498_s3 + $0x100] sm:$0xf]  ;;  %v6808_v20 = vld [vmem:[%s7498_s3 + $0x104] sm:$0xf0]  ;;  %v6828_v60 = vld [vmem:[#allocation8 + $0x28] sm:$0xff] }
 0x202   :  { %4130 = vmatpush.bf16.msra.mxu3 %v6177_v63  ;;  %4118 = vmatpush.bf16.msrb.mxu0 %v6105_v27  ;;  %v6252_v63 = vld [vmem:[%s7498_s3 + $0x140] sm:$0xf]  ;;  %v6811_v27 = vld [vmem:[%s7498_s3 + $0x124] sm:$0xf] }
 0x203   :  { %v6253_v35 = vor.u32 %v6816_v0, %v6252_v63  ;;  %v6241_v15 = vor.u32 %v6811_v27, %v6238_v14  ;;  %v6827_v63 = vld [vmem:[#allocation8 + $0x20] sm:$0xff] }
 0x204   :  { %v3619_v17 = vpop.f32.mrf.mxu0 }
 0x205   :  { %v3620_v22 = vadd.f32 %v3619_v17, %v3607_v21  ;;  %4101 = vmatpush.bf16.msrb.mxu2 %v6261_v57  ;;  %4141 = vmatpush.bf16.msra.mxu1 %v6257_v8  ;;  %v6807_v21 = vld [vmem:[%s7498_s3 + $0x104] sm:$0xf]  ;;  %v6834_v57 = vld [vmem:[#allocation8 + $0x58] sm:$0xff] }
 0x206   :  { %4131 = vmatpush.bf16.msra.mxu3 %v6169_v6  ;;  %4119 = vmatpush.bf16.msrb.mxu0 %v6097_v16  ;;  %v6809_v16 = vld [vmem:[%s7498_s3 + $0x114] sm:$0xf] }
 0x207   :  { %v3780_v23 = vmax.f32 %v3620_v22, 0.0  ;;  %v6233_v33 = vor.u32 %v6809_v16, %v6230_v58  ;;  %v6221_v22 = vor.u32 %v6808_v20, %v6220_v62 }
 0x208   :  { %v3608_v34 = vpop.f32.mrf.mxu2 }
 0x209   :  { %4120 = vmatmul.bf16.vlgmr.msrb.gmra.mxu0 %v7265_v12  ;;  %v3783_v48 = vpack.c.bf16 %v3780_v23, %v3780_v23  ;;  %4102 = vmatpush.bf16.msrb.mxu2 %v6253_v35  ;;  %v6222_v23 = vld [vmem:[%s7498_s3 + $0x108] sm:$0xf0] }
 0x20a   :  { %4132 = vmatpush.bf16.msra.mxu3 %v6161_v54  ;;  %4142 = vmatpush.bf16.msra.mxu1 %v6249_v4  ;;  %v6228_v54 = vld [vmem:[%s7498_s3 + $0x110] sm:$0xf]  ;;  %v6225_v34 = vor.u32 %v6807_v21, %v6222_v23  ;;  %v6824_v4 = vld [vmem:[#allocation8 + $0x8] sm:$0xff]  ;;  %s6986_s3 = smov [#allocation10]  }
 0x20b   :  { %4094 = vmatmul.bf16.vlgmr.msrb.gmra.mxu1 %v3783_v48  ;;  %v6229_v26 = vor.u32 %v6810_v2, %v6228_v54  ;;  %4272 = vmatpush.bf16.msra.mxu0 %v6834_v57  ;;  %s4288_s1 = sshll.u32 %s6986_s3, 4  ;;  %s4289_s1 = int_to_ptr.vmem [resolvable:$true] %s4288_s1 }
 0x20c   :  { %v3621_v29 = vpop.f32.mrf.mxu0 }
 0x20d   :  { %4133 = vmatmul.bf16.vlgmr.msra.gmra.mxu3 %v3783_v48  ;;  %4103 = vmatpush.bf16.msrb.mxu2 %v6245_v7  ;;  %v6831_v7 = vld [vmem:[#allocation8 + $0x40] sm:$0xff] }
 0x20e   :  { %4143 = vmatpush.bf16.msra.mxu1 %v6241_v15 }
 0x210   :  { %v7378_v24 = vpop.f32.mrf.mxu3 }
 0x211   :  { %4104 = vmatpush.bf16.msrb.mxu2 %v6237_v11 }
 0x212   :  { %4144 = vmatpush.bf16.msra.mxu1 %v6233_v33 }
 0x215   :  { %v7380_v28 = vpop.f32.mrf.mxu1  ;;  %4105 = vmatpush.bf16.msrb.mxu2 %v6229_v26 }
 0x216   :  { %4145 = vmatpush.bf16.msra.mxu1 %v6225_v34 }
 0x218   :  { %v3634_v30 = vpop.f32.mrf.mxu3 }
 0x219   :  { %4106 = vmatpush.bf16.msrb.mxu2 %v6221_v22  ;;  %v3646_v30 = vadd.f32 %v7380_v28, %v7378_v24 }
 0x21d   :  { %v3647_v31 = vpop.f32.mrf.mxu1 }
 0x220   :  { %v7382_v49 = vpop.f32.mrf.mxu2 }
 0x221   :  { %v3659_v32 = vadd.f32 %v7382_v49, %v3646_v30 }
 0x224   :  { %v7384_v12 = vpop.f32.mrf.mxu0 }
 0x225   :  { %v3672_v36 = vadd.f32 %v7384_v12, %v3659_v32 }
 0x228   :  { %v3660_v41 = vpop.f32.mrf.mxu2 }
 0x22c   :  { %v3673_v52 = vpop.f32.mrf.mxu0 }
 0x230   :  { %v7398_v39 = vpop.f32.mrf.mxu3 }
 0x231   :  { %v3685_v46 = vadd.f32 %v7398_v39, %v3672_v36  ;;  %v6830_v39 = vld [vmem:[#allocation8 + $0x38] sm:$0xff] }
 0x232   :  { %4255 = vmatpush.bf16.msra.mxu2 %v6830_v39 }
 0x235   :  { %v7412_v47 = vpop.f32.mrf.mxu1 }
 0x236   :  { %v3698_v41 = vadd.f32 %v7412_v47, %v3685_v46  ;;  %v6829_v47 = vld [vmem:[#allocation8 + $0x30] sm:$0xff] }
 0x237   :  { %4256 = vmatpush.bf16.msra.mxu2 %v6829_v47 }
 0x238   :  { %v3686_v59 = vpop.f32.mrf.mxu3 }
 0x239   :  { %v6833_v59 = vld [vmem:[#allocation8 + $0x50] sm:$0xff] }
 0x23a   :  { %4273 = vmatpush.bf16.msra.mxu0 %v6833_v59 }
 0x23b   :  { %4257 = vmatpush.bf16.msra.mxu2 %v6828_v60 }
 0x23d   :  { %v3699_v6 = vpop.f32.mrf.mxu1 }
 0x23e   :  { %4274 = vmatpush.bf16.msra.mxu0 %v6832_v55  ;;  %v6825_v6 = vld [vmem:[#allocation8 + $0x10] sm:$0xff] }
 0x23f   :  { %4258 = vmatpush.bf16.msra.mxu2 %v6827_v63 }
 0x242   :  { %4275 = vmatpush.bf16.msra.mxu0 %v6831_v7 }
 0x243   :  { %v3710_v19 = vpop.f32.mrf.mxu2  ;;  %4259 = vmatpush.bf16.msra.mxu2 %v6826_v1 }
 0x244   :  { %v3711_v42 = vadd.f32 %v3710_v19, %v3698_v41 }
 0x246   :  { %v3723_v17 = vpop.f32.mrf.mxu0 }
 0x247   :  { %v3724_v38 = vadd.f32 %v3723_v17, %v3711_v42  ;;  %4260 = vmatpush.bf16.msra.mxu2 %v6825_v6 }
 0x24b   :  { %v3712_v29 = vpop.f32.mrf.mxu2  ;;  %4261 = vmatpush.bf16.msra.mxu2 %v6824_v4 }
 0x24e   :  { %v3725_v25 = vpop.f32.mrf.mxu0 }
 0x24f   :  { %4262 = vmatpush.bf16.msra.mxu2 %v6823_v61 }
 0x250   :  { %v3736_v48 = vpop.f32.mrf.mxu3 }
 0x251   :  { %v3737_v43 = vadd.f32 %v3736_v48, %v3724_v38 }
 0x255   :  { %v3749_v31 = vpop.f32.mrf.mxu1 }
 0x256   :  { %v3750_v45 = vadd.f32 %v3749_v31, %v3737_v43 }
 0x258   :  { %v3738_v37 = vpop.f32.mrf.mxu3 }
 0x25d   :  { %v3751_v40 = vpop.f32.mrf.mxu1 }
 0x262   :  { %v3762_v44 = vpop.f32.mrf.mxu2 }
 0x263   :  { %v3763_v51 = vadd.f32 %v3762_v44, %v3750_v45 }
 0x266   :  { %v3775_v52 = vpop.f32.mrf.mxu0 }
 0x267   :  { %v3776_v24 = vadd.f32 %v3775_v52, %v3763_v51 }
 0x269   :  { %v3781_v28 = vmax.f32 %v3776_v24, 0.0 }
 0x26a   :  { %v3764_v49 = vpop.f32.mrf.mxu2 }
 0x26b   :  { %v3784_v56 = vpack.c.bf16 %v3781_v28, %v3781_v28 }
 0x26d   :  { %4107 = vmatmul.bf16.vlgmr.msrb.gmra.mxu2 %v3784_v56  ;;  %4146 = vmatmul.bf16.vlgmr.msra.gmra.mxu1 %v3784_v56 }
 0x26e   :  { %v3777_v12 = vpop.f32.mrf.mxu0 }
 0x270   :  { %v4082_v53 = vpop.f32.mrf.mxu3 }
 0x278   :  { %v4084_v5 = vpop.f32.mrf.mxu3 }
 0x286   :  { %v4121_v18 = vpop.f32.mrf.mxu0 }
 0x288   :  { %v4095_v35 = vpop.f32.mrf.mxu1 }
 0x289   :  { %v4096_v50 = vadd.f32 %v4095_v35, %v4082_v53 }
 0x28e   :  { %v4123_v0 = vpop.f32.mrf.mxu0 }
 0x290   :  { %v4134_v13 = vpop.f32.mrf.mxu3  ;;  %v4097_v8 = vpop.f32.mrf.mxu1 }
 0x291   :  { %v4135_v3 = vadd.f32 %v4134_v13, %v4121_v18 }
 0x298   :  { %v4136_v9 = vpop.f32.mrf.mxu3 }
 0x2ea   :  { %v4147_v10 = vpop.f32.mrf.mxu1 }
 0x2eb   :  { %v4148_v27 = vadd.f32 %v4147_v10, %v4135_v3 }
 0x2ed   :  { %v4152_v11 = vmax.f32 %v4148_v27, 0.0 }
 0x2ef   :  { %v4154_v14 = vpack.c.bf16 %v4152_v11, %v4152_v11 }
 0x2f0   :  { %v4108_v15 = vpop.f32.mrf.mxu2 }
 0x2f1   :  { %v4109_v54 = vadd.f32 %v4108_v15, %v4096_v50  ;;  %6330 = vmatmul.msk.bf16.vlgmr.msra.gmra.mxu0 %vm4251_vm3, %v4154_v14 }
 0x2f2   :  { %v4149_v2 = vpop.f32.mrf.mxu1 }
 0x2f3   :  { %v4151_v16 = vmax.f32 %v4109_v54, 0.0 }
 0x2f5   :  { %v4153_v19 = vpack.c.bf16 %v4151_v16, %v4151_v16 }
 0x2f7   :  { %4263 = vmatmul.bf16.vlgmr.msra.gmra.mxu2 %v4153_v19 }
 0x2f8   :  { %v4110_v26 = vpop.f32.mrf.mxu2 }
 0x36e   :  { %v4277_v58 = vpop.f32.mrf.mxu0 }
 0x376   :  { %v4279_v33 = vpop.f32.mrf.mxu0 }
 0x37a   :  { %v4264_v62 = vpop.f32.mrf.mxu2 }
 0x37b   :  { %v4278_v20 = vadd.f32 %v4277_v58, %v4264_v62 }
 0x37d   :  { %v4281_v21 = vpack.c.bf16 %v4278_v20, %v4278_v20 }
 0x37f   :  { %4282 = vst [vmem:[#allocation10] sm:$0xf] %v4281_v21 }
 0x380   :  { %4293 = dma.vmem_to_hbm [thread:$0]  %s4289_s1, 64, %s4291_s10, [#allocation4]  }
 0x382   :  { %v4266_v17 = vpop.f32.mrf.mxu2 }
 0x383   :  { %6973 = dma.done.wait [#allocation4], 64  }
 0x384   :  { %6974 = vsyncadd [#allocation4], 4294967232 }
 0x385   :  { %4298 = vsyncpa [#allocation3], 1 }
 0x386   :  { %4299 = vsyncpa [#allocation6], 1 }
 0x387   :  { %4300 = vsyncpa [#allocation9], 1 }
 0x388   :  { %4301 = vsyncpa [#allocation4], 1 }

</bundles_post_ra>
